<compile_context>
chip_gen: v6e
topology: v6e:2x2x1
jax: 0.10.0
libtpu: 0.0.40
codegen_flags: <defaults>
</compile_context>

<pallas_src>
import functools

import numpy as np
import jax
import jax.numpy as jnp
from jax import lax
from jax.experimental import pallas as pl
from jax.experimental.pallas import tpu as pltpu


# ----------------------------------------------------------------------------
# Kernel 1: fused encoder.
#   GRU1 -> lin1 -> GRU2 -> lin2 (+ qz0 head on the final hidden state).
#   grid=(T//Tc,), Tc time steps per grid iteration, hidden states in VMEM
#   scratch, the time reversal of the reference is folded into the index maps.
# ----------------------------------------------------------------------------
def _encoder_kernel(x_ref, wih1_ref, whh1_ref, bih1_ref, bhh1_ref, wl1_ref, bl1_ref,
                    wih2_ref, whh2_ref, bih2_ref, bhh2_ref, wl2_ref, bl2_ref,
                    wq_ref, bq_ref, ctx_ref, qz0_ref, h1_scr, h2_scr, *, chunk):
    c = pl.program_id(0)
    H = h1_scr.shape[1]

    @pl.when(c == 0)
    def _():
        h1_scr[...] = jnp.zeros_like(h1_scr)
        h2_scr[...] = jnp.zeros_like(h2_scr)

    # Hoist all weight loads out of the per-step loop.
    wih1 = wih1_ref[...]; whh1 = whh1_ref[...]
    bih1 = bih1_ref[...]; bhh1 = bhh1_ref[...]
    wl1 = wl1_ref[...]; bl1 = bl1_ref[...]
    wih2 = wih2_ref[...]; whh2 = whh2_ref[...]
    bih2 = bih2_ref[...]; bhh2 = bhh2_ref[...]
    wl2 = wl2_ref[...]; bl2 = bl2_ref[...]

    def gru_cell(x, h, wi, wh, bi, bh):
        gi = jnp.dot(x, wi, preferred_element_type=jnp.float32) + bi
        gh = jnp.dot(h, wh, preferred_element_type=jnp.float32) + bh
        r = jax.nn.sigmoid(gi[:, :H] + gh[:, :H])
        zg = jax.nn.sigmoid(gi[:, H:2 * H] + gh[:, H:2 * H])
        n = jnp.tanh(gi[:, 2 * H:] + r * gh[:, 2 * H:])
        return (1.0 - zg) * n + zg * h
        # TODO(synk): single concat([x,h]) stacked-weight matmul skipped to avoid
        # a runtime lane-dim concatenate; two dots are kept per GRU cell.

    # The encoder runs on the time-REVERSED sequence; the index_map hands us the
    # original-order block, so walk it back-to-front (row = chunk-1-s).
    for s in range(chunk):
        row = chunk - 1 - s
        x = x_ref[row]                                                    # (B, D)
        h1 = gru_cell(x, h1_scr[...], wih1, whh1, bih1, bhh1)
        h1_scr[...] = h1
        y = jnp.dot(h1, wl1, preferred_element_type=jnp.float32) + bl1    # (B, 2H)
        h2 = gru_cell(y, h2_scr[...], wih2, whh2, bih2, bhh2)
        h2_scr[...] = h2
        ctx_ref[row] = jnp.dot(h2, wl2, preferred_element_type=jnp.float32) + bl2

    # The final encoder step produces ctx[0]; fuse the qz0 head here.
    @pl.when(c == pl.num_programs(0) - 1)
    def _():
        ctx0 = jnp.dot(h2_scr[...], wl2, preferred_element_type=jnp.float32) + bl2
        qz0_ref[...] = (jnp.dot(ctx0, wq_ref[...], preferred_element_type=jnp.float32)
                        + bq_ref[...])


def _largest_chunk(T, max_chunk=8):
    for c in range(min(T, max_chunk), 0, -1):
        if T % c == 0:
            return c
    return 1


def encoder_forward(xs, enc_params):
    T, B, D = xs.shape
    (wih1, whh1, bih1, bhh1, wl1, bl1,
     wih2, whh2, bih2, bhh2, wl2, bl2, wq, bq) = enc_params
    H = whh1.shape[0]
    C = wl2.shape[1]
    L2 = wq.shape[1]
    Tc = _largest_chunk(T)
    nblk = T // Tc
    weights = (wih1, whh1, bih1, bhh1, wl1, bl1,
               wih2, whh2, bih2, bhh2, wl2, bl2, wq, bq)
    wspecs = [pl.BlockSpec(w.shape, lambda c: (0, 0)) for w in weights]   # all 2-D
    ctx, q = pl.pallas_call(
        functools.partial(_encoder_kernel, chunk=Tc),
        out_shape=(jax.ShapeDtypeStruct((T, B, C), jnp.float32),
                   jax.ShapeDtypeStruct((B, L2), jnp.float32)),
        grid=(nblk,),
        in_specs=[pl.BlockSpec((Tc, B, D), lambda c: (nblk - 1 - c, 0, 0))] + wspecs,
        out_specs=(pl.BlockSpec((Tc, B, C), lambda c: (nblk - 1 - c, 0, 0)),
                   pl.BlockSpec((B, L2), lambda c: (0, 0))),
        scratch_shapes=[pltpu.VMEM((B, H), jnp.float32),
                        pltpu.VMEM((B, H), jnp.float32)],
        compiler_params=pltpu.CompilerParams(dimension_semantics=("arbitrary",)),
    )(xs, *weights)
    return ctx, q


# ----------------------------------------------------------------------------
# Kernel 2: streamed SDE integration (Stratonovich Heun, logqp-augmented).
#   grid=(T-1,); ts via scalar prefetch (SMEM); ctx/dw streamed per segment;
#   z carried in VMEM scratch; logqp path integral accumulated in a revisited
#   output block; f/h packed into one block-diagonal MLP.
# ----------------------------------------------------------------------------
def _sde_kernel(ts_ref, ctx_ref, z0_ref, dw_ref,
                wz1_ref, wc1_ref, b1_ref, w2_ref, b2_ref, w3_ref, b3_ref,
                w4_ref, b4_ref, gw1_ref, gb1_ref, gw2_ref, gb2_ref,
                zs_ref, lsum_ref, z_scr, *, nsub):
    k = pl.program_id(0)

    @pl.when(k == 0)
    def _():
        z_scr[...] = z0_ref[...]
        lsum_ref[...] = jnp.zeros_like(lsum_ref)

    B, L = z_scr.shape
    # Hoisted weight loads (once per time segment, not per substep).
    wz1 = wz1_ref[...]
    w2 = w2_ref[...]; b2 = b2_ref[...]
    w3 = w3_ref[...]; b3 = b3_ref[...]
    w4 = w4_ref[...]; b4 = b4_ref[...]
    gw1 = gw1_ref[...]; gb1 = gb1_ref[...]
    gw2 = gw2_ref[...]; gb2 = gb2_ref[...]
    Ghid = gw1.shape[1]

    # Hoisted broadcasts for the diagonal-diffusion nets (JAX doesn't CSE them).
    gw1b = jnp.broadcast_to(gw1[None, :, :], (B, L, Ghid))
    gb1b = jnp.broadcast_to(gb1[None, :, :], (B, L, Ghid))
    gw2b = jnp.broadcast_to(gw2[None, :, :], (B, L, Ghid))

    # Context for segment k: static index k+1 (== min(searchsorted(ts, t,
    # right=True), T-1) for t in [ts[k], ts[k+1])).  Its contribution to the
    # first drift layer is constant over the segment -> compute it once.
    # (Minor deviation: the corrector eval exactly at ts[k+1] also uses k+1.)
    c = ctx_ref[0]                                                        # (B, C)
    cpart = jnp.dot(c, wc1_ref[...], preferred_element_type=jnp.float32) + b1_ref[...]

    dt = (ts_ref[k + 1] - ts_ref[k]) * (1.0 / nsub)

    def drift_diff(z):
        # Fused posterior drift f (left half) and prior drift h (right half):
        # block-diagonal weights keep the two paths independent.
        x = jax.nn.softplus(jnp.dot(z, wz1, preferred_element_type=jnp.float32) + cpart)
        x = jax.nn.softplus(jnp.dot(x, w2, preferred_element_type=jnp.float32) + b2)
        x = jax.nn.softplus(jnp.dot(x, w3, preferred_element_type=jnp.float32) + b3)
        fh = jnp.dot(x, w4, preferred_element_type=jnp.float32) + b4
        f = fh[:, :L]
        h = fh[:, L:]
        # Diagonal diffusion: L independent 1 -> Ghid -> 1 MLPs, vectorized.
        hdn = jax.nn.softplus(z[:, :, None] * gw1b + gb1b)
        g = jax.nn.sigmoid(jnp.sum(hdn * gw2b, axis=-1) + gb2)
        inv_g = pl.reciprocal(jnp.maximum(g, 1e-7), approx=True)
        u = (f - h) * inv_g
        kl = 0.5 * jnp.sum(u * u, axis=1, keepdims=True)                  # (B, 1)
        return f, g, kl

    def heun_step(s, carry):
        z, lr = carry
        dw = dw_ref[s]                                                    # (B, L)
        f1, g1, kl1 = drift_diff(z)
        z_pred = z + f1 * dt + g1 * dw
        f2, g2, kl2 = drift_diff(z_pred)
        z_new = z + 0.5 * (f1 + f2) * dt + 0.5 * (g1 + g2) * dw
        lr_new = lr + 0.5 * (kl1 + kl2) * dt
        return z_new, lr_new

    z = z_scr[...]
    lr0 = jnp.zeros((B, 1), jnp.float32)
    z, lr = lax.fori_loop(0, nsub, heun_step, (z, lr0), unroll=True)

    z_scr[...] = z
    zs_ref[0] = z
    lsum_ref[...] = lsum_ref[...] + lr


def sde_integrate(ts, ctx, z0, dw, fh_params, g_params, nsub):
    T, B, C = ctx.shape
    L = z0.shape[1]
    n_seg = T - 1
    weights = tuple(fh_params) + tuple(g_params)
    wspecs = [pl.BlockSpec(w.shape, lambda k, ts_ref: (0, 0)) for w in weights]
    grid_spec = pltpu.PrefetchScalarGridSpec(
        num_scalar_prefetch=1,
        grid=(n_seg,),
        in_specs=[pl.BlockSpec((1, B, C), lambda k, ts_ref: (k + 1, 0, 0)),
                  pl.BlockSpec((B, L), lambda k, ts_ref: (0, 0)),
                  pl.BlockSpec((nsub, B, L), lambda k, ts_ref: (k, 0, 0))] + wspecs,
        out_specs=(pl.BlockSpec((1, B, L), lambda k, ts_ref: (k, 0, 0)),
                   pl.BlockSpec((B, 1), lambda k, ts_ref: (0, 0))),
        scratch_shapes=[pltpu.VMEM((B, L), jnp.float32)],
    )
    zs_tail, lsum = pl.pallas_call(
        functools.partial(_sde_kernel, nsub=nsub),
        grid_spec=grid_spec,
        out_shape=(jax.ShapeDtypeStruct((n_seg, B, L), jnp.float32),
                   jax.ShapeDtypeStruct((B, 1), jnp.float32)),
        compiler_params=pltpu.CompilerParams(dimension_semantics=("arbitrary",)),
    )(ts, ctx, z0, dw, *weights)
    return zs_tail, lsum                       # (T-1, B, L), (B, 1)


# ----------------------------------------------------------------------------
# Kernel 3: fused decoder + Gaussian log-likelihood reduction.
#   grid=(T,), zs/xs streamed per time step, scalar accumulator in the
#   revisited (1,1) output block.
# ----------------------------------------------------------------------------
def _decoder_kernel(zs_ref, xs_ref, p1w_ref, p1b_ref, p2w_ref, p2b_ref,
                    nw_ref, nb_ref, out_ref):
    t = pl.program_id(0)

    @pl.when(t == 0)
    def _():
        out_ref[...] = jnp.zeros_like(out_ref)

    z = zs_ref[0]
    x = xs_ref[0]
    hp = jax.nn.softplus(jnp.dot(z, p1w_ref[...], preferred_element_type=jnp.float32)
                         + p1b_ref[...])
    loc = jnp.dot(hp, p2w_ref[...], preferred_element_type=jnp.float32) + p2b_ref[...]
    scale = jax.nn.softplus(jnp.dot(z, nw_ref[...], preferred_element_type=jnp.float32)
                            + nb_ref[...])
    scale = jnp.maximum(scale, 1e-6)           # numerical floor (underflow guard)
    inv = pl.reciprocal(scale, approx=True)
    d = (x - loc) * inv
    logp = -0.5 * d * d - jnp.log(scale) - 0.5 * jnp.log(2.0 * jnp.pi)
    out_ref[...] = out_ref[...] + jnp.reshape(jnp.sum(logp), (1, 1))


def decode_loglik(zs, xs, dec_params):
    T, B, L = zs.shape
    D = xs.shape[-1]
    weights = tuple(dec_params)                 # (p1w, p1b, p2w, p2b, nw, nb)
    total = pl.pallas_call(
        _decoder_kernel,
        out_shape=jax.ShapeDtypeStruct((1, 1), jnp.float32),
        grid=(T,),
        in_specs=[pl.BlockSpec((1, B, L), lambda t: (t, 0, 0)),
                  pl.BlockSpec((1, B, D), lambda t: (t, 0, 0))]
                 + [pl.BlockSpec(w.shape, lambda t: (0, 0)) for w in weights],
        out_specs=pl.BlockSpec((1, 1), lambda t: (0, 0)),
        compiler_params=pltpu.CompilerParams(dimension_semantics=("arbitrary",)),
    )(zs, xs, *weights)
    return total[0, 0]


# ----------------------------------------------------------------------------
# Deterministic parameter initialization (PyTorch-style uniform bounds) and
# host-side packing (block-diagonal f/h net, hoisted context weight).
# ----------------------------------------------------------------------------
def _uniform(key, shape, fan_in):
    bound = 1.0 / np.sqrt(fan_in)
    return jax.random.uniform(key, shape, jnp.float32, -bound, bound)


def init_linear(key, in_f, out_f):
    k1, k2 = jax.random.split(key)
    w = _uniform(k1, (out_f, in_f), in_f)       # PyTorch (out, in) layout
    b = _uniform(k2, (out_f,), in_f)
    return w.T, b.reshape(1, out_f)             # transposed for kernels


def init_gru(key, in_f, hid):
    k1, k2, k3, k4 = jax.random.split(key, 4)
    w_ih = _uniform(k1, (3 * hid, in_f), hid)
    w_hh = _uniform(k2, (3 * hid, hid), hid)
    b_ih = _uniform(k3, (3 * hid,), hid)
    b_hh = _uniform(k4, (3 * hid,), hid)
    return w_ih.T, w_hh.T, b_ih.reshape(1, 3 * hid), b_hh.reshape(1, 3 * hid)


def init_gnets(key, latent, hid):
    w1s, b1s, w2s, b2s = [], [], [], []
    for _ in range(latent):
        key, k1, k2, k3, k4 = jax.random.split(key, 5)
        w1s.append(_uniform(k1, (hid, 1), 1)[:, 0])    # Linear(1, hid).weight
        b1s.append(_uniform(k2, (hid,), 1))
        w2s.append(_uniform(k3, (1, hid), hid)[0])     # Linear(hid, 1).weight
        b2s.append(_uniform(k4, (1,), hid)[0])
    gw1 = jnp.stack(w1s)                    # (L, hid)
    gb1 = jnp.stack(b1s)                    # (L, hid)
    gw2 = jnp.stack(w2s)                    # (L, hid)
    gb2 = jnp.stack(b2s).reshape(1, latent)
    return gw1, gb1, gw2, gb2


def _blockdiag(a, b):
    ka, na = a.shape
    kb, nb = b.shape
    out = jnp.zeros((ka + kb, na + nb), jnp.float32)
    return out.at[:ka, :na].set(a).at[ka:, na:].set(b)


def init_params(key, data_size, latent_size, context_size, hidden_size):
    D, L, C, H = data_size, latent_size, context_size, hidden_size
    keys = jax.random.split(key, 17)
    gru1 = init_gru(keys[0], D, H)
    lin1 = init_linear(keys[1], H, 2 * H)
    gru2 = init_gru(keys[2], 2 * H, H)
    lin2 = init_linear(keys[3], H, C)
    qz0 = init_linear(keys[4], C, 2 * L)
    f1 = init_linear(keys[5], L + C, H)
    f2 = init_linear(keys[6], H, 2 * H)
    f3 = init_linear(keys[7], 2 * H, H)
    f4 = init_linear(keys[8], H, L)
    h1 = init_linear(keys[9], L, H)
    h2 = init_linear(keys[10], H, 2 * H)
    h3 = init_linear(keys[11], 2 * H, H)
    h4 = init_linear(keys[12], H, L)
    gnets = init_gnets(keys[13], L, H)
    proj1 = init_linear(keys[14], L, 2 * D)
    proj2 = init_linear(keys[15], 2 * D, D)
    nproj = init_linear(keys[16], L, D)

    p = {}
    p["enc"] = gru1 + lin1 + gru2 + lin2 + qz0          # 14 arrays

    # Pack f_net / h_net into one block-diagonal MLP; the z-part of layer 1 is
    # horizontally stacked, and the context contribution gets its own weight
    # (padded with zeros on the h half) so it can be hoisted per segment.
    fw1, fb1 = f1
    hw1, hb1 = h1
    wz1 = jnp.concatenate([fw1[:L, :], hw1], axis=1)                           # (L, 2H)
    wc1 = jnp.concatenate([fw1[L:, :], jnp.zeros((C, H), jnp.float32)], axis=1)  # (C, 2H)
    b1 = jnp.concatenate([fb1, hb1], axis=1)                                   # (1, 2H)
    w2 = _blockdiag(f2[0], h2[0]); b2 = jnp.concatenate([f2[1], h2[1]], axis=1)
    w3 = _blockdiag(f3[0], h3[0]); b3 = jnp.concatenate([f3[1], h3[1]], axis=1)
    w4 = _blockdiag(f4[0], h4[0]); b4 = jnp.concatenate([f4[1], h4[1]], axis=1)
    p["fh"] = (wz1, wc1, b1, w2, b2, w3, b3, w4, b4)
    p["g"] = gnets
    p["dec"] = proj1 + proj2 + nproj                    # (p1w,p1b,p2w,p2b,nw,nb)
    p["pz0_mean"] = jnp.zeros((1, L), jnp.float32)
    p["pz0_logstd"] = jnp.zeros((1, L), jnp.float32)
    return p


# ----------------------------------------------------------------------------
# Full forward pass (glue in plain JAX, compute in the 3 fused Pallas kernels).
# ----------------------------------------------------------------------------
def latent_sde_forward(params, xs, ts, noise_std, key, dt=0.01):
    # noise_std is accepted for signature fidelity but (as in the reference
    # module) is not used: the observation scale comes from noise_projector.
    del noise_std
    T, B, D = xs.shape

    # ---- fused encoder on time-reversed input (+ qz0 head) ----
    ctx, q = encoder_forward(xs, params["enc"])          # (T,B,C), (B,2L)
    L = q.shape[1] // 2
    qz0_mean, qz0_logstd = q[:, :L], q[:, L:]

    k_eps, k_bm = jax.random.split(key)
    z0 = qz0_mean + jnp.exp(qz0_logstd) * jax.random.normal(k_eps, qz0_mean.shape)

    # ---- Brownian increments (host-side RNG); nsub from the LARGEST segment ----
    ts_np = np.asarray(ts)
    seg = ts_np[1:] - ts_np[:-1]
    nsub = max(1, int(np.ceil(float(np.max(seg)) / dt - 1e-9)))
    sub_dt = seg / nsub                                  # (T-1,)
    dw = (jax.random.normal(k_bm, (T - 1, nsub, B, L), jnp.float32)
          * jnp.sqrt(jnp.asarray(sub_dt, jnp.float32))[:, None, None, None])
    dw = dw.reshape((T - 1) * nsub, B, L)

    # ---- streamed SDE integration with logqp (one Pallas kernel) ----
    zs_tail, lsum = sde_integrate(ts, ctx, z0, dw,
                                  params["fh"], params["g"], nsub)
    zs = jnp.concatenate([z0[None], zs_tail], axis=0)    # (T, B, L)

    # ---- fused decoder + Gaussian log-likelihood ----
    total_logp = decode_loglik(zs, xs, params["dec"])
    log_pxs = total_logp / B     # sum over (time, data), mean over batch

    # ---- KL terms (tiny scalar glue) ----
    pm, pls = params["pz0_mean"], params["pz0_logstd"]
    kl = (pls - qz0_logstd
          + (jnp.exp(2.0 * qz0_logstd) + (qz0_mean - pm) ** 2) / (2.0 * jnp.exp(2.0 * pls))
          - 0.5)
    logqp0 = jnp.mean(jnp.sum(kl, axis=1))
    logqp_path = jnp.mean(lsum[:, 0])
    return log_pxs, logqp0 + logqp_path


if __name__ == "__main__":
    data_size, latent_size, context_size, hidden_size = 4, 4, 8, 16
    T, B = 8, 2

    key = jax.random.PRNGKey(0)
    k_params, k_xs, k_fwd = jax.random.split(key, 3)

    params = init_params(k_params, data_size, latent_size, context_size, hidden_size)
    xs = jax.random.normal(k_xs, (T, B, data_size), jnp.float32)  # (seq, batch, data)
    ts = jnp.linspace(0.0, 0.7, T, dtype=jnp.float32)
    noise_std = 0.01

    log_pxs, log_qp = latent_sde_forward(params, xs, ts, noise_std, k_fwd)
    jax.block_until_ready((log_pxs, log_qp))
    print("KERNEL_OK")
</pallas_src>

<mosaic_0001>
module attributes {stable_mosaic.version = 11 : i64} {
  func.func @_encoder_kernel(%arg0: i32, %arg1: memref<8x2x4xf32, #tpu.memory_space<vmem>>, %arg2: memref<4x48xf32, #tpu.memory_space<vmem>>, %arg3: memref<16x48xf32, #tpu.memory_space<vmem>>, %arg4: memref<1x48xf32, #tpu.memory_space<vmem>>, %arg5: memref<1x48xf32, #tpu.memory_space<vmem>>, %arg6: memref<16x32xf32, #tpu.memory_space<vmem>>, %arg7: memref<1x32xf32, #tpu.memory_space<vmem>>, %arg8: memref<32x48xf32, #tpu.memory_space<vmem>>, %arg9: memref<16x48xf32, #tpu.memory_space<vmem>>, %arg10: memref<1x48xf32, #tpu.memory_space<vmem>>, %arg11: memref<1x48xf32, #tpu.memory_space<vmem>>, %arg12: memref<16x8xf32, #tpu.memory_space<vmem>>, %arg13: memref<1x8xf32, #tpu.memory_space<vmem>>, %arg14: memref<8x8xf32, #tpu.memory_space<vmem>>, %arg15: memref<1x8xf32, #tpu.memory_space<vmem>>, %arg16: memref<8x2x8xf32, #tpu.memory_space<vmem>>, %arg17: memref<2x8xf32, #tpu.memory_space<vmem>>, %arg18: memref<2x16xf32, #tpu.memory_space<vmem>>, %arg19: memref<2x16xf32, #tpu.memory_space<vmem>>) attributes {dimension_semantics = [#tpu.dimension_semantics<arbitrary>], iteration_bounds = array<i64: 1>, scalar_prefetch = 0 : i64, scratch_operands = 2 : i64, tpu.core_type = #tpu.core_type<tc>, window_params = [{transform_indices = @transform_0, window_bounds = array<i64: 8, 2, 4>}, {pipeline_mode = #tpu.pipeline_mode<synchronous>, transform_indices = @transform_1, window_bounds = array<i64: 4, 48>}, {pipeline_mode = #tpu.pipeline_mode<synchronous>, transform_indices = @transform_2, window_bounds = array<i64: 16, 48>}, {pipeline_mode = #tpu.pipeline_mode<synchronous>, transform_indices = @transform_3, window_bounds = array<i64: 1, 48>}, {pipeline_mode = #tpu.pipeline_mode<synchronous>, transform_indices = @transform_4, window_bounds = array<i64: 1, 48>}, {pipeline_mode = #tpu.pipeline_mode<synchronous>, transform_indices = @transform_5, window_bounds = array<i64: 16, 32>}, {pipeline_mode = #tpu.pipeline_mode<synchronous>, transform_indices = @transform_6, window_bounds = array<i64: 1, 32>}, {pipeline_mode = #tpu.pipeline_mode<synchronous>, transform_indices = @transform_7, window_bounds = array<i64: 32, 48>}, {pipeline_mode = #tpu.pipeline_mode<synchronous>, transform_indices = @transform_8, window_bounds = array<i64: 16, 48>}, {pipeline_mode = #tpu.pipeline_mode<synchronous>, transform_indices = @transform_9, window_bounds = array<i64: 1, 48>}, {pipeline_mode = #tpu.pipeline_mode<synchronous>, transform_indices = @transform_10, window_bounds = array<i64: 1, 48>}, {pipeline_mode = #tpu.pipeline_mode<synchronous>, transform_indices = @transform_11, window_bounds = array<i64: 16, 8>}, {pipeline_mode = #tpu.pipeline_mode<synchronous>, transform_indices = @transform_12, window_bounds = array<i64: 1, 8>}, {pipeline_mode = #tpu.pipeline_mode<synchronous>, transform_indices = @transform_13, window_bounds = array<i64: 8, 8>}, {pipeline_mode = #tpu.pipeline_mode<synchronous>, transform_indices = @transform_14, window_bounds = array<i64: 1, 8>}, {transform_indices = @transform_15, window_bounds = array<i64: 8, 2, 8>}, {pipeline_mode = #tpu.pipeline_mode<synchronous>, transform_indices = @transform_16, window_bounds = array<i64: 2, 8>}]} {
    %c0_i32 = arith.constant 0 : i32
    %0 = arith.cmpi eq, %arg0, %c0_i32 : i32
    %1 = arith.extui %0 : i1 to i32
    %c0_i32_0 = arith.constant 0 : i32
    %2 = arith.cmpi ne, %1, %c0_i32_0 : i32
    scf.if %2 {
      %cst_226 = arith.constant 0.000000e+00 : f32
      %650 = vector.broadcast %cst_226 : f32 to vector<2x16xf32>
      %c0_227 = arith.constant 0 : index
      %c0_228 = arith.constant 0 : index
      %651 = vector.load %arg18[%c0_227, %c0_228] : memref<2x16xf32, #tpu.memory_space<vmem>>, vector<2x16xf32>
      tpu.vector_store %arg18[%c0_227, %c0_228], %650 {strides = array<i32>} : memref<2x16xf32, #tpu.memory_space<vmem>>, vector<2x16xf32>,
      %cst_229 = arith.constant 0.000000e+00 : f32
      %652 = vector.broadcast %cst_229 : f32 to vector<2x16xf32>
      %c0_230 = arith.constant 0 : index
      %c0_231 = arith.constant 0 : index
      %653 = vector.load %arg19[%c0_230, %c0_231] : memref<2x16xf32, #tpu.memory_space<vmem>>, vector<2x16xf32>
      tpu.vector_store %arg19[%c0_230, %c0_231], %652 {strides = array<i32>} : memref<2x16xf32, #tpu.memory_space<vmem>>, vector<2x16xf32>,
    } else {
    }
    %c0 = arith.constant 0 : index
    %c0_1 = arith.constant 0 : index
    %3 = vector.load %arg2[%c0, %c0_1] : memref<4x48xf32, #tpu.memory_space<vmem>>, vector<4x48xf32>
    %c0_2 = arith.constant 0 : index
    %c0_3 = arith.constant 0 : index
    %4 = vector.load %arg3[%c0_2, %c0_3] : memref<16x48xf32, #tpu.memory_space<vmem>>, vector<16x48xf32>
    %c0_4 = arith.constant 0 : index
    %c0_5 = arith.constant 0 : index
    %5 = vector.load %arg4[%c0_4, %c0_5] : memref<1x48xf32, #tpu.memory_space<vmem>>, vector<1x48xf32>
    %c0_6 = arith.constant 0 : index
    %c0_7 = arith.constant 0 : index
    %6 = vector.load %arg5[%c0_6, %c0_7] : memref<1x48xf32, #tpu.memory_space<vmem>>, vector<1x48xf32>
    %c0_8 = arith.constant 0 : index
    %c0_9 = arith.constant 0 : index
    %7 = vector.load %arg6[%c0_8, %c0_9] : memref<16x32xf32, #tpu.memory_space<vmem>>, vector<16x32xf32>
    %c0_10 = arith.constant 0 : index
    %c0_11 = arith.constant 0 : index
    %8 = vector.load %arg7[%c0_10, %c0_11] : memref<1x32xf32, #tpu.memory_space<vmem>>, vector<1x32xf32>
    %c0_12 = arith.constant 0 : index
    %c0_13 = arith.constant 0 : index
    %9 = vector.load %arg8[%c0_12, %c0_13] : memref<32x48xf32, #tpu.memory_space<vmem>>, vector<32x48xf32>
    %c0_14 = arith.constant 0 : index
    %c0_15 = arith.constant 0 : index
    %10 = vector.load %arg9[%c0_14, %c0_15] : memref<16x48xf32, #tpu.memory_space<vmem>>, vector<16x48xf32>
    %c0_16 = arith.constant 0 : index
    %c0_17 = arith.constant 0 : index
    %11 = vector.load %arg10[%c0_16, %c0_17] : memref<1x48xf32, #tpu.memory_space<vmem>>, vector<1x48xf32>
    %c0_18 = arith.constant 0 : index
    %c0_19 = arith.constant 0 : index
    %12 = vector.load %arg11[%c0_18, %c0_19] : memref<1x48xf32, #tpu.memory_space<vmem>>, vector<1x48xf32>
    %c0_20 = arith.constant 0 : index
    %c0_21 = arith.constant 0 : index
    %13 = vector.load %arg12[%c0_20, %c0_21] : memref<16x8xf32, #tpu.memory_space<vmem>>, vector<16x8xf32>
    %c0_22 = arith.constant 0 : index
    %c0_23 = arith.constant 0 : index
    %14 = vector.load %arg13[%c0_22, %c0_23] : memref<1x8xf32, #tpu.memory_space<vmem>>, vector<1x8xf32>
    %c7 = arith.constant 7 : index
    %c0_24 = arith.constant 0 : index
    %c0_25 = arith.constant 0 : index
    %15 = vector.load %arg1[%c7, %c0_24, %c0_25] : memref<8x2x4xf32, #tpu.memory_space<vmem>>, vector<1x2x4xf32>
    %16 = vector.shape_cast %15 : vector<1x2x4xf32> to vector<2x4xf32>
    %c0_26 = arith.constant 0 : index
    %c0_27 = arith.constant 0 : index
    %17 = vector.load %arg18[%c0_26, %c0_27] : memref<2x16xf32, #tpu.memory_space<vmem>>, vector<2x16xf32>
    %cst = arith.constant dense<0.000000e+00> : vector<2x48xf32>
    %18 = tpu.matmul %16, %3, %cst {dimension_numbers = #tpu.dot_dimension_numbers<[1], [0], [0], [1], [0, 0, 1, 1], [], []>} : vector<2x4xf32>, vector<4x48xf32>, vector<2x48xf32> -> vector<2x48xf32>
    %19 = vector.broadcast %5 : vector<1x48xf32> to vector<2x48xf32>
    %20 = arith.addf %18, %19 : vector<2x48xf32>
    %cst_28 = arith.constant dense<0.000000e+00> : vector<2x48xf32>
    %21 = tpu.matmul %17, %4, %cst_28 {dimension_numbers = #tpu.dot_dimension_numbers<[1], [0], [0], [1], [0, 0, 1, 1], [], []>} : vector<2x16xf32>, vector<16x48xf32>, vector<2x48xf32> -> vector<2x48xf32>
    %22 = vector.broadcast %6 : vector<1x48xf32> to vector<2x48xf32>
    %23 = arith.addf %21, %22 : vector<2x48xf32>
    %24 = vector.extract_strided_slice %20 {offsets = [0, 0], sizes = [2, 16], strides = [1, 1]} : vector<2x48xf32> to vector<2x16xf32>
    %25 = vector.extract_strided_slice %23 {offsets = [0, 0], sizes = [2, 16], strides = [1, 1]} : vector<2x48xf32> to vector<2x16xf32>
    %26 = arith.addf %24, %25 : vector<2x16xf32>
    %27 = arith.negf %26 : vector<2x16xf32>
    %28 = math.exp %27 : vector<2x16xf32>
    %cst_29 = arith.constant 1.000000e+00 : f32
    %29 = vector.broadcast %cst_29 : f32 to vector<2x16xf32>
    %30 = arith.addf %29, %28 : vector<2x16xf32>
    %31 = arith.divf %29, %30 : vector<2x16xf32>
    %32 = vector.extract_strided_slice %20 {offsets = [0, 16], sizes = [2, 16], strides = [1, 1]} : vector<2x48xf32> to vector<2x16xf32>
    %33 = vector.extract_strided_slice %23 {offsets = [0, 16], sizes = [2, 16], strides = [1, 1]} : vector<2x48xf32> to vector<2x16xf32>
    %34 = arith.addf %32, %33 : vector<2x16xf32>
    %35 = arith.negf %34 : vector<2x16xf32>
    %36 = math.exp %35 : vector<2x16xf32>
    %cst_30 = arith.constant 1.000000e+00 : f32
    %37 = vector.broadcast %cst_30 : f32 to vector<2x16xf32>
    %38 = arith.addf %37, %36 : vector<2x16xf32>
    %39 = arith.divf %37, %38 : vector<2x16xf32>
    %40 = vector.extract_strided_slice %20 {offsets = [0, 32], sizes = [2, 16], strides = [1, 1]} : vector<2x48xf32> to vector<2x16xf32>
    %41 = vector.extract_strided_slice %23 {offsets = [0, 32], sizes = [2, 16], strides = [1, 1]} : vector<2x48xf32> to vector<2x16xf32>
    %42 = arith.mulf %31, %41 : vector<2x16xf32>
    %43 = arith.addf %40, %42 : vector<2x16xf32>
    %44 = math.tanh %43 : vector<2x16xf32>
    %cst_31 = arith.constant 1.000000e+00 : f32
    %45 = vector.broadcast %cst_31 : f32 to vector<2x16xf32>
    %46 = arith.subf %45, %39 : vector<2x16xf32>
    %47 = arith.mulf %46, %44 : vector<2x16xf32>
    %48 = arith.mulf %39, %17 : vector<2x16xf32>
    %49 = arith.addf %47, %48 : vector<2x16xf32>
    %c0_32 = arith.constant 0 : index
    %c0_33 = arith.constant 0 : index
    %50 = vector.load %arg18[%c0_32, %c0_33] : memref<2x16xf32, #tpu.memory_space<vmem>>, vector<2x16xf32>
    tpu.vector_store %arg18[%c0_32, %c0_33], %49 {strides = array<i32>} : memref<2x16xf32, #tpu.memory_space<vmem>>, vector<2x16xf32>,
    %cst_34 = arith.constant dense<0.000000e+00> : vector<2x32xf32>
    %51 = tpu.matmul %49, %7, %cst_34 {dimension_numbers = #tpu.dot_dimension_numbers<[1], [0], [0], [1], [0, 0, 1, 1], [], []>} : vector<2x16xf32>, vector<16x32xf32>, vector<2x32xf32> -> vector<2x32xf32>
    %52 = vector.broadcast %8 : vector<1x32xf32> to vector<2x32xf32>
    %53 = arith.addf %51, %52 : vector<2x32xf32>
    %c0_35 = arith.constant 0 : index
    %c0_36 = arith.constant 0 : index
    %54 = vector.load %arg19[%c0_35, %c0_36] : memref<2x16xf32, #tpu.memory_space<vmem>>, vector<2x16xf32>
    %cst_37 = arith.constant dense<0.000000e+00> : vector<2x48xf32>
    %55 = tpu.matmul %53, %9, %cst_37 {dimension_numbers = #tpu.dot_dimension_numbers<[1], [0], [0], [1], [0, 0, 1, 1], [], []>} : vector<2x32xf32>, vector<32x48xf32>, vector<2x48xf32> -> vector<2x48xf32>
    %56 = vector.broadcast %11 : vector<1x48xf32> to vector<2x48xf32>
    %57 = arith.addf %55, %56 : vector<2x48xf32>
    %cst_38 = arith.constant dense<0.000000e+00> : vector<2x48xf32>
    %58 = tpu.matmul %54, %10, %cst_38 {dimension_numbers = #tpu.dot_dimension_numbers<[1], [0], [0], [1], [0, 0, 1, 1], [], []>} : vector<2x16xf32>, vector<16x48xf32>, vector<2x48xf32> -> vector<2x48xf32>
    %59 = vector.broadcast %12 : vector<1x48xf32> to vector<2x48xf32>
    %60 = arith.addf %58, %59 : vector<2x48xf32>
    %61 = vector.extract_strided_slice %57 {offsets = [0, 0], sizes = [2, 16], strides = [1, 1]} : vector<2x48xf32> to vector<2x16xf32>
    %62 = vector.extract_strided_slice %60 {offsets = [0, 0], sizes = [2, 16], strides = [1, 1]} : vector<2x48xf32> to vector<2x16xf32>
    %63 = arith.addf %61, %62 : vector<2x16xf32>
    %64 = arith.negf %63 : vector<2x16xf32>
    %65 = math.exp %64 : vector<2x16xf32>
    %cst_39 = arith.constant 1.000000e+00 : f32
    %66 = vector.broadcast %cst_39 : f32 to vector<2x16xf32>
    %67 = arith.addf %66, %65 : vector<2x16xf32>
    %68 = arith.divf %66, %67 : vector<2x16xf32>
    %69 = vector.extract_strided_slice %57 {offsets = [0, 16], sizes = [2, 16], strides = [1, 1]} : vector<2x48xf32> to vector<2x16xf32>
    %70 = vector.extract_strided_slice %60 {offsets = [0, 16], sizes = [2, 16], strides = [1, 1]} : vector<2x48xf32> to vector<2x16xf32>
    %71 = arith.addf %69, %70 : vector<2x16xf32>
    %72 = arith.negf %71 : vector<2x16xf32>
    %73 = math.exp %72 : vector<2x16xf32>
    %cst_40 = arith.constant 1.000000e+00 : f32
    %74 = vector.broadcast %cst_40 : f32 to vector<2x16xf32>
    %75 = arith.addf %74, %73 : vector<2x16xf32>
    %76 = arith.divf %74, %75 : vector<2x16xf32>
    %77 = vector.extract_strided_slice %57 {offsets = [0, 32], sizes = [2, 16], strides = [1, 1]} : vector<2x48xf32> to vector<2x16xf32>
    %78 = vector.extract_strided_slice %60 {offsets = [0, 32], sizes = [2, 16], strides = [1, 1]} : vector<2x48xf32> to vector<2x16xf32>
    %79 = arith.mulf %68, %78 : vector<2x16xf32>
    %80 = arith.addf %77, %79 : vector<2x16xf32>
    %81 = math.tanh %80 : vector<2x16xf32>
    %cst_41 = arith.constant 1.000000e+00 : f32
    %82 = vector.broadcast %cst_41 : f32 to vector<2x16xf32>
    %83 = arith.subf %82, %76 : vector<2x16xf32>
    %84 = arith.mulf %83, %81 : vector<2x16xf32>
    %85 = arith.mulf %76, %54 : vector<2x16xf32>
    %86 = arith.addf %84, %85 : vector<2x16xf32>
    %c0_42 = arith.constant 0 : index
    %c0_43 = arith.constant 0 : index
    %87 = vector.load %arg19[%c0_42, %c0_43] : memref<2x16xf32, #tpu.memory_space<vmem>>, vector<2x16xf32>
    tpu.vector_store %arg19[%c0_42, %c0_43], %86 {strides = array<i32>} : memref<2x16xf32, #tpu.memory_space<vmem>>, vector<2x16xf32>,
    %cst_44 = arith.constant dense<0.000000e+00> : vector<2x8xf32>
    %88 = tpu.matmul %86, %13, %cst_44 {dimension_numbers = #tpu.dot_dimension_numbers<[1], [0], [0], [1], [0, 0, 1, 1], [], []>} : vector<2x16xf32>, vector<16x8xf32>, vector<2x8xf32> -> vector<2x8xf32>
    %89 = vector.broadcast %14 : vector<1x8xf32> to vector<2x8xf32>
    %90 = arith.addf %88, %89 : vector<2x8xf32>
    %c7_45 = arith.constant 7 : index
    %c0_46 = arith.constant 0 : index
    %c0_47 = arith.constant 0 : index
    %91 = vector.load %arg16[%c7_45, %c0_46, %c0_47] : memref<8x2x8xf32, #tpu.memory_space<vmem>>, vector<1x2x8xf32>
    %92 = vector.shape_cast %91 : vector<1x2x8xf32> to vector<2x8xf32>
    %93 = vector.shape_cast %90 : vector<2x8xf32> to vector<1x2x8xf32>
    tpu.vector_store %arg16[%c7_45, %c0_46, %c0_47], %93 {strides = array<i32>} : memref<8x2x8xf32, #tpu.memory_space<vmem>>, vector<1x2x8xf32>,
    %c6 = arith.constant 6 : index
    %c0_48 = arith.constant 0 : index
    %c0_49 = arith.constant 0 : index
    %94 = vector.load %arg1[%c6, %c0_48, %c0_49] : memref<8x2x4xf32, #tpu.memory_space<vmem>>, vector<1x2x4xf32>
    %95 = vector.shape_cast %94 : vector<1x2x4xf32> to vector<2x4xf32>
    %c0_50 = arith.constant 0 : index
    %c0_51 = arith.constant 0 : index
    %96 = vector.load %arg18[%c0_50, %c0_51] : memref<2x16xf32, #tpu.memory_space<vmem>>, vector<2x16xf32>
    %cst_52 = arith.constant dense<0.000000e+00> : vector<2x48xf32>
    %97 = tpu.matmul %95, %3, %cst_52 {dimension_numbers = #tpu.dot_dimension_numbers<[1], [0], [0], [1], [0, 0, 1, 1], [], []>} : vector<2x4xf32>, vector<4x48xf32>, vector<2x48xf32> -> vector<2x48xf32>
    %98 = vector.broadcast %5 : vector<1x48xf32> to vector<2x48xf32>
    %99 = arith.addf %97, %98 : vector<2x48xf32>
    %cst_53 = arith.constant dense<0.000000e+00> : vector<2x48xf32>
    %100 = tpu.matmul %96, %4, %cst_53 {dimension_numbers = #tpu.dot_dimension_numbers<[1], [0], [0], [1], [0, 0, 1, 1], [], []>} : vector<2x16xf32>, vector<16x48xf32>, vector<2x48xf32> -> vector<2x48xf32>
    %101 = vector.broadcast %6 : vector<1x48xf32> to vector<2x48xf32>
    %102 = arith.addf %100, %101 : vector<2x48xf32>
    %103 = vector.extract_strided_slice %99 {offsets = [0, 0], sizes = [2, 16], strides = [1, 1]} : vector<2x48xf32> to vector<2x16xf32>
    %104 = vector.extract_strided_slice %102 {offsets = [0, 0], sizes = [2, 16], strides = [1, 1]} : vector<2x48xf32> to vector<2x16xf32>
    %105 = arith.addf %103, %104 : vector<2x16xf32>
    %106 = arith.negf %105 : vector<2x16xf32>
    %107 = math.exp %106 : vector<2x16xf32>
    %cst_54 = arith.constant 1.000000e+00 : f32
    %108 = vector.broadcast %cst_54 : f32 to vector<2x16xf32>
    %109 = arith.addf %108, %107 : vector<2x16xf32>
    %110 = arith.divf %108, %109 : vector<2x16xf32>
    %111 = vector.extract_strided_slice %99 {offsets = [0, 16], sizes = [2, 16], strides = [1, 1]} : vector<2x48xf32> to vector<2x16xf32>
    %112 = vector.extract_strided_slice %102 {offsets = [0, 16], sizes = [2, 16], strides = [1, 1]} : vector<2x48xf32> to vector<2x16xf32>
    %113 = arith.addf %111, %112 : vector<2x16xf32>
    %114 = arith.negf %113 : vector<2x16xf32>
    %115 = math.exp %114 : vector<2x16xf32>
    %cst_55 = arith.constant 1.000000e+00 : f32
    %116 = vector.broadcast %cst_55 : f32 to vector<2x16xf32>
    %117 = arith.addf %116, %115 : vector<2x16xf32>
    %118 = arith.divf %116, %117 : vector<2x16xf32>
    %119 = vector.extract_strided_slice %99 {offsets = [0, 32], sizes = [2, 16], strides = [1, 1]} : vector<2x48xf32> to vector<2x16xf32>
    %120 = vector.extract_strided_slice %102 {offsets = [0, 32], sizes = [2, 16], strides = [1, 1]} : vector<2x48xf32> to vector<2x16xf32>
    %121 = arith.mulf %110, %120 : vector<2x16xf32>
    %122 = arith.addf %119, %121 : vector<2x16xf32>
    %123 = math.tanh %122 : vector<2x16xf32>
    %cst_56 = arith.constant 1.000000e+00 : f32
    %124 = vector.broadcast %cst_56 : f32 to vector<2x16xf32>
    %125 = arith.subf %124, %118 : vector<2x16xf32>
    %126 = arith.mulf %125, %123 : vector<2x16xf32>
    %127 = arith.mulf %118, %96 : vector<2x16xf32>
    %128 = arith.addf %126, %127 : vector<2x16xf32>
    %c0_57 = arith.constant 0 : index
    %c0_58 = arith.constant 0 : index
    %129 = vector.load %arg18[%c0_57, %c0_58] : memref<2x16xf32, #tpu.memory_space<vmem>>, vector<2x16xf32>
    tpu.vector_store %arg18[%c0_57, %c0_58], %128 {strides = array<i32>} : memref<2x16xf32, #tpu.memory_space<vmem>>, vector<2x16xf32>,
    %cst_59 = arith.constant dense<0.000000e+00> : vector<2x32xf32>
    %130 = tpu.matmul %128, %7, %cst_59 {dimension_numbers = #tpu.dot_dimension_numbers<[1], [0], [0], [1], [0, 0, 1, 1], [], []>} : vector<2x16xf32>, vector<16x32xf32>, vector<2x32xf32> -> vector<2x32xf32>
    %131 = vector.broadcast %8 : vector<1x32xf32> to vector<2x32xf32>
    %132 = arith.addf %130, %131 : vector<2x32xf32>
    %c0_60 = arith.constant 0 : index
    %c0_61 = arith.constant 0 : index
    %133 = vector.load %arg19[%c0_60, %c0_61] : memref<2x16xf32, #tpu.memory_space<vmem>>, vector<2x16xf32>
    %cst_62 = arith.constant dense<0.000000e+00> : vector<2x48xf32>
    %134 = tpu.matmul %132, %9, %cst_62 {dimension_numbers = #tpu.dot_dimension_numbers<[1], [0], [0], [1], [0, 0, 1, 1], [], []>} : vector<2x32xf32>, vector<32x48xf32>, vector<2x48xf32> -> vector<2x48xf32>
    %135 = vector.broadcast %11 : vector<1x48xf32> to vector<2x48xf32>
    %136 = arith.addf %134, %135 : vector<2x48xf32>
    %cst_63 = arith.constant dense<0.000000e+00> : vector<2x48xf32>
    %137 = tpu.matmul %133, %10, %cst_63 {dimension_numbers = #tpu.dot_dimension_numbers<[1], [0], [0], [1], [0, 0, 1, 1], [], []>} : vector<2x16xf32>, vector<16x48xf32>, vector<2x48xf32> -> vector<2x48xf32>
    %138 = vector.broadcast %12 : vector<1x48xf32> to vector<2x48xf32>
    %139 = arith.addf %137, %138 : vector<2x48xf32>
    %140 = vector.extract_strided_slice %136 {offsets = [0, 0], sizes = [2, 16], strides = [1, 1]} : vector<2x48xf32> to vector<2x16xf32>
    %141 = vector.extract_strided_slice %139 {offsets = [0, 0], sizes = [2, 16], strides = [1, 1]} : vector<2x48xf32> to vector<2x16xf32>
    %142 = arith.addf %140, %141 : vector<2x16xf32>
    %143 = arith.negf %142 : vector<2x16xf32>
    %144 = math.exp %143 : vector<2x16xf32>
    %cst_64 = arith.constant 1.000000e+00 : f32
    %145 = vector.broadcast %cst_64 : f32 to vector<2x16xf32>
    %146 = arith.addf %145, %144 : vector<2x16xf32>
    %147 = arith.divf %145, %146 : vector<2x16xf32>
    %148 = vector.extract_strided_slice %136 {offsets = [0, 16], sizes = [2, 16], strides = [1, 1]} : vector<2x48xf32> to vector<2x16xf32>
    %149 = vector.extract_strided_slice %139 {offsets = [0, 16], sizes = [2, 16], strides = [1, 1]} : vector<2x48xf32> to vector<2x16xf32>
    %150 = arith.addf %148, %149 : vector<2x16xf32>
    %151 = arith.negf %150 : vector<2x16xf32>
    %152 = math.exp %151 : vector<2x16xf32>
    %cst_65 = arith.constant 1.000000e+00 : f32
    %153 = vector.broadcast %cst_65 : f32 to vector<2x16xf32>
    %154 = arith.addf %153, %152 : vector<2x16xf32>
    %155 = arith.divf %153, %154 : vector<2x16xf32>
    %156 = vector.extract_strided_slice %136 {offsets = [0, 32], sizes = [2, 16], strides = [1, 1]} : vector<2x48xf32> to vector<2x16xf32>
    %157 = vector.extract_strided_slice %139 {offsets = [0, 32], sizes = [2, 16], strides = [1, 1]} : vector<2x48xf32> to vector<2x16xf32>
    %158 = arith.mulf %147, %157 : vector<2x16xf32>
    %159 = arith.addf %156, %158 : vector<2x16xf32>
    %160 = math.tanh %159 : vector<2x16xf32>
    %cst_66 = arith.constant 1.000000e+00 : f32
    %161 = vector.broadcast %cst_66 : f32 to vector<2x16xf32>
    %162 = arith.subf %161, %155 : vector<2x16xf32>
    %163 = arith.mulf %162, %160 : vector<2x16xf32>
    %164 = arith.mulf %155, %133 : vector<2x16xf32>
    %165 = arith.addf %163, %164 : vector<2x16xf32>
    %c0_67 = arith.constant 0 : index
    %c0_68 = arith.constant 0 : index
    %166 = vector.load %arg19[%c0_67, %c0_68] : memref<2x16xf32, #tpu.memory_space<vmem>>, vector<2x16xf32>
    tpu.vector_store %arg19[%c0_67, %c0_68], %165 {strides = array<i32>} : memref<2x16xf32, #tpu.memory_space<vmem>>, vector<2x16xf32>,
    %cst_69 = arith.constant dense<0.000000e+00> : vector<2x8xf32>
    %167 = tpu.matmul %165, %13, %cst_69 {dimension_numbers = #tpu.dot_dimension_numbers<[1], [0], [0], [1], [0, 0, 1, 1], [], []>} : vector<2x16xf32>, vector<16x8xf32>, vector<2x8xf32> -> vector<2x8xf32>
    %168 = vector.broadcast %14 : vector<1x8xf32> to vector<2x8xf32>
    %169 = arith.addf %167, %168 : vector<2x8xf32>
    %c6_70 = arith.constant 6 : index
    %c0_71 = arith.constant 0 : index
    %c0_72 = arith.constant 0 : index
    %170 = vector.load %arg16[%c6_70, %c0_71, %c0_72] : memref<8x2x8xf32, #tpu.memory_space<vmem>>, vector<1x2x8xf32>
    %171 = vector.shape_cast %170 : vector<1x2x8xf32> to vector<2x8xf32>
    %172 = vector.shape_cast %169 : vector<2x8xf32> to vector<1x2x8xf32>
    tpu.vector_store %arg16[%c6_70, %c0_71, %c0_72], %172 {strides = array<i32>} : memref<8x2x8xf32, #tpu.memory_space<vmem>>, vector<1x2x8xf32>,
    %c5 = arith.constant 5 : index
    %c0_73 = arith.constant 0 : index
    %c0_74 = arith.constant 0 : index
    %173 = vector.load %arg1[%c5, %c0_73, %c0_74] : memref<8x2x4xf32, #tpu.memory_space<vmem>>, vector<1x2x4xf32>
    %174 = vector.shape_cast %173 : vector<1x2x4xf32> to vector<2x4xf32>
    %c0_75 = arith.constant 0 : index
    %c0_76 = arith.constant 0 : index
    %175 = vector.load %arg18[%c0_75, %c0_76] : memref<2x16xf32, #tpu.memory_space<vmem>>, vector<2x16xf32>
    %cst_77 = arith.constant dense<0.000000e+00> : vector<2x48xf32>
    %176 = tpu.matmul %174, %3, %cst_77 {dimension_numbers = #tpu.dot_dimension_numbers<[1], [0], [0], [1], [0, 0, 1, 1], [], []>} : vector<2x4xf32>, vector<4x48xf32>, vector<2x48xf32> -> vector<2x48xf32>
    %177 = vector.broadcast %5 : vector<1x48xf32> to vector<2x48xf32>
    %178 = arith.addf %176, %177 : vector<2x48xf32>
    %cst_78 = arith.constant dense<0.000000e+00> : vector<2x48xf32>
    %179 = tpu.matmul %175, %4, %cst_78 {dimension_numbers = #tpu.dot_dimension_numbers<[1], [0], [0], [1], [0, 0, 1, 1], [], []>} : vector<2x16xf32>, vector<16x48xf32>, vector<2x48xf32> -> vector<2x48xf32>
    %180 = vector.broadcast %6 : vector<1x48xf32> to vector<2x48xf32>
    %181 = arith.addf %179, %180 : vector<2x48xf32>
    %182 = vector.extract_strided_slice %178 {offsets = [0, 0], sizes = [2, 16], strides = [1, 1]} : vector<2x48xf32> to vector<2x16xf32>
    %183 = vector.extract_strided_slice %181 {offsets = [0, 0], sizes = [2, 16], strides = [1, 1]} : vector<2x48xf32> to vector<2x16xf32>
    %184 = arith.addf %182, %183 : vector<2x16xf32>
    %185 = arith.negf %184 : vector<2x16xf32>
    %186 = math.exp %185 : vector<2x16xf32>
    %cst_79 = arith.constant 1.000000e+00 : f32
    %187 = vector.broadcast %cst_79 : f32 to vector<2x16xf32>
    %188 = arith.addf %187, %186 : vector<2x16xf32>
    %189 = arith.divf %187, %188 : vector<2x16xf32>
    %190 = vector.extract_strided_slice %178 {offsets = [0, 16], sizes = [2, 16], strides = [1, 1]} : vector<2x48xf32> to vector<2x16xf32>
    %191 = vector.extract_strided_slice %181 {offsets = [0, 16], sizes = [2, 16], strides = [1, 1]} : vector<2x48xf32> to vector<2x16xf32>
    %192 = arith.addf %190, %191 : vector<2x16xf32>
    %193 = arith.negf %192 : vector<2x16xf32>
    %194 = math.exp %193 : vector<2x16xf32>
    %cst_80 = arith.constant 1.000000e+00 : f32
    %195 = vector.broadcast %cst_80 : f32 to vector<2x16xf32>
    %196 = arith.addf %195, %194 : vector<2x16xf32>
    %197 = arith.divf %195, %196 : vector<2x16xf32>
    %198 = vector.extract_strided_slice %178 {offsets = [0, 32], sizes = [2, 16], strides = [1, 1]} : vector<2x48xf32> to vector<2x16xf32>
    %199 = vector.extract_strided_slice %181 {offsets = [0, 32], sizes = [2, 16], strides = [1, 1]} : vector<2x48xf32> to vector<2x16xf32>
    %200 = arith.mulf %189, %199 : vector<2x16xf32>
    %201 = arith.addf %198, %200 : vector<2x16xf32>
    %202 = math.tanh %201 : vector<2x16xf32>
    %cst_81 = arith.constant 1.000000e+00 : f32
    %203 = vector.broadcast %cst_81 : f32 to vector<2x16xf32>
    %204 = arith.subf %203, %197 : vector<2x16xf32>
    %205 = arith.mulf %204, %202 : vector<2x16xf32>
    %206 = arith.mulf %197, %175 : vector<2x16xf32>
    %207 = arith.addf %205, %206 : vector<2x16xf32>
    %c0_82 = arith.constant 0 : index
    %c0_83 = arith.constant 0 : index
    %208 = vector.load %arg18[%c0_82, %c0_83] : memref<2x16xf32, #tpu.memory_space<vmem>>, vector<2x16xf32>
    tpu.vector_store %arg18[%c0_82, %c0_83], %207 {strides = array<i32>} : memref<2x16xf32, #tpu.memory_space<vmem>>, vector<2x16xf32>,
    %cst_84 = arith.constant dense<0.000000e+00> : vector<2x32xf32>
    %209 = tpu.matmul %207, %7, %cst_84 {dimension_numbers = #tpu.dot_dimension_numbers<[1], [0], [0], [1], [0, 0, 1, 1], [], []>} : vector<2x16xf32>, vector<16x32xf32>, vector<2x32xf32> -> vector<2x32xf32>
    %210 = vector.broadcast %8 : vector<1x32xf32> to vector<2x32xf32>
    %211 = arith.addf %209, %210 : vector<2x32xf32>
    %c0_85 = arith.constant 0 : index
    %c0_86 = arith.constant 0 : index
    %212 = vector.load %arg19[%c0_85, %c0_86] : memref<2x16xf32, #tpu.memory_space<vmem>>, vector<2x16xf32>
    %cst_87 = arith.constant dense<0.000000e+00> : vector<2x48xf32>
    %213 = tpu.matmul %211, %9, %cst_87 {dimension_numbers = #tpu.dot_dimension_numbers<[1], [0], [0], [1], [0, 0, 1, 1], [], []>} : vector<2x32xf32>, vector<32x48xf32>, vector<2x48xf32> -> vector<2x48xf32>
    %214 = vector.broadcast %11 : vector<1x48xf32> to vector<2x48xf32>
    %215 = arith.addf %213, %214 : vector<2x48xf32>
    %cst_88 = arith.constant dense<0.000000e+00> : vector<2x48xf32>
    %216 = tpu.matmul %212, %10, %cst_88 {dimension_numbers = #tpu.dot_dimension_numbers<[1], [0], [0], [1], [0, 0, 1, 1], [], []>} : vector<2x16xf32>, vector<16x48xf32>, vector<2x48xf32> -> vector<2x48xf32>
    %217 = vector.broadcast %12 : vector<1x48xf32> to vector<2x48xf32>
    %218 = arith.addf %216, %217 : vector<2x48xf32>
    %219 = vector.extract_strided_slice %215 {offsets = [0, 0], sizes = [2, 16], strides = [1, 1]} : vector<2x48xf32> to vector<2x16xf32>
    %220 = vector.extract_strided_slice %218 {offsets = [0, 0], sizes = [2, 16], strides = [1, 1]} : vector<2x48xf32> to vector<2x16xf32>
    %221 = arith.addf %219, %220 : vector<2x16xf32>
    %222 = arith.negf %221 : vector<2x16xf32>
    %223 = math.exp %222 : vector<2x16xf32>
    %cst_89 = arith.constant 1.000000e+00 : f32
    %224 = vector.broadcast %cst_89 : f32 to vector<2x16xf32>
    %225 = arith.addf %224, %223 : vector<2x16xf32>
    %226 = arith.divf %224, %225 : vector<2x16xf32>
    %227 = vector.extract_strided_slice %215 {offsets = [0, 16], sizes = [2, 16], strides = [1, 1]} : vector<2x48xf32> to vector<2x16xf32>
    %228 = vector.extract_strided_slice %218 {offsets = [0, 16], sizes = [2, 16], strides = [1, 1]} : vector<2x48xf32> to vector<2x16xf32>
    %229 = arith.addf %227, %228 : vector<2x16xf32>
    %230 = arith.negf %229 : vector<2x16xf32>
    %231 = math.exp %230 : vector<2x16xf32>
    %cst_90 = arith.constant 1.000000e+00 : f32
    %232 = vector.broadcast %cst_90 : f32 to vector<2x16xf32>
    %233 = arith.addf %232, %231 : vector<2x16xf32>
    %234 = arith.divf %232, %233 : vector<2x16xf32>
    %235 = vector.extract_strided_slice %215 {offsets = [0, 32], sizes = [2, 16], strides = [1, 1]} : vector<2x48xf32> to vector<2x16xf32>
    %236 = vector.extract_strided_slice %218 {offsets = [0, 32], sizes = [2, 16], strides = [1, 1]} : vector<2x48xf32> to vector<2x16xf32>
    %237 = arith.mulf %226, %236 : vector<2x16xf32>
    %238 = arith.addf %235, %237 : vector<2x16xf32>
    %239 = math.tanh %238 : vector<2x16xf32>
    %cst_91 = arith.constant 1.000000e+00 : f32
    %240 = vector.broadcast %cst_91 : f32 to vector<2x16xf32>
    %241 = arith.subf %240, %234 : vector<2x16xf32>
    %242 = arith.mulf %241, %239 : vector<2x16xf32>
    %243 = arith.mulf %234, %212 : vector<2x16xf32>
    %244 = arith.addf %242, %243 : vector<2x16xf32>
    %c0_92 = arith.constant 0 : index
    %c0_93 = arith.constant 0 : index
    %245 = vector.load %arg19[%c0_92, %c0_93] : memref<2x16xf32, #tpu.memory_space<vmem>>, vector<2x16xf32>
    tpu.vector_store %arg19[%c0_92, %c0_93], %244 {strides = array<i32>} : memref<2x16xf32, #tpu.memory_space<vmem>>, vector<2x16xf32>,
    %cst_94 = arith.constant dense<0.000000e+00> : vector<2x8xf32>
    %246 = tpu.matmul %244, %13, %cst_94 {dimension_numbers = #tpu.dot_dimension_numbers<[1], [0], [0], [1], [0, 0, 1, 1], [], []>} : vector<2x16xf32>, vector<16x8xf32>, vector<2x8xf32> -> vector<2x8xf32>
    %247 = vector.broadcast %14 : vector<1x8xf32> to vector<2x8xf32>
    %248 = arith.addf %246, %247 : vector<2x8xf32>
    %c5_95 = arith.constant 5 : index
    %c0_96 = arith.constant 0 : index
    %c0_97 = arith.constant 0 : index
    %249 = vector.load %arg16[%c5_95, %c0_96, %c0_97] : memref<8x2x8xf32, #tpu.memory_space<vmem>>, vector<1x2x8xf32>
    %250 = vector.shape_cast %249 : vector<1x2x8xf32> to vector<2x8xf32>
    %251 = vector.shape_cast %248 : vector<2x8xf32> to vector<1x2x8xf32>
    tpu.vector_store %arg16[%c5_95, %c0_96, %c0_97], %251 {strides = array<i32>} : memref<8x2x8xf32, #tpu.memory_space<vmem>>, vector<1x2x8xf32>,
    %c4 = arith.constant 4 : index
    %c0_98 = arith.constant 0 : index
    %c0_99 = arith.constant 0 : index
    %252 = vector.load %arg1[%c4, %c0_98, %c0_99] : memref<8x2x4xf32, #tpu.memory_space<vmem>>, vector<1x2x4xf32>
    %253 = vector.shape_cast %252 : vector<1x2x4xf32> to vector<2x4xf32>
    %c0_100 = arith.constant 0 : index
    %c0_101 = arith.constant 0 : index
    %254 = vector.load %arg18[%c0_100, %c0_101] : memref<2x16xf32, #tpu.memory_space<vmem>>, vector<2x16xf32>
    %cst_102 = arith.constant dense<0.000000e+00> : vector<2x48xf32>
    %255 = tpu.matmul %253, %3, %cst_102 {dimension_numbers = #tpu.dot_dimension_numbers<[1], [0], [0], [1], [0, 0, 1, 1], [], []>} : vector<2x4xf32>, vector<4x48xf32>, vector<2x48xf32> -> vector<2x48xf32>
    %256 = vector.broadcast %5 : vector<1x48xf32> to vector<2x48xf32>
    %257 = arith.addf %255, %256 : vector<2x48xf32>
    %cst_103 = arith.constant dense<0.000000e+00> : vector<2x48xf32>
    %258 = tpu.matmul %254, %4, %cst_103 {dimension_numbers = #tpu.dot_dimension_numbers<[1], [0], [0], [1], [0, 0, 1, 1], [], []>} : vector<2x16xf32>, vector<16x48xf32>, vector<2x48xf32> -> vector<2x48xf32>
    %259 = vector.broadcast %6 : vector<1x48xf32> to vector<2x48xf32>
    %260 = arith.addf %258, %259 : vector<2x48xf32>
    %261 = vector.extract_strided_slice %257 {offsets = [0, 0], sizes = [2, 16], strides = [1, 1]} : vector<2x48xf32> to vector<2x16xf32>
    %262 = vector.extract_strided_slice %260 {offsets = [0, 0], sizes = [2, 16], strides = [1, 1]} : vector<2x48xf32> to vector<2x16xf32>
    %263 = arith.addf %261, %262 : vector<2x16xf32>
    %264 = arith.negf %263 : vector<2x16xf32>
    %265 = math.exp %264 : vector<2x16xf32>
    %cst_104 = arith.constant 1.000000e+00 : f32
    %266 = vector.broadcast %cst_104 : f32 to vector<2x16xf32>
    %267 = arith.addf %266, %265 : vector<2x16xf32>
    %268 = arith.divf %266, %267 : vector<2x16xf32>
    %269 = vector.extract_strided_slice %257 {offsets = [0, 16], sizes = [2, 16], strides = [1, 1]} : vector<2x48xf32> to vector<2x16xf32>
    %270 = vector.extract_strided_slice %260 {offsets = [0, 16], sizes = [2, 16], strides = [1, 1]} : vector<2x48xf32> to vector<2x16xf32>
    %271 = arith.addf %269, %270 : vector<2x16xf32>
    %272 = arith.negf %271 : vector<2x16xf32>
    %273 = math.exp %272 : vector<2x16xf32>
    %cst_105 = arith.constant 1.000000e+00 : f32
    %274 = vector.broadcast %cst_105 : f32 to vector<2x16xf32>
    %275 = arith.addf %274, %273 : vector<2x16xf32>
    %276 = arith.divf %274, %275 : vector<2x16xf32>
    %277 = vector.extract_strided_slice %257 {offsets = [0, 32], sizes = [2, 16], strides = [1, 1]} : vector<2x48xf32> to vector<2x16xf32>
    %278 = vector.extract_strided_slice %260 {offsets = [0, 32], sizes = [2, 16], strides = [1, 1]} : vector<2x48xf32> to vector<2x16xf32>
    %279 = arith.mulf %268, %278 : vector<2x16xf32>
    %280 = arith.addf %277, %279 : vector<2x16xf32>
    %281 = math.tanh %280 : vector<2x16xf32>
    %cst_106 = arith.constant 1.000000e+00 : f32
    %282 = vector.broadcast %cst_106 : f32 to vector<2x16xf32>
    %283 = arith.subf %282, %276 : vector<2x16xf32>
    %284 = arith.mulf %283, %281 : vector<2x16xf32>
    %285 = arith.mulf %276, %254 : vector<2x16xf32>
    %286 = arith.addf %284, %285 : vector<2x16xf32>
    %c0_107 = arith.constant 0 : index
    %c0_108 = arith.constant 0 : index
    %287 = vector.load %arg18[%c0_107, %c0_108] : memref<2x16xf32, #tpu.memory_space<vmem>>, vector<2x16xf32>
    tpu.vector_store %arg18[%c0_107, %c0_108], %286 {strides = array<i32>} : memref<2x16xf32, #tpu.memory_space<vmem>>, vector<2x16xf32>,
    %cst_109 = arith.constant dense<0.000000e+00> : vector<2x32xf32>
    %288 = tpu.matmul %286, %7, %cst_109 {dimension_numbers = #tpu.dot_dimension_numbers<[1], [0], [0], [1], [0, 0, 1, 1], [], []>} : vector<2x16xf32>, vector<16x32xf32>, vector<2x32xf32> -> vector<2x32xf32>
    %289 = vector.broadcast %8 : vector<1x32xf32> to vector<2x32xf32>
    %290 = arith.addf %288, %289 : vector<2x32xf32>
    %c0_110 = arith.constant 0 : index
    %c0_111 = arith.constant 0 : index
    %291 = vector.load %arg19[%c0_110, %c0_111] : memref<2x16xf32, #tpu.memory_space<vmem>>, vector<2x16xf32>
    %cst_112 = arith.constant dense<0.000000e+00> : vector<2x48xf32>
    %292 = tpu.matmul %290, %9, %cst_112 {dimension_numbers = #tpu.dot_dimension_numbers<[1], [0], [0], [1], [0, 0, 1, 1], [], []>} : vector<2x32xf32>, vector<32x48xf32>, vector<2x48xf32> -> vector<2x48xf32>
    %293 = vector.broadcast %11 : vector<1x48xf32> to vector<2x48xf32>
    %294 = arith.addf %292, %293 : vector<2x48xf32>
    %cst_113 = arith.constant dense<0.000000e+00> : vector<2x48xf32>
    %295 = tpu.matmul %291, %10, %cst_113 {dimension_numbers = #tpu.dot_dimension_numbers<[1], [0], [0], [1], [0, 0, 1, 1], [], []>} : vector<2x16xf32>, vector<16x48xf32>, vector<2x48xf32> -> vector<2x48xf32>
    %296 = vector.broadcast %12 : vector<1x48xf32> to vector<2x48xf32>
    %297 = arith.addf %295, %296 : vector<2x48xf32>
    %298 = vector.extract_strided_slice %294 {offsets = [0, 0], sizes = [2, 16], strides = [1, 1]} : vector<2x48xf32> to vector<2x16xf32>
    %299 = vector.extract_strided_slice %297 {offsets = [0, 0], sizes = [2, 16], strides = [1, 1]} : vector<2x48xf32> to vector<2x16xf32>
    %300 = arith.addf %298, %299 : vector<2x16xf32>
    %301 = arith.negf %300 : vector<2x16xf32>
    %302 = math.exp %301 : vector<2x16xf32>
    %cst_114 = arith.constant 1.000000e+00 : f32
    %303 = vector.broadcast %cst_114 : f32 to vector<2x16xf32>
    %304 = arith.addf %303, %302 : vector<2x16xf32>
    %305 = arith.divf %303, %304 : vector<2x16xf32>
    %306 = vector.extract_strided_slice %294 {offsets = [0, 16], sizes = [2, 16], strides = [1, 1]} : vector<2x48xf32> to vector<2x16xf32>
    %307 = vector.extract_strided_slice %297 {offsets = [0, 16], sizes = [2, 16], strides = [1, 1]} : vector<2x48xf32> to vector<2x16xf32>
    %308 = arith.addf %306, %307 : vector<2x16xf32>
    %309 = arith.negf %308 : vector<2x16xf32>
    %310 = math.exp %309 : vector<2x16xf32>
    %cst_115 = arith.constant 1.000000e+00 : f32
    %311 = vector.broadcast %cst_115 : f32 to vector<2x16xf32>
    %312 = arith.addf %311, %310 : vector<2x16xf32>
    %313 = arith.divf %311, %312 : vector<2x16xf32>
    %314 = vector.extract_strided_slice %294 {offsets = [0, 32], sizes = [2, 16], strides = [1, 1]} : vector<2x48xf32> to vector<2x16xf32>
    %315 = vector.extract_strided_slice %297 {offsets = [0, 32], sizes = [2, 16], strides = [1, 1]} : vector<2x48xf32> to vector<2x16xf32>
    %316 = arith.mulf %305, %315 : vector<2x16xf32>
    %317 = arith.addf %314, %316 : vector<2x16xf32>
    %318 = math.tanh %317 : vector<2x16xf32>
    %cst_116 = arith.constant 1.000000e+00 : f32
    %319 = vector.broadcast %cst_116 : f32 to vector<2x16xf32>
    %320 = arith.subf %319, %313 : vector<2x16xf32>
    %321 = arith.mulf %320, %318 : vector<2x16xf32>
    %322 = arith.mulf %313, %291 : vector<2x16xf32>
    %323 = arith.addf %321, %322 : vector<2x16xf32>
    %c0_117 = arith.constant 0 : index
    %c0_118 = arith.constant 0 : index
    %324 = vector.load %arg19[%c0_117, %c0_118] : memref<2x16xf32, #tpu.memory_space<vmem>>, vector<2x16xf32>
    tpu.vector_store %arg19[%c0_117, %c0_118], %323 {strides = array<i32>} : memref<2x16xf32, #tpu.memory_space<vmem>>, vector<2x16xf32>,
    %cst_119 = arith.constant dense<0.000000e+00> : vector<2x8xf32>
    %325 = tpu.matmul %323, %13, %cst_119 {dimension_numbers = #tpu.dot_dimension_numbers<[1], [0], [0], [1], [0, 0, 1, 1], [], []>} : vector<2x16xf32>, vector<16x8xf32>, vector<2x8xf32> -> vector<2x8xf32>
    %326 = vector.broadcast %14 : vector<1x8xf32> to vector<2x8xf32>
    %327 = arith.addf %325, %326 : vector<2x8xf32>
    %c4_120 = arith.constant 4 : index
    %c0_121 = arith.constant 0 : index
    %c0_122 = arith.constant 0 : index
    %328 = vector.load %arg16[%c4_120, %c0_121, %c0_122] : memref<8x2x8xf32, #tpu.memory_space<vmem>>, vector<1x2x8xf32>
    %329 = vector.shape_cast %328 : vector<1x2x8xf32> to vector<2x8xf32>
    %330 = vector.shape_cast %327 : vector<2x8xf32> to vector<1x2x8xf32>
    tpu.vector_store %arg16[%c4_120, %c0_121, %c0_122], %330 {strides = array<i32>} : memref<8x2x8xf32, #tpu.memory_space<vmem>>, vector<1x2x8xf32>,
    %c3 = arith.constant 3 : index
    %c0_123 = arith.constant 0 : index
    %c0_124 = arith.constant 0 : index
    %331 = vector.load %arg1[%c3, %c0_123, %c0_124] : memref<8x2x4xf32, #tpu.memory_space<vmem>>, vector<1x2x4xf32>
    %332 = vector.shape_cast %331 : vector<1x2x4xf32> to vector<2x4xf32>
    %c0_125 = arith.constant 0 : index
    %c0_126 = arith.constant 0 : index
    %333 = vector.load %arg18[%c0_125, %c0_126] : memref<2x16xf32, #tpu.memory_space<vmem>>, vector<2x16xf32>
    %cst_127 = arith.constant dense<0.000000e+00> : vector<2x48xf32>
    %334 = tpu.matmul %332, %3, %cst_127 {dimension_numbers = #tpu.dot_dimension_numbers<[1], [0], [0], [1], [0, 0, 1, 1], [], []>} : vector<2x4xf32>, vector<4x48xf32>, vector<2x48xf32> -> vector<2x48xf32>
    %335 = vector.broadcast %5 : vector<1x48xf32> to vector<2x48xf32>
    %336 = arith.addf %334, %335 : vector<2x48xf32>
    %cst_128 = arith.constant dense<0.000000e+00> : vector<2x48xf32>
    %337 = tpu.matmul %333, %4, %cst_128 {dimension_numbers = #tpu.dot_dimension_numbers<[1], [0], [0], [1], [0, 0, 1, 1], [], []>} : vector<2x16xf32>, vector<16x48xf32>, vector<2x48xf32> -> vector<2x48xf32>
    %338 = vector.broadcast %6 : vector<1x48xf32> to vector<2x48xf32>
    %339 = arith.addf %337, %338 : vector<2x48xf32>
    %340 = vector.extract_strided_slice %336 {offsets = [0, 0], sizes = [2, 16], strides = [1, 1]} : vector<2x48xf32> to vector<2x16xf32>
    %341 = vector.extract_strided_slice %339 {offsets = [0, 0], sizes = [2, 16], strides = [1, 1]} : vector<2x48xf32> to vector<2x16xf32>
    %342 = arith.addf %340, %341 : vector<2x16xf32>
    %343 = arith.negf %342 : vector<2x16xf32>
    %344 = math.exp %343 : vector<2x16xf32>
    %cst_129 = arith.constant 1.000000e+00 : f32
    %345 = vector.broadcast %cst_129 : f32 to vector<2x16xf32>
    %346 = arith.addf %345, %344 : vector<2x16xf32>
    %347 = arith.divf %345, %346 : vector<2x16xf32>
    %348 = vector.extract_strided_slice %336 {offsets = [0, 16], sizes = [2, 16], strides = [1, 1]} : vector<2x48xf32> to vector<2x16xf32>
    %349 = vector.extract_strided_slice %339 {offsets = [0, 16], sizes = [2, 16], strides = [1, 1]} : vector<2x48xf32> to vector<2x16xf32>
    %350 = arith.addf %348, %349 : vector<2x16xf32>
    %351 = arith.negf %350 : vector<2x16xf32>
    %352 = math.exp %351 : vector<2x16xf32>
    %cst_130 = arith.constant 1.000000e+00 : f32
    %353 = vector.broadcast %cst_130 : f32 to vector<2x16xf32>
    %354 = arith.addf %353, %352 : vector<2x16xf32>
    %355 = arith.divf %353, %354 : vector<2x16xf32>
    %356 = vector.extract_strided_slice %336 {offsets = [0, 32], sizes = [2, 16], strides = [1, 1]} : vector<2x48xf32> to vector<2x16xf32>
    %357 = vector.extract_strided_slice %339 {offsets = [0, 32], sizes = [2, 16], strides = [1, 1]} : vector<2x48xf32> to vector<2x16xf32>
    %358 = arith.mulf %347, %357 : vector<2x16xf32>
    %359 = arith.addf %356, %358 : vector<2x16xf32>
    %360 = math.tanh %359 : vector<2x16xf32>
    %cst_131 = arith.constant 1.000000e+00 : f32
    %361 = vector.broadcast %cst_131 : f32 to vector<2x16xf32>
    %362 = arith.subf %361, %355 : vector<2x16xf32>
    %363 = arith.mulf %362, %360 : vector<2x16xf32>
    %364 = arith.mulf %355, %333 : vector<2x16xf32>
    %365 = arith.addf %363, %364 : vector<2x16xf32>
    %c0_132 = arith.constant 0 : index
    %c0_133 = arith.constant 0 : index
    %366 = vector.load %arg18[%c0_132, %c0_133] : memref<2x16xf32, #tpu.memory_space<vmem>>, vector<2x16xf32>
    tpu.vector_store %arg18[%c0_132, %c0_133], %365 {strides = array<i32>} : memref<2x16xf32, #tpu.memory_space<vmem>>, vector<2x16xf32>,
    %cst_134 = arith.constant dense<0.000000e+00> : vector<2x32xf32>
    %367 = tpu.matmul %365, %7, %cst_134 {dimension_numbers = #tpu.dot_dimension_numbers<[1], [0], [0], [1], [0, 0, 1, 1], [], []>} : vector<2x16xf32>, vector<16x32xf32>, vector<2x32xf32> -> vector<2x32xf32>
    %368 = vector.broadcast %8 : vector<1x32xf32> to vector<2x32xf32>
    %369 = arith.addf %367, %368 : vector<2x32xf32>
    %c0_135 = arith.constant 0 : index
    %c0_136 = arith.constant 0 : index
    %370 = vector.load %arg19[%c0_135, %c0_136] : memref<2x16xf32, #tpu.memory_space<vmem>>, vector<2x16xf32>
    %cst_137 = arith.constant dense<0.000000e+00> : vector<2x48xf32>
    %371 = tpu.matmul %369, %9, %cst_137 {dimension_numbers = #tpu.dot_dimension_numbers<[1], [0], [0], [1], [0, 0, 1, 1], [], []>} : vector<2x32xf32>, vector<32x48xf32>, vector<2x48xf32> -> vector<2x48xf32>
    %372 = vector.broadcast %11 : vector<1x48xf32> to vector<2x48xf32>
    %373 = arith.addf %371, %372 : vector<2x48xf32>
    %cst_138 = arith.constant dense<0.000000e+00> : vector<2x48xf32>
    %374 = tpu.matmul %370, %10, %cst_138 {dimension_numbers = #tpu.dot_dimension_numbers<[1], [0], [0], [1], [0, 0, 1, 1], [], []>} : vector<2x16xf32>, vector<16x48xf32>, vector<2x48xf32> -> vector<2x48xf32>
    %375 = vector.broadcast %12 : vector<1x48xf32> to vector<2x48xf32>
    %376 = arith.addf %374, %375 : vector<2x48xf32>
    %377 = vector.extract_strided_slice %373 {offsets = [0, 0], sizes = [2, 16], strides = [1, 1]} : vector<2x48xf32> to vector<2x16xf32>
    %378 = vector.extract_strided_slice %376 {offsets = [0, 0], sizes = [2, 16], strides = [1, 1]} : vector<2x48xf32> to vector<2x16xf32>
    %379 = arith.addf %377, %378 : vector<2x16xf32>
    %380 = arith.negf %379 : vector<2x16xf32>
    %381 = math.exp %380 : vector<2x16xf32>
    %cst_139 = arith.constant 1.000000e+00 : f32
    %382 = vector.broadcast %cst_139 : f32 to vector<2x16xf32>
    %383 = arith.addf %382, %381 : vector<2x16xf32>
    %384 = arith.divf %382, %383 : vector<2x16xf32>
    %385 = vector.extract_strided_slice %373 {offsets = [0, 16], sizes = [2, 16], strides = [1, 1]} : vector<2x48xf32> to vector<2x16xf32>
    %386 = vector.extract_strided_slice %376 {offsets = [0, 16], sizes = [2, 16], strides = [1, 1]} : vector<2x48xf32> to vector<2x16xf32>
    %387 = arith.addf %385, %386 : vector<2x16xf32>
    %388 = arith.negf %387 : vector<2x16xf32>
    %389 = math.exp %388 : vector<2x16xf32>
    %cst_140 = arith.constant 1.000000e+00 : f32
    %390 = vector.broadcast %cst_140 : f32 to vector<2x16xf32>
    %391 = arith.addf %390, %389 : vector<2x16xf32>
    %392 = arith.divf %390, %391 : vector<2x16xf32>
    %393 = vector.extract_strided_slice %373 {offsets = [0, 32], sizes = [2, 16], strides = [1, 1]} : vector<2x48xf32> to vector<2x16xf32>
    %394 = vector.extract_strided_slice %376 {offsets = [0, 32], sizes = [2, 16], strides = [1, 1]} : vector<2x48xf32> to vector<2x16xf32>
    %395 = arith.mulf %384, %394 : vector<2x16xf32>
    %396 = arith.addf %393, %395 : vector<2x16xf32>
    %397 = math.tanh %396 : vector<2x16xf32>
    %cst_141 = arith.constant 1.000000e+00 : f32
    %398 = vector.broadcast %cst_141 : f32 to vector<2x16xf32>
    %399 = arith.subf %398, %392 : vector<2x16xf32>
    %400 = arith.mulf %399, %397 : vector<2x16xf32>
    %401 = arith.mulf %392, %370 : vector<2x16xf32>
    %402 = arith.addf %400, %401 : vector<2x16xf32>
    %c0_142 = arith.constant 0 : index
    %c0_143 = arith.constant 0 : index
    %403 = vector.load %arg19[%c0_142, %c0_143] : memref<2x16xf32, #tpu.memory_space<vmem>>, vector<2x16xf32>
    tpu.vector_store %arg19[%c0_142, %c0_143], %402 {strides = array<i32>} : memref<2x16xf32, #tpu.memory_space<vmem>>, vector<2x16xf32>,
    %cst_144 = arith.constant dense<0.000000e+00> : vector<2x8xf32>
    %404 = tpu.matmul %402, %13, %cst_144 {dimension_numbers = #tpu.dot_dimension_numbers<[1], [0], [0], [1], [0, 0, 1, 1], [], []>} : vector<2x16xf32>, vector<16x8xf32>, vector<2x8xf32> -> vector<2x8xf32>
    %405 = vector.broadcast %14 : vector<1x8xf32> to vector<2x8xf32>
    %406 = arith.addf %404, %405 : vector<2x8xf32>
    %c3_145 = arith.constant 3 : index
    %c0_146 = arith.constant 0 : index
    %c0_147 = arith.constant 0 : index
    %407 = vector.load %arg16[%c3_145, %c0_146, %c0_147] : memref<8x2x8xf32, #tpu.memory_space<vmem>>, vector<1x2x8xf32>
    %408 = vector.shape_cast %407 : vector<1x2x8xf32> to vector<2x8xf32>
    %409 = vector.shape_cast %406 : vector<2x8xf32> to vector<1x2x8xf32>
    tpu.vector_store %arg16[%c3_145, %c0_146, %c0_147], %409 {strides = array<i32>} : memref<8x2x8xf32, #tpu.memory_space<vmem>>, vector<1x2x8xf32>,
    %c2 = arith.constant 2 : index
    %c0_148 = arith.constant 0 : index
    %c0_149 = arith.constant 0 : index
    %410 = vector.load %arg1[%c2, %c0_148, %c0_149] : memref<8x2x4xf32, #tpu.memory_space<vmem>>, vector<1x2x4xf32>
    %411 = vector.shape_cast %410 : vector<1x2x4xf32> to vector<2x4xf32>
    %c0_150 = arith.constant 0 : index
    %c0_151 = arith.constant 0 : index
    %412 = vector.load %arg18[%c0_150, %c0_151] : memref<2x16xf32, #tpu.memory_space<vmem>>, vector<2x16xf32>
    %cst_152 = arith.constant dense<0.000000e+00> : vector<2x48xf32>
    %413 = tpu.matmul %411, %3, %cst_152 {dimension_numbers = #tpu.dot_dimension_numbers<[1], [0], [0], [1], [0, 0, 1, 1], [], []>} : vector<2x4xf32>, vector<4x48xf32>, vector<2x48xf32> -> vector<2x48xf32>
    %414 = vector.broadcast %5 : vector<1x48xf32> to vector<2x48xf32>
    %415 = arith.addf %413, %414 : vector<2x48xf32>
    %cst_153 = arith.constant dense<0.000000e+00> : vector<2x48xf32>
    %416 = tpu.matmul %412, %4, %cst_153 {dimension_numbers = #tpu.dot_dimension_numbers<[1], [0], [0], [1], [0, 0, 1, 1], [], []>} : vector<2x16xf32>, vector<16x48xf32>, vector<2x48xf32> -> vector<2x48xf32>
    %417 = vector.broadcast %6 : vector<1x48xf32> to vector<2x48xf32>
    %418 = arith.addf %416, %417 : vector<2x48xf32>
    %419 = vector.extract_strided_slice %415 {offsets = [0, 0], sizes = [2, 16], strides = [1, 1]} : vector<2x48xf32> to vector<2x16xf32>
    %420 = vector.extract_strided_slice %418 {offsets = [0, 0], sizes = [2, 16], strides = [1, 1]} : vector<2x48xf32> to vector<2x16xf32>
    %421 = arith.addf %419, %420 : vector<2x16xf32>
    %422 = arith.negf %421 : vector<2x16xf32>
    %423 = math.exp %422 : vector<2x16xf32>
    %cst_154 = arith.constant 1.000000e+00 : f32
    %424 = vector.broadcast %cst_154 : f32 to vector<2x16xf32>
    %425 = arith.addf %424, %423 : vector<2x16xf32>
    %426 = arith.divf %424, %425 : vector<2x16xf32>
    %427 = vector.extract_strided_slice %415 {offsets = [0, 16], sizes = [2, 16], strides = [1, 1]} : vector<2x48xf32> to vector<2x16xf32>
    %428 = vector.extract_strided_slice %418 {offsets = [0, 16], sizes = [2, 16], strides = [1, 1]} : vector<2x48xf32> to vector<2x16xf32>
    %429 = arith.addf %427, %428 : vector<2x16xf32>
    %430 = arith.negf %429 : vector<2x16xf32>
    %431 = math.exp %430 : vector<2x16xf32>
    %cst_155 = arith.constant 1.000000e+00 : f32
    %432 = vector.broadcast %cst_155 : f32 to vector<2x16xf32>
    %433 = arith.addf %432, %431 : vector<2x16xf32>
    %434 = arith.divf %432, %433 : vector<2x16xf32>
    %435 = vector.extract_strided_slice %415 {offsets = [0, 32], sizes = [2, 16], strides = [1, 1]} : vector<2x48xf32> to vector<2x16xf32>
    %436 = vector.extract_strided_slice %418 {offsets = [0, 32], sizes = [2, 16], strides = [1, 1]} : vector<2x48xf32> to vector<2x16xf32>
    %437 = arith.mulf %426, %436 : vector<2x16xf32>
    %438 = arith.addf %435, %437 : vector<2x16xf32>
    %439 = math.tanh %438 : vector<2x16xf32>
    %cst_156 = arith.constant 1.000000e+00 : f32
    %440 = vector.broadcast %cst_156 : f32 to vector<2x16xf32>
    %441 = arith.subf %440, %434 : vector<2x16xf32>
    %442 = arith.mulf %441, %439 : vector<2x16xf32>
    %443 = arith.mulf %434, %412 : vector<2x16xf32>
    %444 = arith.addf %442, %443 : vector<2x16xf32>
    %c0_157 = arith.constant 0 : index
    %c0_158 = arith.constant 0 : index
    %445 = vector.load %arg18[%c0_157, %c0_158] : memref<2x16xf32, #tpu.memory_space<vmem>>, vector<2x16xf32>
    tpu.vector_store %arg18[%c0_157, %c0_158], %444 {strides = array<i32>} : memref<2x16xf32, #tpu.memory_space<vmem>>, vector<2x16xf32>,
    %cst_159 = arith.constant dense<0.000000e+00> : vector<2x32xf32>
    %446 = tpu.matmul %444, %7, %cst_159 {dimension_numbers = #tpu.dot_dimension_numbers<[1], [0], [0], [1], [0, 0, 1, 1], [], []>} : vector<2x16xf32>, vector<16x32xf32>, vector<2x32xf32> -> vector<2x32xf32>
    %447 = vector.broadcast %8 : vector<1x32xf32> to vector<2x32xf32>
    %448 = arith.addf %446, %447 : vector<2x32xf32>
    %c0_160 = arith.constant 0 : index
    %c0_161 = arith.constant 0 : index
    %449 = vector.load %arg19[%c0_160, %c0_161] : memref<2x16xf32, #tpu.memory_space<vmem>>, vector<2x16xf32>
    %cst_162 = arith.constant dense<0.000000e+00> : vector<2x48xf32>
    %450 = tpu.matmul %448, %9, %cst_162 {dimension_numbers = #tpu.dot_dimension_numbers<[1], [0], [0], [1], [0, 0, 1, 1], [], []>} : vector<2x32xf32>, vector<32x48xf32>, vector<2x48xf32> -> vector<2x48xf32>
    %451 = vector.broadcast %11 : vector<1x48xf32> to vector<2x48xf32>
    %452 = arith.addf %450, %451 : vector<2x48xf32>
    %cst_163 = arith.constant dense<0.000000e+00> : vector<2x48xf32>
    %453 = tpu.matmul %449, %10, %cst_163 {dimension_numbers = #tpu.dot_dimension_numbers<[1], [0], [0], [1], [0, 0, 1, 1], [], []>} : vector<2x16xf32>, vector<16x48xf32>, vector<2x48xf32> -> vector<2x48xf32>
    %454 = vector.broadcast %12 : vector<1x48xf32> to vector<2x48xf32>
    %455 = arith.addf %453, %454 : vector<2x48xf32>
    %456 = vector.extract_strided_slice %452 {offsets = [0, 0], sizes = [2, 16], strides = [1, 1]} : vector<2x48xf32> to vector<2x16xf32>
    %457 = vector.extract_strided_slice %455 {offsets = [0, 0], sizes = [2, 16], strides = [1, 1]} : vector<2x48xf32> to vector<2x16xf32>
    %458 = arith.addf %456, %457 : vector<2x16xf32>
    %459 = arith.negf %458 : vector<2x16xf32>
    %460 = math.exp %459 : vector<2x16xf32>
    %cst_164 = arith.constant 1.000000e+00 : f32
    %461 = vector.broadcast %cst_164 : f32 to vector<2x16xf32>
    %462 = arith.addf %461, %460 : vector<2x16xf32>
    %463 = arith.divf %461, %462 : vector<2x16xf32>
    %464 = vector.extract_strided_slice %452 {offsets = [0, 16], sizes = [2, 16], strides = [1, 1]} : vector<2x48xf32> to vector<2x16xf32>
    %465 = vector.extract_strided_slice %455 {offsets = [0, 16], sizes = [2, 16], strides = [1, 1]} : vector<2x48xf32> to vector<2x16xf32>
    %466 = arith.addf %464, %465 : vector<2x16xf32>
    %467 = arith.negf %466 : vector<2x16xf32>
    %468 = math.exp %467 : vector<2x16xf32>
    %cst_165 = arith.constant 1.000000e+00 : f32
    %469 = vector.broadcast %cst_165 : f32 to vector<2x16xf32>
    %470 = arith.addf %469, %468 : vector<2x16xf32>
    %471 = arith.divf %469, %470 : vector<2x16xf32>
    %472 = vector.extract_strided_slice %452 {offsets = [0, 32], sizes = [2, 16], strides = [1, 1]} : vector<2x48xf32> to vector<2x16xf32>
    %473 = vector.extract_strided_slice %455 {offsets = [0, 32], sizes = [2, 16], strides = [1, 1]} : vector<2x48xf32> to vector<2x16xf32>
    %474 = arith.mulf %463, %473 : vector<2x16xf32>
    %475 = arith.addf %472, %474 : vector<2x16xf32>
    %476 = math.tanh %475 : vector<2x16xf32>
    %cst_166 = arith.constant 1.000000e+00 : f32
    %477 = vector.broadcast %cst_166 : f32 to vector<2x16xf32>
    %478 = arith.subf %477, %471 : vector<2x16xf32>
    %479 = arith.mulf %478, %476 : vector<2x16xf32>
    %480 = arith.mulf %471, %449 : vector<2x16xf32>
    %481 = arith.addf %479, %480 : vector<2x16xf32>
    %c0_167 = arith.constant 0 : index
    %c0_168 = arith.constant 0 : index
    %482 = vector.load %arg19[%c0_167, %c0_168] : memref<2x16xf32, #tpu.memory_space<vmem>>, vector<2x16xf32>
    tpu.vector_store %arg19[%c0_167, %c0_168], %481 {strides = array<i32>} : memref<2x16xf32, #tpu.memory_space<vmem>>, vector<2x16xf32>,
    %cst_169 = arith.constant dense<0.000000e+00> : vector<2x8xf32>
    %483 = tpu.matmul %481, %13, %cst_169 {dimension_numbers = #tpu.dot_dimension_numbers<[1], [0], [0], [1], [0, 0, 1, 1], [], []>} : vector<2x16xf32>, vector<16x8xf32>, vector<2x8xf32> -> vector<2x8xf32>
    %484 = vector.broadcast %14 : vector<1x8xf32> to vector<2x8xf32>
    %485 = arith.addf %483, %484 : vector<2x8xf32>
    %c2_170 = arith.constant 2 : index
    %c0_171 = arith.constant 0 : index
    %c0_172 = arith.constant 0 : index
    %486 = vector.load %arg16[%c2_170, %c0_171, %c0_172] : memref<8x2x8xf32, #tpu.memory_space<vmem>>, vector<1x2x8xf32>
    %487 = vector.shape_cast %486 : vector<1x2x8xf32> to vector<2x8xf32>
    %488 = vector.shape_cast %485 : vector<2x8xf32> to vector<1x2x8xf32>
    tpu.vector_store %arg16[%c2_170, %c0_171, %c0_172], %488 {strides = array<i32>} : memref<8x2x8xf32, #tpu.memory_space<vmem>>, vector<1x2x8xf32>,
    %c1 = arith.constant 1 : index
    %c0_173 = arith.constant 0 : index
    %c0_174 = arith.constant 0 : index
    %489 = vector.load %arg1[%c1, %c0_173, %c0_174] : memref<8x2x4xf32, #tpu.memory_space<vmem>>, vector<1x2x4xf32>
    %490 = vector.shape_cast %489 : vector<1x2x4xf32> to vector<2x4xf32>
    %c0_175 = arith.constant 0 : index
    %c0_176 = arith.constant 0 : index
    %491 = vector.load %arg18[%c0_175, %c0_176] : memref<2x16xf32, #tpu.memory_space<vmem>>, vector<2x16xf32>
    %cst_177 = arith.constant dense<0.000000e+00> : vector<2x48xf32>
    %492 = tpu.matmul %490, %3, %cst_177 {dimension_numbers = #tpu.dot_dimension_numbers<[1], [0], [0], [1], [0, 0, 1, 1], [], []>} : vector<2x4xf32>, vector<4x48xf32>, vector<2x48xf32> -> vector<2x48xf32>
    %493 = vector.broadcast %5 : vector<1x48xf32> to vector<2x48xf32>
    %494 = arith.addf %492, %493 : vector<2x48xf32>
    %cst_178 = arith.constant dense<0.000000e+00> : vector<2x48xf32>
    %495 = tpu.matmul %491, %4, %cst_178 {dimension_numbers = #tpu.dot_dimension_numbers<[1], [0], [0], [1], [0, 0, 1, 1], [], []>} : vector<2x16xf32>, vector<16x48xf32>, vector<2x48xf32> -> vector<2x48xf32>
    %496 = vector.broadcast %6 : vector<1x48xf32> to vector<2x48xf32>
    %497 = arith.addf %495, %496 : vector<2x48xf32>
    %498 = vector.extract_strided_slice %494 {offsets = [0, 0], sizes = [2, 16], strides = [1, 1]} : vector<2x48xf32> to vector<2x16xf32>
    %499 = vector.extract_strided_slice %497 {offsets = [0, 0], sizes = [2, 16], strides = [1, 1]} : vector<2x48xf32> to vector<2x16xf32>
    %500 = arith.addf %498, %499 : vector<2x16xf32>
    %501 = arith.negf %500 : vector<2x16xf32>
    %502 = math.exp %501 : vector<2x16xf32>
    %cst_179 = arith.constant 1.000000e+00 : f32
    %503 = vector.broadcast %cst_179 : f32 to vector<2x16xf32>
    %504 = arith.addf %503, %502 : vector<2x16xf32>
    %505 = arith.divf %503, %504 : vector<2x16xf32>
    %506 = vector.extract_strided_slice %494 {offsets = [0, 16], sizes = [2, 16], strides = [1, 1]} : vector<2x48xf32> to vector<2x16xf32>
    %507 = vector.extract_strided_slice %497 {offsets = [0, 16], sizes = [2, 16], strides = [1, 1]} : vector<2x48xf32> to vector<2x16xf32>
    %508 = arith.addf %506, %507 : vector<2x16xf32>
    %509 = arith.negf %508 : vector<2x16xf32>
    %510 = math.exp %509 : vector<2x16xf32>
    %cst_180 = arith.constant 1.000000e+00 : f32
    %511 = vector.broadcast %cst_180 : f32 to vector<2x16xf32>
    %512 = arith.addf %511, %510 : vector<2x16xf32>
    %513 = arith.divf %511, %512 : vector<2x16xf32>
    %514 = vector.extract_strided_slice %494 {offsets = [0, 32], sizes = [2, 16], strides = [1, 1]} : vector<2x48xf32> to vector<2x16xf32>
    %515 = vector.extract_strided_slice %497 {offsets = [0, 32], sizes = [2, 16], strides = [1, 1]} : vector<2x48xf32> to vector<2x16xf32>
    %516 = arith.mulf %505, %515 : vector<2x16xf32>
    %517 = arith.addf %514, %516 : vector<2x16xf32>
    %518 = math.tanh %517 : vector<2x16xf32>
    %cst_181 = arith.constant 1.000000e+00 : f32
    %519 = vector.broadcast %cst_181 : f32 to vector<2x16xf32>
    %520 = arith.subf %519, %513 : vector<2x16xf32>
    %521 = arith.mulf %520, %518 : vector<2x16xf32>
    %522 = arith.mulf %513, %491 : vector<2x16xf32>
    %523 = arith.addf %521, %522 : vector<2x16xf32>
    %c0_182 = arith.constant 0 : index
    %c0_183 = arith.constant 0 : index
    %524 = vector.load %arg18[%c0_182, %c0_183] : memref<2x16xf32, #tpu.memory_space<vmem>>, vector<2x16xf32>
    tpu.vector_store %arg18[%c0_182, %c0_183], %523 {strides = array<i32>} : memref<2x16xf32, #tpu.memory_space<vmem>>, vector<2x16xf32>,
    %cst_184 = arith.constant dense<0.000000e+00> : vector<2x32xf32>
    %525 = tpu.matmul %523, %7, %cst_184 {dimension_numbers = #tpu.dot_dimension_numbers<[1], [0], [0], [1], [0, 0, 1, 1], [], []>} : vector<2x16xf32>, vector<16x32xf32>, vector<2x32xf32> -> vector<2x32xf32>
    %526 = vector.broadcast %8 : vector<1x32xf32> to vector<2x32xf32>
    %527 = arith.addf %525, %526 : vector<2x32xf32>
    %c0_185 = arith.constant 0 : index
    %c0_186 = arith.constant 0 : index
    %528 = vector.load %arg19[%c0_185, %c0_186] : memref<2x16xf32, #tpu.memory_space<vmem>>, vector<2x16xf32>
    %cst_187 = arith.constant dense<0.000000e+00> : vector<2x48xf32>
    %529 = tpu.matmul %527, %9, %cst_187 {dimension_numbers = #tpu.dot_dimension_numbers<[1], [0], [0], [1], [0, 0, 1, 1], [], []>} : vector<2x32xf32>, vector<32x48xf32>, vector<2x48xf32> -> vector<2x48xf32>
    %530 = vector.broadcast %11 : vector<1x48xf32> to vector<2x48xf32>
    %531 = arith.addf %529, %530 : vector<2x48xf32>
    %cst_188 = arith.constant dense<0.000000e+00> : vector<2x48xf32>
    %532 = tpu.matmul %528, %10, %cst_188 {dimension_numbers = #tpu.dot_dimension_numbers<[1], [0], [0], [1], [0, 0, 1, 1], [], []>} : vector<2x16xf32>, vector<16x48xf32>, vector<2x48xf32> -> vector<2x48xf32>
    %533 = vector.broadcast %12 : vector<1x48xf32> to vector<2x48xf32>
    %534 = arith.addf %532, %533 : vector<2x48xf32>
    %535 = vector.extract_strided_slice %531 {offsets = [0, 0], sizes = [2, 16], strides = [1, 1]} : vector<2x48xf32> to vector<2x16xf32>
    %536 = vector.extract_strided_slice %534 {offsets = [0, 0], sizes = [2, 16], strides = [1, 1]} : vector<2x48xf32> to vector<2x16xf32>
    %537 = arith.addf %535, %536 : vector<2x16xf32>
    %538 = arith.negf %537 : vector<2x16xf32>
    %539 = math.exp %538 : vector<2x16xf32>
    %cst_189 = arith.constant 1.000000e+00 : f32
    %540 = vector.broadcast %cst_189 : f32 to vector<2x16xf32>
    %541 = arith.addf %540, %539 : vector<2x16xf32>
    %542 = arith.divf %540, %541 : vector<2x16xf32>
    %543 = vector.extract_strided_slice %531 {offsets = [0, 16], sizes = [2, 16], strides = [1, 1]} : vector<2x48xf32> to vector<2x16xf32>
    %544 = vector.extract_strided_slice %534 {offsets = [0, 16], sizes = [2, 16], strides = [1, 1]} : vector<2x48xf32> to vector<2x16xf32>
    %545 = arith.addf %543, %544 : vector<2x16xf32>
    %546 = arith.negf %545 : vector<2x16xf32>
    %547 = math.exp %546 : vector<2x16xf32>
    %cst_190 = arith.constant 1.000000e+00 : f32
    %548 = vector.broadcast %cst_190 : f32 to vector<2x16xf32>
    %549 = arith.addf %548, %547 : vector<2x16xf32>
    %550 = arith.divf %548, %549 : vector<2x16xf32>
    %551 = vector.extract_strided_slice %531 {offsets = [0, 32], sizes = [2, 16], strides = [1, 1]} : vector<2x48xf32> to vector<2x16xf32>
    %552 = vector.extract_strided_slice %534 {offsets = [0, 32], sizes = [2, 16], strides = [1, 1]} : vector<2x48xf32> to vector<2x16xf32>
    %553 = arith.mulf %542, %552 : vector<2x16xf32>
    %554 = arith.addf %551, %553 : vector<2x16xf32>
    %555 = math.tanh %554 : vector<2x16xf32>
    %cst_191 = arith.constant 1.000000e+00 : f32
    %556 = vector.broadcast %cst_191 : f32 to vector<2x16xf32>
    %557 = arith.subf %556, %550 : vector<2x16xf32>
    %558 = arith.mulf %557, %555 : vector<2x16xf32>
    %559 = arith.mulf %550, %528 : vector<2x16xf32>
    %560 = arith.addf %558, %559 : vector<2x16xf32>
    %c0_192 = arith.constant 0 : index
    %c0_193 = arith.constant 0 : index
    %561 = vector.load %arg19[%c0_192, %c0_193] : memref<2x16xf32, #tpu.memory_space<vmem>>, vector<2x16xf32>
    tpu.vector_store %arg19[%c0_192, %c0_193], %560 {strides = array<i32>} : memref<2x16xf32, #tpu.memory_space<vmem>>, vector<2x16xf32>,
    %cst_194 = arith.constant dense<0.000000e+00> : vector<2x8xf32>
    %562 = tpu.matmul %560, %13, %cst_194 {dimension_numbers = #tpu.dot_dimension_numbers<[1], [0], [0], [1], [0, 0, 1, 1], [], []>} : vector<2x16xf32>, vector<16x8xf32>, vector<2x8xf32> -> vector<2x8xf32>
    %563 = vector.broadcast %14 : vector<1x8xf32> to vector<2x8xf32>
    %564 = arith.addf %562, %563 : vector<2x8xf32>
    %c1_195 = arith.constant 1 : index
    %c0_196 = arith.constant 0 : index
    %c0_197 = arith.constant 0 : index
    %565 = vector.load %arg16[%c1_195, %c0_196, %c0_197] : memref<8x2x8xf32, #tpu.memory_space<vmem>>, vector<1x2x8xf32>
    %566 = vector.shape_cast %565 : vector<1x2x8xf32> to vector<2x8xf32>
    %567 = vector.shape_cast %564 : vector<2x8xf32> to vector<1x2x8xf32>
    tpu.vector_store %arg16[%c1_195, %c0_196, %c0_197], %567 {strides = array<i32>} : memref<8x2x8xf32, #tpu.memory_space<vmem>>, vector<1x2x8xf32>,
    %c0_198 = arith.constant 0 : index
    %c0_199 = arith.constant 0 : index
    %c0_200 = arith.constant 0 : index
    %568 = vector.load %arg1[%c0_198, %c0_199, %c0_200] : memref<8x2x4xf32, #tpu.memory_space<vmem>>, vector<1x2x4xf32>
    %569 = vector.shape_cast %568 : vector<1x2x4xf32> to vector<2x4xf32>
    %c0_201 = arith.constant 0 : index
    %c0_202 = arith.constant 0 : index
    %570 = vector.load %arg18[%c0_201, %c0_202] : memref<2x16xf32, #tpu.memory_space<vmem>>, vector<2x16xf32>
    %cst_203 = arith.constant dense<0.000000e+00> : vector<2x48xf32>
    %571 = tpu.matmul %569, %3, %cst_203 {dimension_numbers = #tpu.dot_dimension_numbers<[1], [0], [0], [1], [0, 0, 1, 1], [], []>} : vector<2x4xf32>, vector<4x48xf32>, vector<2x48xf32> -> vector<2x48xf32>
    %572 = vector.broadcast %5 : vector<1x48xf32> to vector<2x48xf32>
    %573 = arith.addf %571, %572 : vector<2x48xf32>
    %cst_204 = arith.constant dense<0.000000e+00> : vector<2x48xf32>
    %574 = tpu.matmul %570, %4, %cst_204 {dimension_numbers = #tpu.dot_dimension_numbers<[1], [0], [0], [1], [0, 0, 1, 1], [], []>} : vector<2x16xf32>, vector<16x48xf32>, vector<2x48xf32> -> vector<2x48xf32>
    %575 = vector.broadcast %6 : vector<1x48xf32> to vector<2x48xf32>
    %576 = arith.addf %574, %575 : vector<2x48xf32>
    %577 = vector.extract_strided_slice %573 {offsets = [0, 0], sizes = [2, 16], strides = [1, 1]} : vector<2x48xf32> to vector<2x16xf32>
    %578 = vector.extract_strided_slice %576 {offsets = [0, 0], sizes = [2, 16], strides = [1, 1]} : vector<2x48xf32> to vector<2x16xf32>
    %579 = arith.addf %577, %578 : vector<2x16xf32>
    %580 = arith.negf %579 : vector<2x16xf32>
    %581 = math.exp %580 : vector<2x16xf32>
    %cst_205 = arith.constant 1.000000e+00 : f32
    %582 = vector.broadcast %cst_205 : f32 to vector<2x16xf32>
    %583 = arith.addf %582, %581 : vector<2x16xf32>
    %584 = arith.divf %582, %583 : vector<2x16xf32>
    %585 = vector.extract_strided_slice %573 {offsets = [0, 16], sizes = [2, 16], strides = [1, 1]} : vector<2x48xf32> to vector<2x16xf32>
    %586 = vector.extract_strided_slice %576 {offsets = [0, 16], sizes = [2, 16], strides = [1, 1]} : vector<2x48xf32> to vector<2x16xf32>
    %587 = arith.addf %585, %586 : vector<2x16xf32>
    %588 = arith.negf %587 : vector<2x16xf32>
    %589 = math.exp %588 : vector<2x16xf32>
    %cst_206 = arith.constant 1.000000e+00 : f32
    %590 = vector.broadcast %cst_206 : f32 to vector<2x16xf32>
    %591 = arith.addf %590, %589 : vector<2x16xf32>
    %592 = arith.divf %590, %591 : vector<2x16xf32>
    %593 = vector.extract_strided_slice %573 {offsets = [0, 32], sizes = [2, 16], strides = [1, 1]} : vector<2x48xf32> to vector<2x16xf32>
    %594 = vector.extract_strided_slice %576 {offsets = [0, 32], sizes = [2, 16], strides = [1, 1]} : vector<2x48xf32> to vector<2x16xf32>
    %595 = arith.mulf %584, %594 : vector<2x16xf32>
    %596 = arith.addf %593, %595 : vector<2x16xf32>
    %597 = math.tanh %596 : vector<2x16xf32>
    %cst_207 = arith.constant 1.000000e+00 : f32
    %598 = vector.broadcast %cst_207 : f32 to vector<2x16xf32>
    %599 = arith.subf %598, %592 : vector<2x16xf32>
    %600 = arith.mulf %599, %597 : vector<2x16xf32>
    %601 = arith.mulf %592, %570 : vector<2x16xf32>
    %602 = arith.addf %600, %601 : vector<2x16xf32>
    %c0_208 = arith.constant 0 : index
    %c0_209 = arith.constant 0 : index
    %603 = vector.load %arg18[%c0_208, %c0_209] : memref<2x16xf32, #tpu.memory_space<vmem>>, vector<2x16xf32>
    tpu.vector_store %arg18[%c0_208, %c0_209], %602 {strides = array<i32>} : memref<2x16xf32, #tpu.memory_space<vmem>>, vector<2x16xf32>,
    %cst_210 = arith.constant dense<0.000000e+00> : vector<2x32xf32>
    %604 = tpu.matmul %602, %7, %cst_210 {dimension_numbers = #tpu.dot_dimension_numbers<[1], [0], [0], [1], [0, 0, 1, 1], [], []>} : vector<2x16xf32>, vector<16x32xf32>, vector<2x32xf32> -> vector<2x32xf32>
    %605 = vector.broadcast %8 : vector<1x32xf32> to vector<2x32xf32>
    %606 = arith.addf %604, %605 : vector<2x32xf32>
    %c0_211 = arith.constant 0 : index
    %c0_212 = arith.constant 0 : index
    %607 = vector.load %arg19[%c0_211, %c0_212] : memref<2x16xf32, #tpu.memory_space<vmem>>, vector<2x16xf32>
    %cst_213 = arith.constant dense<0.000000e+00> : vector<2x48xf32>
    %608 = tpu.matmul %606, %9, %cst_213 {dimension_numbers = #tpu.dot_dimension_numbers<[1], [0], [0], [1], [0, 0, 1, 1], [], []>} : vector<2x32xf32>, vector<32x48xf32>, vector<2x48xf32> -> vector<2x48xf32>
    %609 = vector.broadcast %11 : vector<1x48xf32> to vector<2x48xf32>
    %610 = arith.addf %608, %609 : vector<2x48xf32>
    %cst_214 = arith.constant dense<0.000000e+00> : vector<2x48xf32>
    %611 = tpu.matmul %607, %10, %cst_214 {dimension_numbers = #tpu.dot_dimension_numbers<[1], [0], [0], [1], [0, 0, 1, 1], [], []>} : vector<2x16xf32>, vector<16x48xf32>, vector<2x48xf32> -> vector<2x48xf32>
    %612 = vector.broadcast %12 : vector<1x48xf32> to vector<2x48xf32>
    %613 = arith.addf %611, %612 : vector<2x48xf32>
    %614 = vector.extract_strided_slice %610 {offsets = [0, 0], sizes = [2, 16], strides = [1, 1]} : vector<2x48xf32> to vector<2x16xf32>
    %615 = vector.extract_strided_slice %613 {offsets = [0, 0], sizes = [2, 16], strides = [1, 1]} : vector<2x48xf32> to vector<2x16xf32>
    %616 = arith.addf %614, %615 : vector<2x16xf32>
    %617 = arith.negf %616 : vector<2x16xf32>
    %618 = math.exp %617 : vector<2x16xf32>
    %cst_215 = arith.constant 1.000000e+00 : f32
    %619 = vector.broadcast %cst_215 : f32 to vector<2x16xf32>
    %620 = arith.addf %619, %618 : vector<2x16xf32>
    %621 = arith.divf %619, %620 : vector<2x16xf32>
    %622 = vector.extract_strided_slice %610 {offsets = [0, 16], sizes = [2, 16], strides = [1, 1]} : vector<2x48xf32> to vector<2x16xf32>
    %623 = vector.extract_strided_slice %613 {offsets = [0, 16], sizes = [2, 16], strides = [1, 1]} : vector<2x48xf32> to vector<2x16xf32>
    %624 = arith.addf %622, %623 : vector<2x16xf32>
    %625 = arith.negf %624 : vector<2x16xf32>
    %626 = math.exp %625 : vector<2x16xf32>
    %cst_216 = arith.constant 1.000000e+00 : f32
    %627 = vector.broadcast %cst_216 : f32 to vector<2x16xf32>
    %628 = arith.addf %627, %626 : vector<2x16xf32>
    %629 = arith.divf %627, %628 : vector<2x16xf32>
    %630 = vector.extract_strided_slice %610 {offsets = [0, 32], sizes = [2, 16], strides = [1, 1]} : vector<2x48xf32> to vector<2x16xf32>
    %631 = vector.extract_strided_slice %613 {offsets = [0, 32], sizes = [2, 16], strides = [1, 1]} : vector<2x48xf32> to vector<2x16xf32>
    %632 = arith.mulf %621, %631 : vector<2x16xf32>
    %633 = arith.addf %630, %632 : vector<2x16xf32>
    %634 = math.tanh %633 : vector<2x16xf32>
    %cst_217 = arith.constant 1.000000e+00 : f32
    %635 = vector.broadcast %cst_217 : f32 to vector<2x16xf32>
    %636 = arith.subf %635, %629 : vector<2x16xf32>
    %637 = arith.mulf %636, %634 : vector<2x16xf32>
    %638 = arith.mulf %629, %607 : vector<2x16xf32>
    %639 = arith.addf %637, %638 : vector<2x16xf32>
    %c0_218 = arith.constant 0 : index
    %c0_219 = arith.constant 0 : index
    %640 = vector.load %arg19[%c0_218, %c0_219] : memref<2x16xf32, #tpu.memory_space<vmem>>, vector<2x16xf32>
    tpu.vector_store %arg19[%c0_218, %c0_219], %639 {strides = array<i32>} : memref<2x16xf32, #tpu.memory_space<vmem>>, vector<2x16xf32>,
    %cst_220 = arith.constant dense<0.000000e+00> : vector<2x8xf32>
    %641 = tpu.matmul %639, %13, %cst_220 {dimension_numbers = #tpu.dot_dimension_numbers<[1], [0], [0], [1], [0, 0, 1, 1], [], []>} : vector<2x16xf32>, vector<16x8xf32>, vector<2x8xf32> -> vector<2x8xf32>
    %642 = vector.broadcast %14 : vector<1x8xf32> to vector<2x8xf32>
    %643 = arith.addf %641, %642 : vector<2x8xf32>
    %c0_221 = arith.constant 0 : index
    %c0_222 = arith.constant 0 : index
    %c0_223 = arith.constant 0 : index
    %644 = vector.load %arg16[%c0_221, %c0_222, %c0_223] : memref<8x2x8xf32, #tpu.memory_space<vmem>>, vector<1x2x8xf32>
    %645 = vector.shape_cast %644 : vector<1x2x8xf32> to vector<2x8xf32>
    %646 = vector.shape_cast %643 : vector<2x8xf32> to vector<1x2x8xf32>
    tpu.vector_store %arg16[%c0_221, %c0_222, %c0_223], %646 {strides = array<i32>} : memref<8x2x8xf32, #tpu.memory_space<vmem>>, vector<1x2x8xf32>,
    %c0_i32_224 = arith.constant 0 : i32
    %647 = arith.cmpi eq, %arg0, %c0_i32_224 : i32
    %648 = arith.extui %647 : i1 to i32
    %c0_i32_225 = arith.constant 0 : i32
    %649 = arith.cmpi ne, %648, %c0_i32_225 : i32
    scf.if %649 {
      %c0_226 = arith.constant 0 : index
      %c0_227 = arith.constant 0 : index
      %650 = vector.load %arg19[%c0_226, %c0_227] : memref<2x16xf32, #tpu.memory_space<vmem>>, vector<2x16xf32>
      %cst_228 = arith.constant dense<0.000000e+00> : vector<2x8xf32>
      %651 = tpu.matmul %650, %13, %cst_228 {dimension_numbers = #tpu.dot_dimension_numbers<[1], [0], [0], [1], [0, 0, 1, 1], [], []>} : vector<2x16xf32>, vector<16x8xf32>, vector<2x8xf32> -> vector<2x8xf32>
      %652 = vector.broadcast %14 : vector<1x8xf32> to vector<2x8xf32>
      %653 = arith.addf %651, %652 : vector<2x8xf32>
      %c0_229 = arith.constant 0 : index
      %c0_230 = arith.constant 0 : index
      %654 = vector.load %arg14[%c0_229, %c0_230] : memref<8x8xf32, #tpu.memory_space<vmem>>, vector<8x8xf32>
      %cst_231 = arith.constant dense<0.000000e+00> : vector<2x8xf32>
      %655 = tpu.matmul %653, %654, %cst_231 {dimension_numbers = #tpu.dot_dimension_numbers<[1], [0], [0], [1], [0, 0, 1, 1], [], []>} : vector<2x8xf32>, vector<8x8xf32>, vector<2x8xf32> -> vector<2x8xf32>
      %c0_232 = arith.constant 0 : index
      %c0_233 = arith.constant 0 : index
      %656 = vector.load %arg15[%c0_232, %c0_233] : memref<1x8xf32, #tpu.memory_space<vmem>>, vector<1x8xf32>
      %657 = vector.broadcast %656 : vector<1x8xf32> to vector<2x8xf32>
      %658 = arith.addf %655, %657 : vector<2x8xf32>
      %c0_234 = arith.constant 0 : index
      %c0_235 = arith.constant 0 : index
      %659 = vector.load %arg17[%c0_234, %c0_235] : memref<2x8xf32, #tpu.memory_space<vmem>>, vector<2x8xf32>
      tpu.vector_store %arg17[%c0_234, %c0_235], %658 {strides = array<i32>} : memref<2x8xf32, #tpu.memory_space<vmem>>, vector<2x8xf32>,
    } else {
    }
    return
  }
  func.func @transform_0(%arg0: i32) -> (i32, i32, i32) {
    %c0_i32 = arith.constant 0 : i32
    %0 = arith.subi %c0_i32, %arg0 : i32
    %c0_i32_0 = arith.constant 0 : i32
    %c0_i32_1 = arith.constant 0 : i32
    %c0_i32_2 = arith.constant 0 : i32
    return %0, %c0_i32_0, %c0_i32_1 : i32, i32, i32
  }
  func.func @transform_1(%arg0: i32) -> (i32, i32) {
    %c0_i32 = arith.constant 0 : i32
    %c0_i32_0 = arith.constant 0 : i32
    %c0_i32_1 = arith.constant 0 : i32
    return %c0_i32, %c0_i32_0 : i32, i32
  }
  func.func @transform_2(%arg0: i32) -> (i32, i32) {
    %c0_i32 = arith.constant 0 : i32
    %c0_i32_0 = arith.constant 0 : i32
    %c0_i32_1 = arith.constant 0 : i32
    return %c0_i32, %c0_i32_0 : i32, i32
  }
  func.func @transform_3(%arg0: i32) -> (i32, i32) {
    %c0_i32 = arith.constant 0 : i32
    %c0_i32_0 = arith.constant 0 : i32
    %c0_i32_1 = arith.constant 0 : i32
    return %c0_i32, %c0_i32_0 : i32, i32
  }
  func.func @transform_4(%arg0: i32) -> (i32, i32) {
    %c0_i32 = arith.constant 0 : i32
    %c0_i32_0 = arith.constant 0 : i32
    %c0_i32_1 = arith.constant 0 : i32
    return %c0_i32, %c0_i32_0 : i32, i32
  }
  func.func @transform_5(%arg0: i32) -> (i32, i32) {
    %c0_i32 = arith.constant 0 : i32
    %c0_i32_0 = arith.constant 0 : i32
    %c0_i32_1 = arith.constant 0 : i32
    return %c0_i32, %c0_i32_0 : i32, i32
  }
  func.func @transform_6(%arg0: i32) -> (i32, i32) {
    %c0_i32 = arith.constant 0 : i32
    %c0_i32_0 = arith.constant 0 : i32
    %c0_i32_1 = arith.constant 0 : i32
    return %c0_i32, %c0_i32_0 : i32, i32
  }
  func.func @transform_7(%arg0: i32) -> (i32, i32) {
    %c0_i32 = arith.constant 0 : i32
    %c0_i32_0 = arith.constant 0 : i32
    %c0_i32_1 = arith.constant 0 : i32
    return %c0_i32, %c0_i32_0 : i32, i32
  }
  func.func @transform_8(%arg0: i32) -> (i32, i32) {
    %c0_i32 = arith.constant 0 : i32
    %c0_i32_0 = arith.constant 0 : i32
    %c0_i32_1 = arith.constant 0 : i32
    return %c0_i32, %c0_i32_0 : i32, i32
  }
  func.func @transform_9(%arg0: i32) -> (i32, i32) {
    %c0_i32 = arith.constant 0 : i32
    %c0_i32_0 = arith.constant 0 : i32
    %c0_i32_1 = arith.constant 0 : i32
    return %c0_i32, %c0_i32_0 : i32, i32
  }
  func.func @transform_10(%arg0: i32) -> (i32, i32) {
    %c0_i32 = arith.constant 0 : i32
    %c0_i32_0 = arith.constant 0 : i32
    %c0_i32_1 = arith.constant 0 : i32
    return %c0_i32, %c0_i32_0 : i32, i32
  }
  func.func @transform_11(%arg0: i32) -> (i32, i32) {
    %c0_i32 = arith.constant 0 : i32
    %c0_i32_0 = arith.constant 0 : i32
    %c0_i32_1 = arith.constant 0 : i32
    return %c0_i32, %c0_i32_0 : i32, i32
  }
  func.func @transform_12(%arg0: i32) -> (i32, i32) {
    %c0_i32 = arith.constant 0 : i32
    %c0_i32_0 = arith.constant 0 : i32
    %c0_i32_1 = arith.constant 0 : i32
    return %c0_i32, %c0_i32_0 : i32, i32
  }
  func.func @transform_13(%arg0: i32) -> (i32, i32) {
    %c0_i32 = arith.constant 0 : i32
    %c0_i32_0 = arith.constant 0 : i32
    %c0_i32_1 = arith.constant 0 : i32
    return %c0_i32, %c0_i32_0 : i32, i32
  }
  func.func @transform_14(%arg0: i32) -> (i32, i32) {
    %c0_i32 = arith.constant 0 : i32
    %c0_i32_0 = arith.constant 0 : i32
    %c0_i32_1 = arith.constant 0 : i32
    return %c0_i32, %c0_i32_0 : i32, i32
  }
  func.func @transform_15(%arg0: i32) -> (i32, i32, i32) {
    %c0_i32 = arith.constant 0 : i32
    %0 = arith.subi %c0_i32, %arg0 : i32
    %c0_i32_0 = arith.constant 0 : i32
    %c0_i32_1 = arith.constant 0 : i32
    %c0_i32_2 = arith.constant 0 : i32
    return %0, %c0_i32_0, %c0_i32_1 : i32, i32, i32
  }
  func.func @transform_16(%arg0: i32) -> (i32, i32) {
    %c0_i32 = arith.constant 0 : i32
    %c0_i32_0 = arith.constant 0 : i32
    %c0_i32_1 = arith.constant 0 : i32
    return %c0_i32, %c0_i32_0 : i32, i32
  }
}

</mosaic_0001>

<bundles_post_ra>
// kernel: tpu_custom_call.1
= control target key start
LH: loop header
LB: loop body
LE: loop exit
PB: predicated region body
PF: predicated region fallthrough
CT: control target
= control target key end

     0   :  { %s6278_s0 = inlined_call_operand.vmem [shape: f32[8,2,4], index: 0, kind: input, shape index: {}]   ;;  %s6279_s1 = inlined_call_operand.hbm [shape: f32[4,48], index: 1, kind: input, shape index: {}]   ;;  %s6280_s2 = inlined_call_operand.vmem [shape: f32[16,48], index: 2, kind: input, shape index: {}]   ;;  %s6281_s3 = inlined_call_operand.hbm [shape: f32[1,48], index: 3, kind: input, shape index: {}]   ;;  %s6282_s4 = inlined_call_operand.hbm [shape: f32[1,48], index: 4, kind: input, shape index: {}]   ;;  %s6283_s5 = inlined_call_operand.hbm [shape: f32[16,32], index: 5, kind: input, shape index: {}]   ;;  %s6284_s6 = inlined_call_operand.hbm [shape: f32[1,32], index: 6, kind: input, shape index: {}]   ;;  %s6285_s7 = inlined_call_operand.vmem [shape: f32[32,48], index: 7, kind: input, shape index: {}]   ;;  %s6286_s8 = inlined_call_operand.hbm [shape: f32[16,48], index: 8, kind: input, shape index: {}]   ;;  %s6287_s9 = inlined_call_operand.hbm [shape: f32[1,48], index: 9, kind: input, shape index: {}]   ;;  %s6288_s10 = inlined_call_operand.vmem [shape: f32[1,48], index: 10, kind: input, shape index: {}]   ;;  %s6289_s11 = inlined_call_operand.vmem [shape: f32[16,8], index: 11, kind: input, shape index: {}]   ;;  %s6290_s12 = inlined_call_operand.vmem [shape: f32[1,8], index: 12, kind: input, shape index: {}]   ;;  %s6291_s13 = inlined_call_operand.vmem [shape: f32[8,8], index: 13, kind: input, shape index: {}]   ;;  %s6292_s14 = inlined_call_operand.vmem [shape: f32[1,8], index: 14, kind: input, shape index: {}]   ;;  %s6293_s15 = inlined_call_operand.hbm [shape: f32[8,2,8], index: 15, kind: output, shape index: {0}]   ;;  %s6294_s16 = inlined_call_operand.hbm [shape: f32[2,8], index: 16, kind: output, shape index: {1}]  }
   0x1   :  { %6296 = sst [smem:[#allocation25_spill]] %s6278_s0 }
   0x2   :  { %22 = vsyncpa [#allocation5], 0 }
   0x3   :  { %23 = vsyncpa [#allocation8], 0 }
   0x4   :  { %24 = vsyncpa [#allocation11], 0 }
   0x5   :  { %25 = vsyncpa [#allocation14], 0 }
   0x6   :  { %26 = vsyncpa [#allocation6], 0 }
   0x7   :  { %27 = vsyncpa [#allocation18], 0  ;;  %s5452_s21 = smov [#allocation7]   ;;  %s5453_s23 = smov [#allocation10]  }
   0x8   :  { %s56_s22 = sshll.u32 %s5452_s21, 4  ;;  %s75_s24 = sshll.u32 %s5453_s23, 4  ;;  %s57_s22 = int_to_ptr.vmem [resolvable:$true] %s56_s22  ;;  %s76_s24 = int_to_ptr.vmem [resolvable:$true] %s75_s24 }
   0x9   :  { %s5268_s25 = scalar_lea.vmem %s57_s22, 16  ;;  %s5272_s26 = scalar_lea.vmem %s57_s22, 32 }
   0xa   :  { %p5269_p0 = scmp.ne.s32.totalorder %s57_s22, %s5268_s25  ;;  %p5273_p1 = scmp.lt.s32.totalorder %s57_s22, %s57_s22 }
   0xb   :  { %p5274_p2 = scmp.lt.s32.totalorder %s5272_s26, %s5268_s25 }
   0xd   :  { %p5275_p3 = por %p5274_p2, %p5273_p1 }
   0xf   :  { %p5276_p4 = pnand %p5275_p3, %p5269_p0 }
  0x11   :  { %5279 = shalt.err (!%p5276_p4)
}
  0x12   :  { %59 = dma.hbm_to_vmem [thread:$0]  %s6281_s3, 16, %s57_s22, [#allocation8]  }
  0x13   :  { %s5288_s29 = scalar_lea.vmem %s76_s24, 256  ;;  %p5293_p6 = scmp.lt.s32.totalorder %s76_s24, %s76_s24 }
  0x14   :  { %p5289_p5 = scmp.ne.s32.totalorder %s76_s24, %s5288_s29  ;;  %p5294_p7 = scmp.lt.s32.totalorder %s5288_s29, %s5288_s29 }
  0x16   :  { %p5295_p8 = por %p5294_p7, %p5293_p6 }
  0x18   :  { %p5296_p9 = pnand %p5295_p8, %p5289_p5 }
  0x1a   :  { %5299 = shalt.err (!%p5296_p9)
}
  0x1b   :  { %s5454_s30 = smov 128   ;;  %s5455_s0 = smov 8  }
  0x1c   :  { %81 = dma.hbm_to_vmem [thread:$0]  %s6283_s5, 256, %s76_s24, [#allocation11], %s5454_s30, %s5454_s30, %s5455_s0  }
  0x1d   :  { %s5456_s19 = smov [#allocation13]   ;;  %s5457_s21 = smov [#allocation4]  }
  0x1e   :  { %s99_s20 = sshll.u32 %s5456_s19, 4  ;;  %s44_s23 = sshll.u32 %s5457_s21, 4  ;;  %s100_s20 = int_to_ptr.vmem [resolvable:$true] %s99_s20  ;;  %s45_s23 = int_to_ptr.vmem [resolvable:$true] %s44_s23 }
  0x1f   :  { %s5308_s3 = scalar_lea.vmem %s100_s20, 256  ;;  %p5313_p11 = scmp.lt.s32.totalorder %s100_s20, %s100_s20 }
  0x20   :  { %p5309_p10 = scmp.ne.s32.totalorder %s100_s20, %s5308_s3  ;;  %p5314_p12 = scmp.lt.s32.totalorder %s5308_s3, %s5308_s3 }
  0x22   :  { %p5315_p13 = por %p5314_p12, %p5313_p11 }
  0x24   :  { %p5316_p0 = pnand %p5315_p13, %p5309_p10 }
  0x26   :  { %5319 = shalt.err (!%p5316_p0)
}
  0x27   :  { %105 = dma.hbm_to_vmem [thread:$0]  %s6286_s8, 256, %s100_s20, [#allocation14], %s5454_s30, %s5454_s30, %s5455_s0  }
  0x28   :  { %s5328_s26 = scalar_lea.vmem %s45_s23, 64  ;;  %p5333_p2 = scmp.lt.s32.totalorder %s45_s23, %s45_s23 }
  0x29   :  { %p5329_p1 = scmp.ne.s32.totalorder %s45_s23, %s5328_s26  ;;  %p5334_p3 = scmp.lt.s32.totalorder %s5328_s26, %s5328_s26 }
  0x2b   :  { %p5335_p4 = por %p5334_p3, %p5333_p2 }
  0x2d   :  { %p5336_p5 = pnand %p5335_p4, %p5329_p1 }
  0x2f   :  { %5339 = shalt.err (!%p5336_p5)
}
  0x30   :  { %47 = dma.hbm_to_vmem [thread:$0]  %s6279_s1, 64, %s45_s23, [#allocation5]  }
  0x31   :  { %s5458_s27 = smov [#allocation9]   ;;  %s5459_s29 = smov [#allocation12]  }
  0x32   :  { %s66_s28 = sshll.u32 %s5458_s27, 4  ;;  %s88_s17 = sshll.u32 %s5459_s29, 4  ;;  %s67_s28 = int_to_ptr.vmem [resolvable:$true] %s66_s28  ;;  %s89_s17 = int_to_ptr.vmem [resolvable:$true] %s88_s17 }
  0x33   :  { %s5348_s18 = scalar_lea.vmem %s67_s28, 16  ;;  %s5352_s8 = scalar_lea.vmem %s67_s28, 32 }
  0x34   :  { %p5349_p6 = scmp.ne.s32.totalorder %s67_s28, %s5348_s18  ;;  %p5353_p7 = scmp.lt.s32.totalorder %s67_s28, %s67_s28 }
  0x35   :  { %p5354_p8 = scmp.lt.s32.totalorder %s5352_s8, %s5348_s18 }
  0x37   :  { %p5355_p9 = por %p5354_p8, %p5353_p7 }
  0x39   :  { %p5356_p10 = pnand %p5355_p9, %p5349_p6 }
  0x3b   :  { %5359 = shalt.err (!%p5356_p10)
}
  0x3c   :  { %69 = dma.hbm_to_vmem [thread:$0]  %s6282_s4, 16, %s67_s28, [#allocation8]  }
  0x3d   :  { %s5368_s19 = scalar_lea.vmem %s89_s17, 16  ;;  %s5372_s1 = scalar_lea.vmem %s89_s17, 32 }
  0x3e   :  { %p5369_p11 = scmp.ne.s32.totalorder %s89_s17, %s5368_s19  ;;  %p5373_p12 = scmp.lt.s32.totalorder %s89_s17, %s89_s17 }
  0x3f   :  { %p5374_p13 = scmp.lt.s32.totalorder %s5372_s1, %s5368_s19 }
  0x41   :  { %p5375_p0 = por %p5374_p13, %p5373_p12 }
  0x43   :  { %p5376_p1 = pnand %p5375_p0, %p5369_p11 }
  0x45   :  { %5379 = shalt.err (!%p5376_p1)
}
  0x46   :  { %91 = dma.hbm_to_vmem [thread:$0]  %s6284_s6, 16, %s89_s17, [#allocation11]  }
  0x47   :  { %s5460_s23 = smov [#allocation15]  }
  0x48   :  { %s112_s3 = sshll.u32 %s5460_s23, 4  ;;  %s113_s3 = int_to_ptr.vmem [resolvable:$true] %s112_s3 }
  0x49   :  { %s5388_s22 = scalar_lea.vmem %s113_s3, 16  ;;  %s5392_s25 = scalar_lea.vmem %s113_s3, 32 }
  0x4a   :  { %p5389_p2 = scmp.ne.s32.totalorder %s113_s3, %s5388_s22  ;;  %p5393_p3 = scmp.lt.s32.totalorder %s113_s3, %s113_s3 }
  0x4b   :  { %p5394_p4 = scmp.lt.s32.totalorder %s5392_s25, %s5388_s22 }
  0x4d   :  { %p5395_p5 = por %p5394_p4, %p5393_p3 }
  0x4f   :  { %p5396_p6 = pnand %p5395_p5, %p5389_p2 }
  0x51   :  { %5399 = shalt.err (!%p5396_p6)
}
  0x52   :  { %115 = dma.hbm_to_vmem [thread:$0]  %s6287_s9, 16, %s113_s3, [#allocation14]  }
  0x53   :  { %5440 = dma.done.wait [#allocation5], 64  }
  0x54   :  { %5441 = vsyncadd [#allocation5], 4294967232 }
  0x55   :  { %5442 = dma.done.wait [#allocation8], 32  }
  0x56   :  { %5443 = vsyncadd [#allocation8], 4294967264 }
  0x57   :  { %5444 = dma.done.wait [#allocation11], 272  }
  0x58   :  { %5445 = vsyncadd [#allocation11], 4294967024 }
  0x59   :  { %5446 = dma.done.wait [#allocation14], 272  }
  0x5a   :  { %5447 = vsyncadd [#allocation14], 4294967024  ;;  %v5461_v0 = vmov 0.0   ;;  %vm167_vm0 = vcmask 123904   ;;  %vm5462_vm1 = vmmov 0   ;;  %vm202_vm2 = vcmask 1043456  }
  0x5b   :  { %4768 = vmatprep.subr.mxu1 %v5461_v0  ;;  %4763 = vmatprep.subr.mxu0 %v5461_v0  ;;  %168 = vst.msk [vmem:[#allocation2] sm:$0x3] %vm167_vm0, %v5461_v0  ;;  %169 = vst.msk [vmem:[#allocation3] sm:$0x3] %vm167_vm0, %v5461_v0  ;;  %vm198_vm3 = vcmask 31744   ;;  %v5589_v1 = vld [vmem:[%s6280_s2 + $0x8] sm:$0xff] }
  0x5c   :  { %4765 = vmatprep.mubr.msk.f32.mxu0 %vm5462_vm1, %v5461_v0  ;;  %4772 = vmatprep.mubr.msk.f32.mxu1 %vm5462_vm1, %v5461_v0  ;;  %v5591_v2 = vld [vmem:[#allocation4] sm:$0xf]  ;;  %s6297_s29 = sld [smem:[#allocation25_spill]]  ;;  %vm282_vm4 = vcmask 130048   ;;  %v5614_v7 = vld [vmem:[#allocation9] ss:$0 sm:$0xff] }
  0x5d   :  { %v5596_v3 = vld [vmem:[%s6280_s2] sm:$0xff]  ;;  %4769 = vmatpush3.msra.mxu1 %v5589_v1  ;;  %4764 = vmatpush3.msk.msra.mxu0 %vm202_vm2, %v5591_v2  ;;  %s5463_s17 = smov 96   ;;  %v5618_v12 = vld [vmem:[#allocation7] ss:$0 sm:$0xff]  ;;  %s5464_s18 = smov 32   ;;  %v5622_v23 = vld [vmem:[#allocation10 + $0x8] sm:$0xff] }
  0x5e   :  { %4770 = vmatprep.subr.mxu1 %v5461_v0  ;;  %4775 = vmatprep.subr.mxu0 %v5461_v0  ;;  %v5624_v24 = vld [vmem:[#allocation10] sm:$0xff]  ;;  %s5465_s8 = smov 112   ;;  %s5466_s30 = smov 16   ;;  %v5635_v27 = vld [vmem:[%s6285_s7 + $0x18] sm:$0xff]  ;;  %v5672_v39 = vld [vmem:[%s6285_s7] sm:$0xff]  ;;  %vm476_vm5 = vcmask 261120  }
  0x5f   :  { %4771 = vmatpush3.msra.mxu1 %v5596_v3  ;;  %v5640_v28 = vld [vmem:[%s6285_s7 + $0x10] sm:$0xff]  ;;  %v5647_v34 = vld [vmem:[#allocation13 + $0x8] sm:$0xff]  ;;  %v5651_v36 = vld [vmem:[#allocation13] sm:$0xff]  ;;  %vm742_vm6 = vcmask 58368   ;;  %vm4397_vm7 = vcmask 64512  }
  0x60   :  { %4782 = vmatprep.subr.mxu1 %v5461_v0  ;;  %v5665_v38 = vld [vmem:[%s6285_s7 + $0x8] sm:$0xff]  ;;  %v5676_v40 = vld [vmem:[#allocation12] ss:$0 sm:$0xff]  ;;  %v5682_v44 = vld [vmem:[%s6288_s10] ss:$0 sm:$0xff] }
  0x61   :  { %v5692_v48 = vld [vmem:[#allocation15] ss:$0 sm:$0xff]  ;;  %v5705_v62 = vld [vmem:[%s6289_s11] sm:$0xff] }
  0x62   :  { %v4518_v4 = vld [vmem:[%s6297_s29 + $0xe] sm:$0x3]  ;;  %v191_v5 = vld [vmem:[#allocation2] sm:$0x3]  ;;  %v469_v37 = vld [vmem:[#allocation3] sm:$0x3] }
  0x63   :  { %4766 = vmatmul.mubr.msk.f32.vlgmr.msra.gmra.mxu0 %vm198_vm3, %v4518_v4  ;;  %4773 = vmatmul.mubr.msk.f32.vlgmr.msra.gmra.mxu1 %vm282_vm4, %v191_v5  ;;  %v5700_v61 = vld [vmem:[%s6289_s11 + $0x8] sm:$0xff] }
  0x64   :  { %4779 = vmatprep.mubr.msk.f32.mxu0 %vm5462_vm1, %v5461_v0  ;;  %4790 = vmatprep.mubr.msk.f32.mxu1 %vm5462_vm1, %v5461_v0  ;;  %v4534_v4 = vld [vmem:[%s6297_s29 + $0xc] sm:$0x3] }
  0x65   :  { %4776 = vmatpush3.msra.mxu0 %v5622_v23  ;;  %4783 = vmatpush3.msra.mxu1 %v5635_v27 }
  0x66   :  { %4777 = vmatprep.subr.mxu0 %v5461_v0  ;;  %4784 = vmatprep.subr.mxu1 %v5461_v0 }
  0x67   :  { %4778 = vmatpush3.msra.mxu0 %v5624_v24  ;;  %4785 = vmatpush3.msra.mxu1 %v5640_v28 }
  0x68   :  { %4793 = vmatprep.subr.mxu0 %v5461_v0  ;;  %4786 = vmatprep.subr.mxu1 %v5461_v0 }
  0x69   :  { %4787 = vmatpush3.msra.mxu1 %v5665_v38 }
  0x6a   :  { %4788 = vmatprep.subr.mxu1 %v5461_v0 }
  0x6b   :  { %4789 = vmatpush3.msra.mxu1 %v5672_v39 }
  0x6c   :  { %4807 = vmatprep.subr.mxu1 %v5461_v0 }
 0x123   :  { %v272_v6 = vpop.f32.mrf.mxu0  ;;  %v352_v8 = vpop.f32.mrf.mxu1 }
 0x124   :  { %v353_v10 = vadd.f32 %v5614_v7, %v352_v8  ;;  %v273_v13 = vadd.f32 %v5618_v12, %v272_v6 }
 0x125   :  { %v4767_v9 = vpop.f32.mrf.mxu0  ;;  %v4774_v11 = vpop.f32.mrf.mxu1 }
 0x126   :  { %364 = vrot.lane.b32.xlu0 %v353_v10, %s5463_s17  ;;  %v356_v14 = vadd.f32 %v353_v10, %v273_v13 }
 0x128   :  { %v4524_v15 = vmul.f32 -1.442695, %v356_v14 }
 0x12a   :  { %5145 = vpow2.f32 %v4524_v15 }
 0x137   :  { %v5146_v16 = vpop.eup %5145 }
 0x138   :  { %v360_v17 = vadd.f32 1.0, %v5146_v16 }
 0x13a   :  { %5147 = vrcp.f32 %v360_v17  ;;  %v5745_v17 = vld [vmem:[%s6290_s12] ss:$0 sm:$0xff] }
 0x147   :  { %v5148_v18 = vpop.eup %5147 }
 0x148   :  { %v374_v29 = vsub.f32 1.0, %v5148_v18 }
 0x198   :  { %v365_v19 = vpop.permute.xlu0 %364 }
 0x199   :  { %v367_v20 = vmul.f32 %v5148_v18, %v365_v19 }
 0x19b   :  { %369 = vrot.lane.b32.xlu0 %v367_v20, %s5464_s18 }
 0x20d   :  { %v370_v21 = vpop.permute.xlu0 %369 }
 0x20e   :  { %v372_v22 = vadd.f32 %v370_v21, %v273_v13 }
 0x210   :  { %5149 = vtanh.f32 %v372_v22 }
 0x21d   :  { %v5150_v25 = vpop.eup %5149 }
 0x21e   :  { %376 = vrot.lane.b32.xlu1 %v5150_v25, %s5465_s8 }
 0x222   :  { %380 = vrot.lane.b32.xlu1 %v191_v5, %s5466_s30 }
 0x290   :  { %v377_v26 = vpop.permute.xlu1 %376 }
 0x291   :  { %v379_v31 = vmul.f32 %v377_v26, %v374_v29 }
 0x294   :  { %v381_v30 = vpop.permute.xlu1 %380 }
 0x295   :  { %v383_v32 = vmul.f32 %v5148_v18, %v381_v30 }
 0x297   :  { %v384_v33 = vadd.f32 %v383_v32, %v379_v31 }
 0x299   :  { %386 = vrot.lane.b32.xlu0 %v384_v33, %s5465_s8 }
 0x30b   :  { %v387_v35 = vpop.permute.xlu0 %386 }
 0x30c   :  { %390 = vst.msk [vmem:[#allocation2] sm:$0x3] %vm167_vm0, %v387_v35  ;;  %4780 = vmatmul.mubr.msk.f32.vlgmr.msra.gmra.mxu0 %vm282_vm4, %v387_v35 }
 0x30d   :  { %4794 = vmatpush3.msra.mxu0 %v5647_v34  ;;  %4797 = vmatprep.mubr.msk.f32.mxu0 %vm5462_vm1, %v5461_v0 }
 0x30e   :  { %4795 = vmatprep.subr.mxu0 %v5461_v0 }
 0x30f   :  { %4796 = vmatpush3.msra.mxu0 %v5651_v36 }
 0x310   :  { %4798 = vmatmul.mubr.msk.f32.vlgmr.msra.gmra.mxu0 %vm282_vm4, %v469_v37  ;;  %4800 = vmatprep.subr.mxu0 %v5461_v0 }
 0x311   :  { %4804 = vmatprep.mubr.msk.f32.mxu0 %vm5462_vm1, %v5461_v0  ;;  %4801 = vmatpush3.msra.mxu0 %v5700_v61 }
 0x312   :  { %4802 = vmatprep.subr.mxu0 %v5461_v0 }
 0x313   :  { %4803 = vmatpush3.msra.mxu0 %v5705_v62  ;;  %v746_v14 = vld [vmem:[#allocation2] sm:$0x3] }
 0x314   :  { %4812 = vmatprep.subr.mxu0 %v5461_v0 }
 0x3cc   :  { %v465_v41 = vpop.f32.mrf.mxu0 }
 0x3cd   :  { %v466_v42 = vadd.f32 %v5676_v40, %v465_v41 }
 0x3ce   :  { %v4781_v43 = vpop.f32.mrf.mxu0 }
 0x3cf   :  { %4791 = vmatmul.mubr.msk.f32.vlgmr.msra.gmra.mxu1 %vm476_vm5, %v466_v42 }
 0x3d0   :  { %v625_v45 = vpop.f32.mrf.mxu0  ;;  %4808 = vmatpush3.msk.msra.mxu1 %vm202_vm2, %v5591_v2  ;;  %4809 = vmatprep.mubr.msk.f32.mxu1 %vm5462_vm1, %v5461_v0 }
 0x3d1   :  { %v626_v46 = vadd.f32 %v5682_v44, %v625_v45  ;;  %4819 = vmatprep.subr.mxu1 %v5461_v0 }
 0x3d2   :  { %v4799_v47 = vpop.f32.mrf.mxu0 }
 0x3d3   :  { %637 = vrot.lane.b32.xlu1 %v626_v46, %s5463_s17  ;;  %4810 = vmatmul.mubr.msk.f32.vlgmr.msra.gmra.mxu1 %vm198_vm3, %v4534_v4 }
 0x3d4   :  { %4820 = vmatpush3.msra.mxu1 %v5622_v23  ;;  %4823 = vmatprep.mubr.msk.f32.mxu1 %vm5462_vm1, %v5461_v0 }
 0x3d5   :  { %4821 = vmatprep.subr.mxu1 %v5461_v0 }
 0x3d6   :  { %4822 = vmatpush3.msra.mxu1 %v5624_v24 }
 0x3d7   :  { %4837 = vmatprep.subr.mxu1 %v5461_v0 }
 0x445   :  { %v638_v56 = vpop.permute.xlu1 %637 }
 0x48f   :  { %v546_v49 = vpop.f32.mrf.mxu1 }
 0x490   :  { %v547_v50 = vadd.f32 %v5692_v48, %v546_v49 }
 0x491   :  { %v4792_v51 = vpop.f32.mrf.mxu1 }
 0x492   :  { %v629_v52 = vadd.f32 %v626_v46, %v547_v50 }
 0x493   :  { %v816_v15 = vpop.f32.mrf.mxu1 }
 0x494   :  { %v4531_v53 = vmul.f32 -1.442695, %v629_v52  ;;  %v817_v26 = vadd.f32 %v5618_v12, %v816_v15 }
 0x495   :  { %v4811_v16 = vpop.f32.mrf.mxu1 }
 0x496   :  { %5151 = vpow2.f32 %v4531_v53 }
 0x4a3   :  { %v5152_v54 = vpop.eup %5151 }
 0x4a4   :  { %v633_v55 = vadd.f32 1.0, %v5152_v54 }
 0x4a6   :  { %5153 = vrcp.f32 %v633_v55 }
 0x4b3   :  { %v5154_v57 = vpop.eup %5153 }
 0x4b4   :  { %v640_v58 = vmul.f32 %v5154_v57, %v638_v56  ;;  %v647_v6 = vsub.f32 1.0, %v5154_v57 }
 0x4b6   :  { %642 = vrot.lane.b32.xlu0 %v640_v58, %s5464_s18 }
 0x4ba   :  { %653 = vrot.lane.b32.xlu0 %v469_v37, %s5466_s30 }
 0x528   :  { %v643_v59 = vpop.permute.xlu0 %642 }
 0x529   :  { %v645_v60 = vadd.f32 %v643_v59, %v547_v50 }
 0x52b   :  { %5155 = vtanh.f32 %v645_v60 }
 0x52c   :  { %v654_v5 = vpop.permute.xlu0 %653 }
 0x52d   :  { %v656_v9 = vmul.f32 %v5154_v57, %v654_v5 }
 0x538   :  { %v5156_v63 = vpop.eup %5155 }
 0x539   :  { %649 = vrot.lane.b32.xlu1 %v5156_v63, %s5465_s8 }
 0x5ab   :  { %v650_v8 = vpop.permute.xlu1 %649 }
 0x5ac   :  { %v652_v10 = vmul.f32 %v650_v8, %v647_v6 }
 0x5ae   :  { %v657_v11 = vadd.f32 %v656_v9, %v652_v10 }
 0x5b0   :  { %659 = vrot.lane.b32.xlu1 %v657_v11, %s5465_s8 }
 0x622   :  { %v660_v13 = vpop.permute.xlu1 %659 }
 0x623   :  { %662 = vst.msk [vmem:[#allocation3] sm:$0x3] %vm167_vm0, %v660_v13  ;;  %4805 = vmatmul.mubr.msk.f32.vlgmr.msra.gmra.mxu0 %vm282_vm4, %v660_v13 }
 0x624   :  { %4813 = vmatpush3.msra.mxu0 %v5589_v1  ;;  %4816 = vmatprep.mubr.msk.f32.mxu0 %vm5462_vm1, %v5461_v0 }
 0x625   :  { %4814 = vmatprep.subr.mxu0 %v5461_v0 }
 0x626   :  { %4815 = vmatpush3.msra.mxu0 %v5596_v3 }
 0x627   :  { %4817 = vmatmul.mubr.msk.f32.vlgmr.msra.gmra.mxu0 %vm282_vm4, %v746_v14  ;;  %4826 = vmatprep.subr.mxu0 %v5461_v0 }
 0x628   :  { %4827 = vmatpush3.msra.mxu0 %v5635_v27  ;;  %4834 = vmatprep.mubr.msk.f32.mxu0 %vm5462_vm1, %v5461_v0 }
 0x629   :  { %4828 = vmatprep.subr.mxu0 %v5461_v0 }
 0x62a   :  { %4829 = vmatpush3.msra.mxu0 %v5640_v28  ;;  %v999_v53 = vld [vmem:[#allocation3] sm:$0x3] }
 0x62b   :  { %4830 = vmatprep.subr.mxu0 %v5461_v0 }
 0x62c   :  { %4831 = vmatpush3.msra.mxu0 %v5665_v38 }
 0x62d   :  { %4832 = vmatprep.subr.mxu0 %v5461_v0 }
 0x62e   :  { %4833 = vmatpush3.msra.mxu0 %v5672_v39 }
 0x62f   :  { %4851 = vmatprep.subr.mxu0 %v5461_v0 }
 0x6e3   :  { %v737_v18 = vpop.f32.mrf.mxu0 }
 0x6e4   :  { %v738_v19 = vadd.f32 %v5745_v17, %v737_v18  ;;  %v4544_v18 = vld [vmem:[%s6297_s29 + $0xa] sm:$0x3] }
 0x6e5   :  { %v4806_v20 = vpop.f32.mrf.mxu0 }
 0x6e6   :  { %743 = vst.msk [vmem:[#allocation16 + $0xe] sm:$0x3] %vm742_vm6, %v738_v19 }
 0x6e7   :  { %v889_v21 = vpop.f32.mrf.mxu0 }
 0x6e8   :  { %v890_v22 = vadd.f32 %v5614_v7, %v889_v21 }
 0x6e9   :  { %v4818_v25 = vpop.f32.mrf.mxu0 }
 0x6ea   :  { %901 = vrot.lane.b32.xlu0 %v890_v22, %s5463_s17  ;;  %v893_v29 = vadd.f32 %v890_v22, %v817_v26 }
 0x6ec   :  { %v4538_v30 = vmul.f32 -1.442695, %v893_v29 }
 0x6ee   :  { %5157 = vpow2.f32 %v4538_v30 }
 0x6fb   :  { %v5158_v31 = vpop.eup %5157 }
 0x6fc   :  { %v897_v32 = vadd.f32 1.0, %v5158_v31 }
 0x6fe   :  { %5159 = vrcp.f32 %v897_v32 }
 0x70b   :  { %v5160_v33 = vpop.eup %5159 }
 0x70c   :  { %v911_v46 = vsub.f32 1.0, %v5160_v33 }
 0x75c   :  { %v902_v35 = vpop.permute.xlu0 %901 }
 0x75d   :  { %v904_v37 = vmul.f32 %v5160_v33, %v902_v35 }
 0x75f   :  { %906 = vrot.lane.b32.xlu1 %v904_v37, %s5464_s18 }
 0x763   :  { %917 = vrot.lane.b32.xlu1 %v746_v14, %s5466_s30 }
 0x7d1   :  { %v907_v41 = vpop.permute.xlu1 %906 }
 0x7d2   :  { %v909_v42 = vadd.f32 %v907_v41, %v817_v26 }
 0x7d4   :  { %5161 = vtanh.f32 %v909_v42 }
 0x7d5   :  { %v918_v45 = vpop.permute.xlu1 %917 }
 0x7d6   :  { %v920_v49 = vmul.f32 %v5160_v33, %v918_v45 }
 0x7e1   :  { %v5162_v43 = vpop.eup %5161 }
 0x7e2   :  { %913 = vrot.lane.b32.xlu0 %v5162_v43, %s5465_s8 }
 0x854   :  { %v914_v47 = vpop.permute.xlu0 %913 }
 0x855   :  { %v916_v50 = vmul.f32 %v914_v47, %v911_v46 }
 0x857   :  { %v921_v51 = vadd.f32 %v920_v49, %v916_v50 }
 0x859   :  { %923 = vrot.lane.b32.xlu0 %v921_v51, %s5465_s8 }
 0x8cb   :  { %v924_v52 = vpop.permute.xlu0 %923 }
 0x8cc   :  { %926 = vst.msk [vmem:[#allocation2] sm:$0x3] %vm167_vm0, %v924_v52  ;;  %4824 = vmatmul.mubr.msk.f32.vlgmr.msra.gmra.mxu1 %vm282_vm4, %v924_v52 }
 0x8cd   :  { %4838 = vmatpush3.msra.mxu1 %v5647_v34  ;;  %4841 = vmatprep.mubr.msk.f32.mxu1 %vm5462_vm1, %v5461_v0 }
 0x8ce   :  { %4839 = vmatprep.subr.mxu1 %v5461_v0 }
 0x8cf   :  { %4840 = vmatpush3.msra.mxu1 %v5651_v36 }
 0x8d0   :  { %4842 = vmatmul.mubr.msk.f32.vlgmr.msra.gmra.mxu1 %vm282_vm4, %v999_v53  ;;  %4844 = vmatprep.subr.mxu1 %v5461_v0 }
 0x8d1   :  { %4845 = vmatpush3.msra.mxu1 %v5700_v61  ;;  %4848 = vmatprep.mubr.msk.f32.mxu1 %vm5462_vm1, %v5461_v0 }
 0x8d2   :  { %4846 = vmatprep.subr.mxu1 %v5461_v0 }
 0x8d3   :  { %4847 = vmatpush3.msra.mxu1 %v5705_v62  ;;  %v1256_v30 = vld [vmem:[#allocation2] sm:$0x3] }
 0x8d4   :  { %4856 = vmatprep.subr.mxu1 %v5461_v0 }
 0x98c   :  { %v995_v54 = vpop.f32.mrf.mxu1 }
 0x98d   :  { %v996_v55 = vadd.f32 %v5676_v40, %v995_v54 }
 0x98e   :  { %v4825_v56 = vpop.f32.mrf.mxu1 }
 0x98f   :  { %4835 = vmatmul.mubr.msk.f32.vlgmr.msra.gmra.mxu0 %vm476_vm5, %v996_v55 }
 0x990   :  { %v1142_v57 = vpop.f32.mrf.mxu1  ;;  %4852 = vmatpush3.msk.msra.mxu0 %vm202_vm2, %v5591_v2  ;;  %4853 = vmatprep.mubr.msk.f32.mxu0 %vm5462_vm1, %v5461_v0 }
 0x991   :  { %v1143_v58 = vadd.f32 %v5682_v44, %v1142_v57  ;;  %4863 = vmatprep.subr.mxu0 %v5461_v0 }
 0x992   :  { %v4843_v59 = vpop.f32.mrf.mxu1 }
 0x993   :  { %1154 = vrot.lane.b32.xlu1 %v1143_v58, %s5463_s17  ;;  %4854 = vmatmul.mubr.msk.f32.vlgmr.msra.gmra.mxu0 %vm198_vm3, %v4544_v18 }
 0x994   :  { %4864 = vmatpush3.msra.mxu0 %v5622_v23  ;;  %4867 = vmatprep.mubr.msk.f32.mxu0 %vm5462_vm1, %v5461_v0 }
 0x995   :  { %4865 = vmatprep.subr.mxu0 %v5461_v0 }
 0x996   :  { %4866 = vmatpush3.msra.mxu0 %v5624_v24 }
 0x997   :  { %4881 = vmatprep.subr.mxu0 %v5461_v0 }
 0xa05   :  { %v1155_v11 = vpop.permute.xlu1 %1154 }
 0xa4f   :  { %v1069_v60 = vpop.f32.mrf.mxu0 }
 0xa50   :  { %v1070_v63 = vadd.f32 %v5692_v48, %v1069_v60 }
 0xa51   :  { %v4836_v4 = vpop.f32.mrf.mxu0 }
 0xa52   :  { %v1146_v5 = vadd.f32 %v1143_v58, %v1070_v63 }
 0xa53   :  { %v1326_v31 = vpop.f32.mrf.mxu0 }
 0xa54   :  { %v4542_v6 = vmul.f32 -1.442695, %v1146_v5  ;;  %v1327_v45 = vadd.f32 %v5618_v12, %v1326_v31 }
 0xa55   :  { %v4855_v32 = vpop.f32.mrf.mxu0 }
 0xa56   :  { %5163 = vpow2.f32 %v4542_v6 }
 0xa63   :  { %v5164_v8 = vpop.eup %5163 }
 0xa64   :  { %v1150_v9 = vadd.f32 1.0, %v5164_v8 }
 0xa66   :  { %5165 = vrcp.f32 %v1150_v9 }
 0xa73   :  { %v5166_v10 = vpop.eup %5165 }
 0xa74   :  { %v1157_v13 = vmul.f32 %v5166_v10, %v1155_v11  ;;  %v1164_v20 = vsub.f32 1.0, %v5166_v10 }
 0xa76   :  { %1159 = vrot.lane.b32.xlu0 %v1157_v13, %s5464_s18 }
 0xa7a   :  { %1170 = vrot.lane.b32.xlu0 %v999_v53, %s5466_s30 }
 0xae8   :  { %v1160_v14 = vpop.permute.xlu0 %1159 }
 0xae9   :  { %v1162_v15 = vadd.f32 %v1160_v14, %v1070_v63 }
 0xaeb   :  { %5167 = vtanh.f32 %v1162_v15 }
 0xaec   :  { %v1171_v19 = vpop.permute.xlu0 %1170 }
 0xaed   :  { %v1173_v22 = vmul.f32 %v5166_v10, %v1171_v19 }
 0xaf8   :  { %v5168_v16 = vpop.eup %5167 }
 0xaf9   :  { %1166 = vrot.lane.b32.xlu1 %v5168_v16, %s5465_s8 }
 0xb6b   :  { %v1167_v21 = vpop.permute.xlu1 %1166 }
 0xb6c   :  { %v1169_v25 = vmul.f32 %v1167_v21, %v1164_v20 }
 0xb6e   :  { %v1174_v26 = vadd.f32 %v1173_v22, %v1169_v25 }
 0xb70   :  { %1176 = vrot.lane.b32.xlu1 %v1174_v26, %s5465_s8 }
 0xbe2   :  { %v1177_v29 = vpop.permute.xlu1 %1176 }
 0xbe3   :  { %1179 = vst.msk [vmem:[#allocation3] sm:$0x3] %vm167_vm0, %v1177_v29  ;;  %4849 = vmatmul.mubr.msk.f32.vlgmr.msra.gmra.mxu1 %vm282_vm4, %v1177_v29 }
 0xbe4   :  { %4857 = vmatpush3.msra.mxu1 %v5589_v1  ;;  %4860 = vmatprep.mubr.msk.f32.mxu1 %vm5462_vm1, %v5461_v0 }
 0xbe5   :  { %4858 = vmatprep.subr.mxu1 %v5461_v0 }
 0xbe6   :  { %4859 = vmatpush3.msra.mxu1 %v5596_v3 }
 0xbe7   :  { %4861 = vmatmul.mubr.msk.f32.vlgmr.msra.gmra.mxu1 %vm282_vm4, %v1256_v30  ;;  %4870 = vmatprep.subr.mxu1 %v5461_v0 }
 0xbe8   :  { %4871 = vmatpush3.msra.mxu1 %v5635_v27  ;;  %4878 = vmatprep.mubr.msk.f32.mxu1 %vm5462_vm1, %v5461_v0 }
 0xbe9   :  { %4872 = vmatprep.subr.mxu1 %v5461_v0 }
 0xbea   :  { %4873 = vmatpush3.msra.mxu1 %v5640_v28  ;;  %v1509_v6 = vld [vmem:[#allocation3] sm:$0x3] }
 0xbeb   :  { %4874 = vmatprep.subr.mxu1 %v5461_v0 }
 0xbec   :  { %4875 = vmatpush3.msra.mxu1 %v5665_v38 }
 0xbed   :  { %4876 = vmatprep.subr.mxu1 %v5461_v0 }
 0xbee   :  { %4877 = vmatpush3.msra.mxu1 %v5672_v39 }
 0xbef   :  { %4895 = vmatprep.subr.mxu1 %v5461_v0 }
 0xca3   :  { %v1248_v33 = vpop.f32.mrf.mxu1 }
 0xca4   :  { %v1249_v35 = vadd.f32 %v5745_v17, %v1248_v33  ;;  %v4554_v33 = vld [vmem:[%s6297_s29 + $0x8] sm:$0x3] }
 0xca5   :  { %v4850_v37 = vpop.f32.mrf.mxu1 }
 0xca6   :  { %1253 = vst.msk [vmem:[#allocation16 + $0xc] sm:$0x3] %vm742_vm6, %v1249_v35 }
 0xca7   :  { %v1399_v41 = vpop.f32.mrf.mxu1 }
 0xca8   :  { %v1400_v42 = vadd.f32 %v5614_v7, %v1399_v41 }
 0xca9   :  { %v4862_v43 = vpop.f32.mrf.mxu1 }
 0xcaa   :  { %1411 = vrot.lane.b32.xlu0 %v1400_v42, %s5463_s17  ;;  %v1403_v46 = vadd.f32 %v1400_v42, %v1327_v45 }
 0xcac   :  { %v4548_v47 = vmul.f32 -1.442695, %v1403_v46 }
 0xcae   :  { %5169 = vpow2.f32 %v4548_v47 }
 0xcbb   :  { %v5170_v49 = vpop.eup %5169 }
 0xcbc   :  { %v1407_v50 = vadd.f32 1.0, %v5170_v49 }
 0xcbe   :  { %5171 = vrcp.f32 %v1407_v50 }
 0xccb   :  { %v5172_v51 = vpop.eup %5171 }
 0xccc   :  { %v1421_v58 = vsub.f32 1.0, %v5172_v51 }
 0xd1c   :  { %v1412_v52 = vpop.permute.xlu0 %1411 }
 0xd1d   :  { %v1414_v53 = vmul.f32 %v5172_v51, %v1412_v52 }
 0xd1f   :  { %1416 = vrot.lane.b32.xlu1 %v1414_v53, %s5464_s18 }
 0xd23   :  { %1427 = vrot.lane.b32.xlu1 %v1256_v30, %s5466_s30 }
 0xd91   :  { %v1417_v54 = vpop.permute.xlu1 %1416 }
 0xd92   :  { %v1419_v55 = vadd.f32 %v1417_v54, %v1327_v45 }
 0xd94   :  { %5173 = vtanh.f32 %v1419_v55 }
 0xd95   :  { %v1428_v57 = vpop.permute.xlu1 %1427 }
 0xd96   :  { %v1430_v60 = vmul.f32 %v5172_v51, %v1428_v57 }
 0xda1   :  { %v5174_v56 = vpop.eup %5173 }
 0xda2   :  { %1423 = vrot.lane.b32.xlu0 %v5174_v56, %s5465_s8 }
 0xe14   :  { %v1424_v59 = vpop.permute.xlu0 %1423 }
 0xe15   :  { %v1426_v63 = vmul.f32 %v1424_v59, %v1421_v58 }
 0xe17   :  { %v1431_v4 = vadd.f32 %v1430_v60, %v1426_v63 }
 0xe19   :  { %1433 = vrot.lane.b32.xlu0 %v1431_v4, %s5465_s8 }
 0xe8b   :  { %v1434_v5 = vpop.permute.xlu0 %1433 }
 0xe8c   :  { %1436 = vst.msk [vmem:[#allocation2] sm:$0x3] %vm167_vm0, %v1434_v5  ;;  %4868 = vmatmul.mubr.msk.f32.vlgmr.msra.gmra.mxu0 %vm282_vm4, %v1434_v5 }
 0xe8d   :  { %4882 = vmatpush3.msra.mxu0 %v5647_v34  ;;  %4885 = vmatprep.mubr.msk.f32.mxu0 %vm5462_vm1, %v5461_v0 }
 0xe8e   :  { %4883 = vmatprep.subr.mxu0 %v5461_v0 }
 0xe8f   :  { %4884 = vmatpush3.msra.mxu0 %v5651_v36 }
 0xe90   :  { %4886 = vmatmul.mubr.msk.f32.vlgmr.msra.gmra.mxu0 %vm282_vm4, %v1509_v6  ;;  %4888 = vmatprep.subr.mxu0 %v5461_v0 }
 0xe91   :  { %4889 = vmatpush3.msra.mxu0 %v5700_v61  ;;  %4892 = vmatprep.mubr.msk.f32.mxu0 %vm5462_vm1, %v5461_v0 }
 0xe92   :  { %4890 = vmatprep.subr.mxu0 %v5461_v0 }
 0xe93   :  { %4891 = vmatpush3.msra.mxu0 %v5705_v62  ;;  %v1766_v47 = vld [vmem:[#allocation2] sm:$0x3] }
 0xe94   :  { %4900 = vmatprep.subr.mxu0 %v5461_v0 }
 0xf4c   :  { %v1505_v8 = vpop.f32.mrf.mxu0 }
 0xf4d   :  { %v1506_v9 = vadd.f32 %v5676_v40, %v1505_v8 }
 0xf4e   :  { %v4869_v10 = vpop.f32.mrf.mxu0 }
 0xf4f   :  { %4879 = vmatmul.mubr.msk.f32.vlgmr.msra.gmra.mxu1 %vm476_vm5, %v1506_v9 }
 0xf50   :  { %v1652_v11 = vpop.f32.mrf.mxu0  ;;  %4896 = vmatpush3.msk.msra.mxu1 %vm202_vm2, %v5591_v2  ;;  %4897 = vmatprep.mubr.msk.f32.mxu1 %vm5462_vm1, %v5461_v0 }
 0xf51   :  { %v1653_v13 = vadd.f32 %v5682_v44, %v1652_v11  ;;  %4907 = vmatprep.subr.mxu1 %v5461_v0 }
 0xf52   :  { %v4887_v14 = vpop.f32.mrf.mxu0 }
 0xf53   :  { %1664 = vrot.lane.b32.xlu1 %v1653_v13, %s5463_s17  ;;  %4898 = vmatmul.mubr.msk.f32.vlgmr.msra.gmra.mxu1 %vm198_vm3, %v4554_v33 }
 0xf54   :  { %4908 = vmatpush3.msra.mxu1 %v5622_v23  ;;  %4911 = vmatprep.mubr.msk.f32.mxu1 %vm5462_vm1, %v5461_v0 }
 0xf55   :  { %4909 = vmatprep.subr.mxu1 %v5461_v0 }
 0xf56   :  { %4910 = vmatpush3.msra.mxu1 %v5624_v24 }
 0xf57   :  { %4925 = vmatprep.subr.mxu1 %v5461_v0 }
 0xfc5   :  { %v1665_v26 = vpop.permute.xlu1 %1664 }
0x100f   :  { %v1579_v15 = vpop.f32.mrf.mxu1 }
0x1010   :  { %v1580_v16 = vadd.f32 %v5692_v48, %v1579_v15 }
0x1011   :  { %v4880_v18 = vpop.f32.mrf.mxu1 }
0x1012   :  { %v1656_v19 = vadd.f32 %v1653_v13, %v1580_v16 }
0x1013   :  { %v1836_v49 = vpop.f32.mrf.mxu1 }
0x1014   :  { %v4552_v20 = vmul.f32 -1.442695, %v1656_v19  ;;  %v1837_v57 = vadd.f32 %v5618_v12, %v1836_v49 }
0x1015   :  { %v4899_v50 = vpop.f32.mrf.mxu1 }
0x1016   :  { %5175 = vpow2.f32 %v4552_v20  ;;  %v4564_v50 = vld [vmem:[%s6297_s29 + $0x6] sm:$0x3] }
0x1023   :  { %v5176_v21 = vpop.eup %5175 }
0x1024   :  { %v1660_v22 = vadd.f32 1.0, %v5176_v21 }
0x1026   :  { %5177 = vrcp.f32 %v1660_v22 }
0x1033   :  { %v5178_v25 = vpop.eup %5177 }
0x1034   :  { %v1667_v29 = vmul.f32 %v5178_v25, %v1665_v26  ;;  %v1674_v37 = vsub.f32 1.0, %v5178_v25 }
0x1036   :  { %1669 = vrot.lane.b32.xlu0 %v1667_v29, %s5464_s18 }
0x103a   :  { %1680 = vrot.lane.b32.xlu0 %v1509_v6, %s5466_s30 }
0x10a8   :  { %v1670_v30 = vpop.permute.xlu0 %1669 }
0x10a9   :  { %v1672_v31 = vadd.f32 %v1670_v30, %v1580_v16 }
0x10ab   :  { %5179 = vtanh.f32 %v1672_v31 }
0x10ac   :  { %v1681_v35 = vpop.permute.xlu0 %1680 }
0x10ad   :  { %v1683_v42 = vmul.f32 %v5178_v25, %v1681_v35 }
0x10b8   :  { %v5180_v32 = vpop.eup %5179 }
0x10b9   :  { %1676 = vrot.lane.b32.xlu1 %v5180_v32, %s5465_s8 }
0x112b   :  { %v1677_v41 = vpop.permute.xlu1 %1676 }
0x112c   :  { %v1679_v43 = vmul.f32 %v1677_v41, %v1674_v37 }
0x112e   :  { %v1684_v45 = vadd.f32 %v1683_v42, %v1679_v43 }
0x1130   :  { %1686 = vrot.lane.b32.xlu1 %v1684_v45, %s5465_s8 }
0x11a2   :  { %v1687_v46 = vpop.permute.xlu1 %1686 }
0x11a3   :  { %1689 = vst.msk [vmem:[#allocation3] sm:$0x3] %vm167_vm0, %v1687_v46  ;;  %4893 = vmatmul.mubr.msk.f32.vlgmr.msra.gmra.mxu0 %vm282_vm4, %v1687_v46 }
0x11a4   :  { %4901 = vmatpush3.msra.mxu0 %v5589_v1  ;;  %4904 = vmatprep.mubr.msk.f32.mxu0 %vm5462_vm1, %v5461_v0 }
0x11a5   :  { %4902 = vmatprep.subr.mxu0 %v5461_v0 }
0x11a6   :  { %4903 = vmatpush3.msra.mxu0 %v5596_v3 }
0x11a7   :  { %4905 = vmatmul.mubr.msk.f32.vlgmr.msra.gmra.mxu0 %vm282_vm4, %v1766_v47  ;;  %4914 = vmatprep.subr.mxu0 %v5461_v0 }
0x11a8   :  { %4915 = vmatpush3.msra.mxu0 %v5635_v27  ;;  %4922 = vmatprep.mubr.msk.f32.mxu0 %vm5462_vm1, %v5461_v0 }
0x11a9   :  { %4916 = vmatprep.subr.mxu0 %v5461_v0 }
0x11aa   :  { %4917 = vmatpush3.msra.mxu0 %v5640_v28  ;;  %v2019_v20 = vld [vmem:[#allocation3] sm:$0x3] }
0x11ab   :  { %4918 = vmatprep.subr.mxu0 %v5461_v0 }
0x11ac   :  { %4919 = vmatpush3.msra.mxu0 %v5665_v38 }
0x11ad   :  { %4920 = vmatprep.subr.mxu0 %v5461_v0 }
0x11ae   :  { %4921 = vmatpush3.msra.mxu0 %v5672_v39 }
0x11af   :  { %4939 = vmatprep.subr.mxu0 %v5461_v0 }
0x1263   :  { %v1758_v51 = vpop.f32.mrf.mxu0 }
0x1264   :  { %v1759_v52 = vadd.f32 %v5745_v17, %v1758_v51 }
0x1265   :  { %v4894_v53 = vpop.f32.mrf.mxu0 }
0x1266   :  { %1763 = vst.msk [vmem:[#allocation16 + $0xa] sm:$0x3] %vm742_vm6, %v1759_v52 }
0x1267   :  { %v1909_v54 = vpop.f32.mrf.mxu0 }
0x1268   :  { %v1910_v55 = vadd.f32 %v5614_v7, %v1909_v54 }
0x1269   :  { %v4906_v56 = vpop.f32.mrf.mxu0 }
0x126a   :  { %1921 = vrot.lane.b32.xlu0 %v1910_v55, %s5463_s17  ;;  %v1913_v58 = vadd.f32 %v1910_v55, %v1837_v57 }
0x126c   :  { %v4558_v59 = vmul.f32 -1.442695, %v1913_v58 }
0x126e   :  { %5181 = vpow2.f32 %v4558_v59 }
0x127b   :  { %v5182_v60 = vpop.eup %5181 }
0x127c   :  { %v1917_v63 = vadd.f32 1.0, %v5182_v60 }
0x127e   :  { %5183 = vrcp.f32 %v1917_v63 }
0x128b   :  { %v5184_v4 = vpop.eup %5183 }
0x128c   :  { %v1931_v13 = vsub.f32 1.0, %v5184_v4 }
0x12dc   :  { %v1922_v5 = vpop.permute.xlu0 %1921 }
0x12dd   :  { %v1924_v6 = vmul.f32 %v5184_v4, %v1922_v5 }
0x12df   :  { %1926 = vrot.lane.b32.xlu1 %v1924_v6, %s5464_s18 }
0x12e3   :  { %1937 = vrot.lane.b32.xlu1 %v1766_v47, %s5466_s30 }
0x1351   :  { %v1927_v8 = vpop.permute.xlu1 %1926 }
0x1352   :  { %v1929_v9 = vadd.f32 %v1927_v8, %v1837_v57 }
0x1354   :  { %5185 = vtanh.f32 %v1929_v9 }
0x1355   :  { %v1938_v11 = vpop.permute.xlu1 %1937 }
0x1356   :  { %v1940_v15 = vmul.f32 %v5184_v4, %v1938_v11 }
0x1361   :  { %v5186_v10 = vpop.eup %5185 }
0x1362   :  { %1933 = vrot.lane.b32.xlu0 %v5186_v10, %s5465_s8 }
0x13d4   :  { %v1934_v14 = vpop.permute.xlu0 %1933 }
0x13d5   :  { %v1936_v16 = vmul.f32 %v1934_v14, %v1931_v13 }
0x13d7   :  { %v1941_v18 = vadd.f32 %v1940_v15, %v1936_v16 }
0x13d9   :  { %1943 = vrot.lane.b32.xlu0 %v1941_v18, %s5465_s8 }
0x144b   :  { %v1944_v19 = vpop.permute.xlu0 %1943 }
0x144c   :  { %1946 = vst.msk [vmem:[#allocation2] sm:$0x3] %vm167_vm0, %v1944_v19  ;;  %4912 = vmatmul.mubr.msk.f32.vlgmr.msra.gmra.mxu1 %vm282_vm4, %v1944_v19 }
0x144d   :  { %4926 = vmatpush3.msra.mxu1 %v5647_v34  ;;  %4929 = vmatprep.mubr.msk.f32.mxu1 %vm5462_vm1, %v5461_v0 }
0x144e   :  { %4927 = vmatprep.subr.mxu1 %v5461_v0 }
0x144f   :  { %4928 = vmatpush3.msra.mxu1 %v5651_v36 }
0x1450   :  { %4930 = vmatmul.mubr.msk.f32.vlgmr.msra.gmra.mxu1 %vm282_vm4, %v2019_v20  ;;  %4932 = vmatprep.subr.mxu1 %v5461_v0 }
0x1451   :  { %4933 = vmatpush3.msra.mxu1 %v5700_v61  ;;  %4936 = vmatprep.mubr.msk.f32.mxu1 %vm5462_vm1, %v5461_v0 }
0x1452   :  { %4934 = vmatprep.subr.mxu1 %v5461_v0 }
0x1453   :  { %4935 = vmatpush3.msra.mxu1 %v5705_v62 }
0x1454   :  { %4944 = vmatprep.subr.mxu1 %v5461_v0 }
0x150c   :  { %v2015_v21 = vpop.f32.mrf.mxu1 }
0x150d   :  { %v2016_v22 = vadd.f32 %v5676_v40, %v2015_v21 }
0x150e   :  { %v4913_v25 = vpop.f32.mrf.mxu1 }
0x150f   :  { %4923 = vmatmul.mubr.msk.f32.vlgmr.msra.gmra.mxu0 %vm476_vm5, %v2016_v22  ;;  %v5974_v25 = vld [vmem:[#allocation4] sm:$0xf] }
0x1510   :  { %v2162_v26 = vpop.f32.mrf.mxu1  ;;  %4940 = vmatpush3.msk.msra.mxu0 %vm202_vm2, %v5591_v2  ;;  %4941 = vmatprep.mubr.msk.f32.mxu0 %vm5462_vm1, %v5461_v0 }
0x1511   :  { %v2163_v29 = vadd.f32 %v5682_v44, %v2162_v26  ;;  %4951 = vmatprep.subr.mxu0 %v5461_v0 }
0x1512   :  { %v4931_v30 = vpop.f32.mrf.mxu1 }
0x1513   :  { %2174 = vrot.lane.b32.xlu1 %v2163_v29, %s5463_s17  ;;  %4942 = vmatmul.mubr.msk.f32.vlgmr.msra.gmra.mxu0 %vm198_vm3, %v4564_v50 }
0x1514   :  { %4952 = vmatpush3.msra.mxu0 %v5622_v23  ;;  %4955 = vmatprep.mubr.msk.f32.mxu0 %vm5462_vm1, %v5461_v0  ;;  %v2276_v23 = vld [vmem:[#allocation2] sm:$0x3] }
0x1515   :  { %4953 = vmatprep.subr.mxu0 %v5461_v0 }
0x1516   :  { %4954 = vmatpush3.msra.mxu0 %v5624_v24 }
0x1517   :  { %4969 = vmatprep.subr.mxu0 %v5461_v0 }
0x1585   :  { %v2175_v43 = vpop.permute.xlu1 %2174 }
0x15cf   :  { %v2089_v31 = vpop.f32.mrf.mxu0 }
0x15d0   :  { %v2090_v32 = vadd.f32 %v5692_v48, %v2089_v31 }
0x15d1   :  { %v4924_v33 = vpop.f32.mrf.mxu0 }
0x15d2   :  { %v2166_v35 = vadd.f32 %v2163_v29, %v2090_v32 }
0x15d4   :  { %v4562_v37 = vmul.f32 -1.442695, %v2166_v35 }
0x15d6   :  { %5187 = vpow2.f32 %v4562_v37 }
0x15e3   :  { %v5188_v41 = vpop.eup %5187 }
0x15e4   :  { %v2170_v42 = vadd.f32 1.0, %v5188_v41 }
0x15e6   :  { %5189 = vrcp.f32 %v2170_v42 }
0x15f3   :  { %v5190_v2 = vpop.eup %5189 }
0x15f4   :  { %v2177_v45 = vmul.f32 %v5190_v2, %v2175_v43  ;;  %v2184_v52 = vsub.f32 1.0, %v5190_v2  ;;  %v5991_v43 = vld [vmem:[#allocation10 + $0x8] sm:$0xff] }
0x15f6   :  { %2179 = vrot.lane.b32.xlu0 %v2177_v45, %s5464_s18 }
0x15fa   :  { %2190 = vrot.lane.b32.xlu0 %v2019_v20, %s5466_s30 }
0x1668   :  { %v2180_v46 = vpop.permute.xlu0 %2179 }
0x1669   :  { %v2182_v47 = vadd.f32 %v2180_v46, %v2090_v32 }
0x166b   :  { %5191 = vtanh.f32 %v2182_v47  ;;  %v5997_v47 = vld [vmem:[#allocation10] sm:$0xff] }
0x166c   :  { %v2191_v51 = vpop.permute.xlu0 %2190 }
0x166d   :  { %v2193_v54 = vmul.f32 %v5190_v2, %v2191_v51 }
0x1678   :  { %v5192_v49 = vpop.eup %5191 }
0x1679   :  { %2186 = vrot.lane.b32.xlu1 %v5192_v49, %s5465_s8 }
0x16eb   :  { %v2187_v53 = vpop.permute.xlu1 %2186 }
0x16ec   :  { %v2189_v55 = vmul.f32 %v2187_v53, %v2184_v52 }
0x16ee   :  { %v2194_v56 = vadd.f32 %v2193_v54, %v2189_v55  ;;  %v6007_v54 = vld [vmem:[%s6280_s2 + $0x8] sm:$0xff]  ;;  %v6016_v55 = vld [vmem:[%s6280_s2] sm:$0xff] }
0x16f0   :  { %2196 = vrot.lane.b32.xlu1 %v2194_v56, %s5465_s8 }
0x1762   :  { %v2197_v57 = vpop.permute.xlu1 %2196 }
0x1763   :  { %2199 = vst.msk [vmem:[#allocation3] sm:$0x3] %vm167_vm0, %v2197_v57  ;;  %4937 = vmatmul.mubr.msk.f32.vlgmr.msra.gmra.mxu1 %vm282_vm4, %v2197_v57  ;;  %v6024_v57 = vld [vmem:[%s6285_s7 + $0x18] sm:$0xff] }
0x1764   :  { %4945 = vmatpush3.msra.mxu1 %v5589_v1  ;;  %4948 = vmatprep.mubr.msk.f32.mxu1 %vm5462_vm1, %v5461_v0  ;;  %v2346_v1 = vpop.f32.mrf.mxu0 }
0x1765   :  { %4946 = vmatprep.subr.mxu1 %v5461_v0 }
0x1766   :  { %4947 = vmatpush3.msra.mxu1 %v5596_v3  ;;  %v4943_v3 = vpop.f32.mrf.mxu0 }
0x1767   :  { %4949 = vmatmul.mubr.msk.f32.vlgmr.msra.gmra.mxu1 %vm282_vm4, %v2276_v23  ;;  %4958 = vmatprep.subr.mxu1 %v5461_v0  ;;  %v6047_v3 = vld [vmem:[%s6285_s7] sm:$0xff] }
0x1768   :  { %4959 = vmatpush3.msra.mxu1 %v5635_v27  ;;  %4966 = vmatprep.mubr.msk.f32.mxu1 %vm5462_vm1, %v5461_v0 }
0x1769   :  { %4960 = vmatprep.subr.mxu1 %v5461_v0 }
0x176a   :  { %4961 = vmatpush3.msra.mxu1 %v5640_v28  ;;  %v2529_v20 = vld [vmem:[#allocation3] sm:$0x3] }
0x176b   :  { %4962 = vmatprep.subr.mxu1 %v5461_v0 }
0x176c   :  { %4963 = vmatpush3.msra.mxu1 %v5665_v38  ;;  %v2347_v38 = vadd.f32 %v5618_v12, %v2346_v1  ;;  %v6040_v1 = vld [vmem:[%s6285_s7 + $0x8] sm:$0xff] }
0x176d   :  { %4964 = vmatprep.subr.mxu1 %v5461_v0 }
0x176e   :  { %4965 = vmatpush3.msra.mxu1 %v5672_v39 }
0x176f   :  { %4983 = vmatprep.subr.mxu1 %v5461_v0 }
0x1823   :  { %v2268_v24 = vpop.f32.mrf.mxu1 }
0x1824   :  { %v2269_v27 = vadd.f32 %v5745_v17, %v2268_v24 }
0x1825   :  { %v4938_v58 = vpop.f32.mrf.mxu1 }
0x1826   :  { %2273 = vst.msk [vmem:[#allocation16 + $0x8] sm:$0x3] %vm742_vm6, %v2269_v27 }
0x1827   :  { %v2419_v59 = vpop.f32.mrf.mxu1 }
0x1828   :  { %v2420_v28 = vadd.f32 %v5614_v7, %v2419_v59 }
0x1829   :  { %v4950_v60 = vpop.f32.mrf.mxu1 }
0x182a   :  { %2431 = vrot.lane.b32.xlu0 %v2420_v28, %s5463_s17  ;;  %v2423_v63 = vadd.f32 %v2420_v28, %v2347_v38 }
0x182c   :  { %v4568_v39 = vmul.f32 -1.442695, %v2423_v63 }
0x182e   :  { %5193 = vpow2.f32 %v4568_v39 }
0x183b   :  { %v5194_v4 = vpop.eup %5193 }
0x183c   :  { %v2427_v5 = vadd.f32 1.0, %v5194_v4  ;;  %v6057_v4 = vld [vmem:[#allocation7] ss:$0 sm:$0xff] }
0x183e   :  { %5195 = vrcp.f32 %v2427_v5 }
0x184b   :  { %v5196_v6 = vpop.eup %5195 }
0x184c   :  { %v2441_v13 = vsub.f32 1.0, %v5196_v6 }
0x189c   :  { %v2432_v8 = vpop.permute.xlu0 %2431 }
0x189d   :  { %v2434_v9 = vmul.f32 %v5196_v6, %v2432_v8 }
0x189f   :  { %2436 = vrot.lane.b32.xlu1 %v2434_v9, %s5464_s18 }
0x18a3   :  { %2447 = vrot.lane.b32.xlu1 %v2276_v23, %s5466_s30  ;;  %v6033_v23 = vld [vmem:[%s6285_s7 + $0x10] sm:$0xff] }
0x1911   :  { %v2437_v10 = vpop.permute.xlu1 %2436 }
0x1912   :  { %v2439_v7 = vadd.f32 %v2437_v10, %v2347_v38  ;;  %v6053_v38 = vld [vmem:[#allocation9] ss:$0 sm:$0xff] }
0x1914   :  { %5197 = vtanh.f32 %v2439_v7 }
0x1915   :  { %v2448_v12 = vpop.permute.xlu1 %2447 }
0x1916   :  { %v2450_v15 = vmul.f32 %v5196_v6, %v2448_v12 }
0x1921   :  { %v5198_v11 = vpop.eup %5197 }
0x1922   :  { %2443 = vrot.lane.b32.xlu0 %v5198_v11, %s5465_s8 }
0x1994   :  { %v2444_v14 = vpop.permute.xlu0 %2443 }
0x1995   :  { %v2446_v16 = vmul.f32 %v2444_v14, %v2441_v13 }
0x1997   :  { %v2451_v18 = vadd.f32 %v2450_v15, %v2446_v16 }
0x1999   :  { %2453 = vrot.lane.b32.xlu0 %v2451_v18, %s5465_s8 }
0x1a0b   :  { %v2454_v19 = vpop.permute.xlu0 %2453 }
0x1a0c   :  { %2456 = vst.msk [vmem:[#allocation2] sm:$0x3] %vm167_vm0, %v2454_v19  ;;  %4956 = vmatmul.mubr.msk.f32.vlgmr.msra.gmra.mxu0 %vm282_vm4, %v2454_v19 }
0x1a0d   :  { %4970 = vmatpush3.msra.mxu0 %v5647_v34  ;;  %4973 = vmatprep.mubr.msk.f32.mxu0 %vm5462_vm1, %v5461_v0 }
0x1a0e   :  { %4971 = vmatprep.subr.mxu0 %v5461_v0 }
0x1a0f   :  { %4972 = vmatpush3.msra.mxu0 %v5651_v36 }
0x1a10   :  { %4974 = vmatmul.mubr.msk.f32.vlgmr.msra.gmra.mxu0 %vm282_vm4, %v2529_v20  ;;  %4976 = vmatprep.subr.mxu0 %v5461_v0 }
0x1a11   :  { %4977 = vmatpush3.msra.mxu0 %v5700_v61  ;;  %4980 = vmatprep.mubr.msk.f32.mxu0 %vm5462_vm1, %v5461_v0 }
0x1a12   :  { %4978 = vmatprep.subr.mxu0 %v5461_v0 }
0x1a13   :  { %4979 = vmatpush3.msra.mxu0 %v5705_v62  ;;  %v2786_v56 = vld [vmem:[#allocation2] sm:$0x3] }
0x1a14   :  { %4988 = vmatprep.subr.mxu0 %v5461_v0 }
0x1acc   :  { %v2525_v34 = vpop.f32.mrf.mxu0 }
0x1acd   :  { %v2526_v21 = vadd.f32 %v5676_v40, %v2525_v34 }
0x1ace   :  { %v4957_v36 = vpop.f32.mrf.mxu0 }
0x1acf   :  { %4967 = vmatmul.mubr.msk.f32.vlgmr.msra.gmra.mxu1 %vm476_vm5, %v2526_v21  ;;  %v6066_v36 = vld [vmem:[#allocation13 + $0x8] sm:$0xff] }
0x1ad0   :  { %v2672_v22 = vpop.f32.mrf.mxu0  ;;  %4984 = vmatpush3.msk.msra.mxu1 %vm202_vm2, %v5974_v25  ;;  %4985 = vmatprep.mubr.msk.f32.mxu1 %vm5462_vm1, %v5461_v0 }
0x1ad1   :  { %v2673_v61 = vadd.f32 %v5682_v44, %v2672_v22  ;;  %4995 = vmatprep.subr.mxu1 %v5461_v0  ;;  %v6072_v22 = vld [vmem:[#allocation13] sm:$0xff] }
0x1ad2   :  { %v4975_v62 = vpop.f32.mrf.mxu0 }
0x1ad3   :  { %2684 = vrot.lane.b32.xlu1 %v2673_v61, %s5463_s17  ;;  %v6080_v62 = vld [vmem:[%s6289_s11 + $0x8] sm:$0xff] }
0x1b45   :  { %v2685_v37 = vpop.permute.xlu1 %2684 }
0x1b8f   :  { %v2599_v40 = vpop.f32.mrf.mxu1 }
0x1b90   :  { %v2600_v26 = vadd.f32 %v5692_v48, %v2599_v40  ;;  %v4574_v48 = vld [vmem:[%s6297_s29 + $0x4] sm:$0x3] }
0x1b91   :  { %v4968_v29 = vpop.f32.mrf.mxu1  ;;  %4986 = vmatmul.mubr.msk.f32.vlgmr.msra.gmra.mxu1 %vm198_vm3, %v4574_v48  ;;  %v6089_v40 = vld [vmem:[%s6289_s11] sm:$0xff] }
0x1b92   :  { %v2676_v30 = vadd.f32 %v2673_v61, %v2600_v26  ;;  %4996 = vmatpush3.msra.mxu1 %v5991_v43  ;;  %4999 = vmatprep.mubr.msk.f32.mxu1 %vm5462_vm1, %v5461_v0  ;;  %v6093_v29 = vld [vmem:[#allocation12] ss:$0 sm:$0xff] }
0x1b93   :  { %4997 = vmatprep.subr.mxu1 %v5461_v0 }
0x1b94   :  { %v4572_v31 = vmul.f32 -1.442695, %v2676_v30  ;;  %4998 = vmatpush3.msra.mxu1 %v5997_v47 }
0x1b95   :  { %5013 = vmatprep.subr.mxu1 %v5461_v0 }
0x1b96   :  { %5199 = vpow2.f32 %v4572_v31 }
0x1ba3   :  { %v5200_v32 = vpop.eup %5199 }
0x1ba4   :  { %v2680_v33 = vadd.f32 1.0, %v5200_v32 }
0x1ba6   :  { %5201 = vrcp.f32 %v2680_v33  ;;  %v6104_v33 = vld [vmem:[%s6288_s10] ss:$0 sm:$0xff] }
0x1bb3   :  { %v5202_v35 = vpop.eup %5201 }
0x1bb4   :  { %v2687_v41 = vmul.f32 %v5202_v35, %v2685_v37  ;;  %v2694_v46 = vsub.f32 1.0, %v5202_v35 }
0x1bb6   :  { %2689 = vrot.lane.b32.xlu0 %v2687_v41, %s5464_s18 }
0x1bba   :  { %2700 = vrot.lane.b32.xlu0 %v2529_v20, %s5466_s30 }
0x1c28   :  { %v2690_v44 = vpop.permute.xlu0 %2689 }
0x1c29   :  { %v2692_v42 = vadd.f32 %v2690_v44, %v2600_v26  ;;  %v6109_v44 = vld [vmem:[#allocation15] ss:$0 sm:$0xff] }
0x1c2b   :  { %5203 = vtanh.f32 %v2692_v42 }
0x1c2c   :  { %v2701_v45 = vpop.permute.xlu0 %2700 }
0x1c2d   :  { %v2703_v50 = vmul.f32 %v5202_v35, %v2701_v45 }
0x1c38   :  { %v5204_v2 = vpop.eup %5203 }
0x1c39   :  { %2696 = vrot.lane.b32.xlu1 %v5204_v2, %s5465_s8 }
0x1c51   :  { %v2856_v24 = vpop.f32.mrf.mxu1 }
0x1c52   :  { %v2857_v5 = vadd.f32 %v6057_v4, %v2856_v24 }
0x1c53   :  { %v4987_v27 = vpop.f32.mrf.mxu1 }
0x1c54   :  { %v4584_v27 = vld [vmem:[%s6297_s29 + $0x2] sm:$0x3] }
0x1cab   :  { %v2697_v49 = vpop.permute.xlu1 %2696 }
0x1cac   :  { %v2699_v51 = vmul.f32 %v2697_v49, %v2694_v46 }
0x1cae   :  { %v2704_v52 = vadd.f32 %v2703_v50, %v2699_v51 }
0x1cb0   :  { %2706 = vrot.lane.b32.xlu1 %v2704_v52, %s5465_s8 }
0x1d22   :  { %v2707_v53 = vpop.permute.xlu1 %2706 }
0x1d23   :  { %2709 = vst.msk [vmem:[#allocation3] sm:$0x3] %vm167_vm0, %v2707_v53  ;;  %4981 = vmatmul.mubr.msk.f32.vlgmr.msra.gmra.mxu0 %vm282_vm4, %v2707_v53 }
0x1d24   :  { %4989 = vmatpush3.msra.mxu0 %v6007_v54  ;;  %4992 = vmatprep.mubr.msk.f32.mxu0 %vm5462_vm1, %v5461_v0 }
0x1d25   :  { %4990 = vmatprep.subr.mxu0 %v5461_v0 }
0x1d26   :  { %4991 = vmatpush3.msra.mxu0 %v6016_v55 }
0x1d27   :  { %4993 = vmatmul.mubr.msk.f32.vlgmr.msra.gmra.mxu0 %vm282_vm4, %v2786_v56  ;;  %5002 = vmatprep.subr.mxu0 %v5461_v0 }
0x1d28   :  { %5003 = vmatpush3.msra.mxu0 %v6024_v57  ;;  %5010 = vmatprep.mubr.msk.f32.mxu0 %vm5462_vm1, %v5461_v0 }
0x1d29   :  { %5004 = vmatprep.subr.mxu0 %v5461_v0 }
0x1d2a   :  { %5005 = vmatpush3.msra.mxu0 %v6033_v23  ;;  %v3039_v61 = vld [vmem:[#allocation3] sm:$0x3] }
0x1d2b   :  { %5006 = vmatprep.subr.mxu0 %v5461_v0 }
0x1d2c   :  { %5007 = vmatpush3.msra.mxu0 %v6040_v1 }
0x1d2d   :  { %5008 = vmatprep.subr.mxu0 %v5461_v0 }
0x1d2e   :  { %5009 = vmatpush3.msra.mxu0 %v6047_v3 }
0x1d2f   :  { %5027 = vmatprep.subr.mxu0 %v5461_v0 }
0x1de3   :  { %v2778_v58 = vpop.f32.mrf.mxu0 }
0x1de4   :  { %v2779_v59 = vadd.f32 %v5745_v17, %v2778_v58 }
0x1de5   :  { %v4982_v28 = vpop.f32.mrf.mxu0 }
0x1de6   :  { %2783 = vst.msk [vmem:[#allocation16 + $0x6] sm:$0x3] %vm742_vm6, %v2779_v59 }
0x1de7   :  { %v2929_v60 = vpop.f32.mrf.mxu0 }
0x1de8   :  { %v2930_v63 = vadd.f32 %v6053_v38, %v2929_v60 }
0x1de9   :  { %v4994_v39 = vpop.f32.mrf.mxu0 }
0x1dea   :  { %2941 = vrot.lane.b32.xlu0 %v2930_v63, %s5463_s17  ;;  %v2933_v6 = vadd.f32 %v2930_v63, %v2857_v5 }
0x1dec   :  { %v4578_v8 = vmul.f32 -1.442695, %v2933_v6 }
0x1dee   :  { %5205 = vpow2.f32 %v4578_v8 }
0x1dfb   :  { %v5206_v9 = vpop.eup %5205 }
0x1dfc   :  { %v2937_v17 = vadd.f32 1.0, %v5206_v9 }
0x1dfe   :  { %5207 = vrcp.f32 %v2937_v17 }
0x1e0b   :  { %v5208_v10 = vpop.eup %5207 }
0x1e0c   :  { %v2951_v16 = vsub.f32 1.0, %v5208_v10 }
0x1e5c   :  { %v2942_v7 = vpop.permute.xlu0 %2941 }
0x1e5d   :  { %v2944_v11 = vmul.f32 %v5208_v10, %v2942_v7 }
0x1e5f   :  { %2946 = vrot.lane.b32.xlu1 %v2944_v11, %s5464_s18 }
0x1e63   :  { %2957 = vrot.lane.b32.xlu1 %v2786_v56, %s5466_s30 }
0x1ed1   :  { %v2947_v12 = vpop.permute.xlu1 %2946 }
0x1ed2   :  { %v2949_v13 = vadd.f32 %v2947_v12, %v2857_v5 }
0x1ed4   :  { %5209 = vtanh.f32 %v2949_v13 }
0x1ed5   :  { %v2958_v15 = vpop.permute.xlu1 %2957 }
0x1ed6   :  { %v2960_v19 = vmul.f32 %v5208_v10, %v2958_v15  ;;  %v6148_v10 = vld [vmem:[%s6290_s12] ss:$0 sm:$0xff] }
0x1ee1   :  { %v5210_v14 = vpop.eup %5209 }
0x1ee2   :  { %2953 = vrot.lane.b32.xlu0 %v5210_v14, %s5465_s8 }
0x1f54   :  { %v2954_v18 = vpop.permute.xlu0 %2953 }
0x1f55   :  { %v2956_v20 = vmul.f32 %v2954_v18, %v2951_v16 }
0x1f57   :  { %v2961_v34 = vadd.f32 %v2960_v19, %v2956_v20 }
0x1f59   :  { %2963 = vrot.lane.b32.xlu0 %v2961_v34, %s5465_s8 }
0x1fcb   :  { %v2964_v21 = vpop.permute.xlu0 %2963 }
0x1fcc   :  { %2966 = vst.msk [vmem:[#allocation2] sm:$0x3] %vm167_vm0, %v2964_v21  ;;  %5000 = vmatmul.mubr.msk.f32.vlgmr.msra.gmra.mxu1 %vm282_vm4, %v2964_v21 }
0x1fcd   :  { %5014 = vmatpush3.msra.mxu1 %v6066_v36  ;;  %5017 = vmatprep.mubr.msk.f32.mxu1 %vm5462_vm1, %v5461_v0 }
0x1fce   :  { %5015 = vmatprep.subr.mxu1 %v5461_v0 }
0x1fcf   :  { %5016 = vmatpush3.msra.mxu1 %v6072_v22 }
0x1fd0   :  { %5018 = vmatmul.mubr.msk.f32.vlgmr.msra.gmra.mxu1 %vm282_vm4, %v3039_v61  ;;  %5020 = vmatprep.subr.mxu1 %v5461_v0 }
0x1fd1   :  { %5021 = vmatpush3.msra.mxu1 %v6080_v62  ;;  %5024 = vmatprep.mubr.msk.f32.mxu1 %vm5462_vm1, %v5461_v0 }
0x1fd2   :  { %5022 = vmatprep.subr.mxu1 %v5461_v0 }
0x1fd3   :  { %5023 = vmatpush3.msra.mxu1 %v6089_v40  ;;  %v3296_v6 = vld [vmem:[#allocation2] sm:$0x3] }
0x1fd4   :  { %5032 = vmatprep.subr.mxu1 %v5461_v0 }
0x208c   :  { %v3035_v26 = vpop.f32.mrf.mxu1 }
0x208d   :  { %v3036_v30 = vadd.f32 %v6093_v29, %v3035_v26 }
0x208e   :  { %v5001_v31 = vpop.f32.mrf.mxu1 }
0x208f   :  { %5011 = vmatmul.mubr.msk.f32.vlgmr.msra.gmra.mxu0 %vm476_vm5, %v3036_v30 }
0x2090   :  { %v3182_v32 = vpop.f32.mrf.mxu1  ;;  %5028 = vmatpush3.msk.msra.mxu0 %vm202_vm2, %v5974_v25  ;;  %5029 = vmatprep.mubr.msk.f32.mxu0 %vm5462_vm1, %v5461_v0 }
0x2091   :  { %v3183_v35 = vadd.f32 %v6104_v33, %v3182_v32  ;;  %5039 = vmatprep.subr.mxu0 %v5461_v0 }
0x2092   :  { %v5019_v37 = vpop.f32.mrf.mxu1 }
0x2093   :  { %3194 = vrot.lane.b32.xlu1 %v3183_v35, %s5463_s17  ;;  %5030 = vmatmul.mubr.msk.f32.vlgmr.msra.gmra.mxu0 %vm198_vm3, %v4584_v27 }
0x2094   :  { %5040 = vmatpush3.msra.mxu0 %v5991_v43  ;;  %5043 = vmatprep.mubr.msk.f32.mxu0 %vm5462_vm1, %v5461_v0 }
0x2095   :  { %5041 = vmatprep.subr.mxu0 %v5461_v0 }
0x2096   :  { %5042 = vmatpush3.msra.mxu0 %v5997_v47 }
0x2097   :  { %5057 = vmatprep.subr.mxu0 %v5461_v0 }
0x2105   :  { %v3195_v51 = vpop.permute.xlu1 %3194 }
0x214f   :  { %v3109_v41 = vpop.f32.mrf.mxu0 }
0x2150   :  { %v3110_v42 = vadd.f32 %v6109_v44, %v3109_v41 }
0x2151   :  { %v5012_v2 = vpop.f32.mrf.mxu0 }
0x2152   :  { %v3186_v48 = vadd.f32 %v3183_v35, %v3110_v42 }
0x2153   :  { %v3366_v8 = vpop.f32.mrf.mxu0 }
0x2154   :  { %v4582_v45 = vmul.f32 -1.442695, %v3186_v48  ;;  %v3367_v15 = vadd.f32 %v6057_v4, %v3366_v8 }
0x2155   :  { %v5031_v9 = vpop.f32.mrf.mxu0 }
0x2156   :  { %5211 = vpow2.f32 %v4582_v45  ;;  %v3804_v9 = vld [vmem:[%s6297_s29] sm:$0x3] }
0x2163   :  { %v5212_v46 = vpop.eup %5211 }
0x2164   :  { %v3190_v49 = vadd.f32 1.0, %v5212_v46 }
0x2166   :  { %5213 = vrcp.f32 %v3190_v49 }
0x2173   :  { %v5214_v50 = vpop.eup %5213 }
0x2174   :  { %v3197_v52 = vmul.f32 %v5214_v50, %v3195_v51  ;;  %v3204_v59 = vsub.f32 1.0, %v5214_v50 }
0x2176   :  { %3199 = vrot.lane.b32.xlu0 %v3197_v52, %s5464_s18 }
0x217a   :  { %3210 = vrot.lane.b32.xlu0 %v3039_v61, %s5466_s30 }
0x21e8   :  { %v3200_v53 = vpop.permute.xlu0 %3199 }
0x21e9   :  { %v3202_v56 = vadd.f32 %v3200_v53, %v3110_v42 }
0x21eb   :  { %5215 = vtanh.f32 %v3202_v56 }
0x21ec   :  { %v3211_v58 = vpop.permute.xlu0 %3210 }
0x21ed   :  { %v3213_v60 = vmul.f32 %v5214_v50, %v3211_v58 }
0x21f8   :  { %v5216_v24 = vpop.eup %5215 }
0x21f9   :  { %3206 = vrot.lane.b32.xlu1 %v5216_v24, %s5465_s8 }
0x226b   :  { %v3207_v28 = vpop.permute.xlu1 %3206 }
0x226c   :  { %v3209_v63 = vmul.f32 %v3207_v28, %v3204_v59 }
0x226e   :  { %v3214_v39 = vadd.f32 %v3213_v60, %v3209_v63 }
0x2270   :  { %3216 = vrot.lane.b32.xlu1 %v3214_v39, %s5465_s8 }
0x22e2   :  { %v3217_v5 = vpop.permute.xlu1 %3216 }
0x22e3   :  { %3219 = vst.msk [vmem:[#allocation3] sm:$0x3] %vm167_vm0, %v3217_v5  ;;  %5025 = vmatmul.mubr.msk.f32.vlgmr.msra.gmra.mxu1 %vm282_vm4, %v3217_v5 }
0x22e4   :  { %5033 = vmatpush3.msra.mxu1 %v6007_v54  ;;  %5036 = vmatprep.mubr.msk.f32.mxu1 %vm5462_vm1, %v5461_v0 }
0x22e5   :  { %5034 = vmatprep.subr.mxu1 %v5461_v0 }
0x22e6   :  { %5035 = vmatpush3.msra.mxu1 %v6016_v55 }
0x22e7   :  { %5037 = vmatmul.mubr.msk.f32.vlgmr.msra.gmra.mxu1 %vm282_vm4, %v3296_v6  ;;  %5046 = vmatprep.subr.mxu1 %v5461_v0 }
0x22e8   :  { %5047 = vmatpush3.msra.mxu1 %v6024_v57  ;;  %5054 = vmatprep.mubr.msk.f32.mxu1 %vm5462_vm1, %v5461_v0 }
0x22e9   :  { %5048 = vmatprep.subr.mxu1 %v5461_v0 }
0x22ea   :  { %5049 = vmatpush3.msra.mxu1 %v6033_v23  ;;  %v3549_v45 = vld [vmem:[#allocation3] sm:$0x3] }
0x22eb   :  { %5050 = vmatprep.subr.mxu1 %v5461_v0 }
0x22ec   :  { %5051 = vmatpush3.msra.mxu1 %v6040_v1 }
0x22ed   :  { %5052 = vmatprep.subr.mxu1 %v5461_v0 }
0x22ee   :  { %5053 = vmatpush3.msra.mxu1 %v6047_v3 }
0x22ef   :  { %5071 = vmatprep.subr.mxu1 %v5461_v0 }
0x23a3   :  { %v3288_v17 = vpop.f32.mrf.mxu1 }
0x23a4   :  { %v3289_v7 = vadd.f32 %v6148_v10, %v3288_v17 }
0x23a5   :  { %v5026_v11 = vpop.f32.mrf.mxu1 }
0x23a6   :  { %3293 = vst.msk [vmem:[#allocation16 + $0x4] sm:$0x3] %vm742_vm6, %v3289_v7 }
0x23a7   :  { %v3439_v12 = vpop.f32.mrf.mxu1 }
0x23a8   :  { %v3440_v13 = vadd.f32 %v6053_v38, %v3439_v12 }
0x23a9   :  { %v5038_v14 = vpop.f32.mrf.mxu1 }
0x23aa   :  { %3451 = vrot.lane.b32.xlu0 %v3440_v13, %s5463_s17  ;;  %v3443_v16 = vadd.f32 %v3440_v13, %v3367_v15 }
0x23ac   :  { %v4588_v18 = vmul.f32 -1.442695, %v3443_v16 }
0x23ae   :  { %5217 = vpow2.f32 %v4588_v18 }
0x23bb   :  { %v5218_v19 = vpop.eup %5217 }
0x23bc   :  { %v3447_v20 = vadd.f32 1.0, %v5218_v19 }
0x23be   :  { %5219 = vrcp.f32 %v3447_v20 }
0x23cb   :  { %v5220_v34 = vpop.eup %5219 }
0x23cc   :  { %v3461_v35 = vsub.f32 1.0, %v5220_v34 }
0x241c   :  { %v3452_v21 = vpop.permute.xlu0 %3451 }
0x241d   :  { %v3454_v61 = vmul.f32 %v5220_v34, %v3452_v21 }
0x241f   :  { %3456 = vrot.lane.b32.xlu1 %v3454_v61, %s5464_s18 }
0x2423   :  { %3467 = vrot.lane.b32.xlu1 %v3296_v6, %s5466_s30 }
0x2491   :  { %v3457_v26 = vpop.permute.xlu1 %3456 }
0x2492   :  { %v3459_v30 = vadd.f32 %v3457_v26, %v3367_v15 }
0x2494   :  { %5221 = vtanh.f32 %v3459_v30 }
0x2495   :  { %v3468_v32 = vpop.permute.xlu1 %3467 }
0x2496   :  { %v3470_v41 = vmul.f32 %v5220_v34, %v3468_v32 }
0x24a1   :  { %v5222_v31 = vpop.eup %5221 }
0x24a2   :  { %3463 = vrot.lane.b32.xlu0 %v5222_v31, %s5465_s8 }
0x2514   :  { %v3464_v37 = vpop.permute.xlu0 %3463 }
0x2515   :  { %v3466_v42 = vmul.f32 %v3464_v37, %v3461_v35 }
0x2517   :  { %v3471_v2 = vadd.f32 %v3470_v41, %v3466_v42 }
0x2519   :  { %3473 = vrot.lane.b32.xlu0 %v3471_v2, %s5465_s8 }
0x258b   :  { %v3474_v48 = vpop.permute.xlu0 %3473 }
0x258c   :  { %3476 = vst.msk [vmem:[#allocation2] sm:$0x3] %vm167_vm0, %v3474_v48  ;;  %5044 = vmatmul.mubr.msk.f32.vlgmr.msra.gmra.mxu0 %vm282_vm4, %v3474_v48 }
0x258d   :  { %5058 = vmatpush3.msra.mxu0 %v6066_v36  ;;  %5061 = vmatprep.mubr.msk.f32.mxu0 %vm5462_vm1, %v5461_v0 }
0x258e   :  { %5059 = vmatprep.subr.mxu0 %v5461_v0 }
0x258f   :  { %5060 = vmatpush3.msra.mxu0 %v6072_v22 }
0x2590   :  { %5062 = vmatmul.mubr.msk.f32.vlgmr.msra.gmra.mxu0 %vm282_vm4, %v3549_v45  ;;  %5064 = vmatprep.subr.mxu0 %v5461_v0 }
0x2591   :  { %5065 = vmatpush3.msra.mxu0 %v6080_v62  ;;  %5068 = vmatprep.mubr.msk.f32.mxu0 %vm5462_vm1, %v5461_v0 }
0x2592   :  { %5066 = vmatprep.subr.mxu0 %v5461_v0 }
0x2593   :  { %5067 = vmatpush3.msra.mxu0 %v6089_v40 }
0x2594   :  { %5076 = vmatprep.subr.mxu0 %v5461_v0 }
0x264c   :  { %v3545_v46 = vpop.f32.mrf.mxu0 }
0x264d   :  { %v3546_v49 = vadd.f32 %v6093_v29, %v3545_v46 }
0x264e   :  { %v5045_v50 = vpop.f32.mrf.mxu0 }
0x264f   :  { %5055 = vmatmul.mubr.msk.f32.vlgmr.msra.gmra.mxu1 %vm476_vm5, %v3546_v49 }
0x2650   :  { %v3692_v51 = vpop.f32.mrf.mxu0  ;;  %5072 = vmatpush3.msk.msra.mxu1 %vm202_vm2, %v5974_v25  ;;  %5073 = vmatprep.mubr.msk.f32.mxu1 %vm5462_vm1, %v5461_v0 }
0x2651   :  { %v3693_v52 = vadd.f32 %v6104_v33, %v3692_v51  ;;  %5083 = vmatprep.subr.mxu1 %v5461_v0 }
0x2652   :  { %v5063_v53 = vpop.f32.mrf.mxu0 }
0x2653   :  { %3704 = vrot.lane.b32.xlu1 %v3693_v52, %s5463_s17  ;;  %5074 = vmatmul.mubr.msk.f32.vlgmr.msra.gmra.mxu1 %vm198_vm3, %v3804_v9 }
0x2654   :  { %5084 = vmatpush3.msra.mxu1 %v5991_v43  ;;  %5087 = vmatprep.mubr.msk.f32.mxu1 %vm5462_vm1, %v5461_v0  ;;  %v3805_v43 = vld [vmem:[#allocation2] sm:$0x3] }
0x2655   :  { %5085 = vmatprep.subr.mxu1 %v5461_v0 }
0x2656   :  { %5086 = vmatpush3.msra.mxu1 %v5997_v47 }
0x2657   :  { %5101 = vmatprep.subr.mxu1 %v5461_v0 }
0x26c5   :  { %v3705_v63 = vpop.permute.xlu1 %3704 }
0x270f   :  { %v3619_v56 = vpop.f32.mrf.mxu1 }
0x2710   :  { %v3620_v24 = vadd.f32 %v6109_v44, %v3619_v56 }
0x2711   :  { %v5056_v27 = vpop.f32.mrf.mxu1 }
0x2712   :  { %v3696_v58 = vadd.f32 %v3693_v52, %v3620_v24 }
0x2713   :  { %v3875_v47 = vpop.f32.mrf.mxu1 }
0x2714   :  { %v4592_v59 = vmul.f32 -1.442695, %v3696_v58 }
0x2716   :  { %5223 = vpow2.f32 %v4592_v59 }
0x2723   :  { %v5224_v28 = vpop.eup %5223 }
0x2724   :  { %v3700_v60 = vadd.f32 1.0, %v5224_v28 }
0x2726   :  { %5225 = vrcp.f32 %v3700_v60 }
0x2733   :  { %v5226_v25 = vpop.eup %5225 }
0x2734   :  { %v3707_v39 = vmul.f32 %v5226_v25, %v3705_v63  ;;  %v3714_v7 = vsub.f32 1.0, %v5226_v25 }
0x2736   :  { %3709 = vrot.lane.b32.xlu0 %v3707_v39, %s5464_s18 }
0x273a   :  { %3720 = vrot.lane.b32.xlu0 %v3549_v45, %s5466_s30 }
0x27a8   :  { %v3710_v5 = vpop.permute.xlu0 %3709 }
0x27a9   :  { %v3712_v6 = vadd.f32 %v3710_v5, %v3620_v24 }
0x27ab   :  { %5227 = vtanh.f32 %v3712_v6 }
0x27ac   :  { %v3721_v17 = vpop.permute.xlu0 %3720 }
0x27ad   :  { %v3723_v12 = vmul.f32 %v5226_v25, %v3721_v17  ;;  %v4389_v17 = vld [vmem:[%s6291_s13] sm:$0xff] }
0x27b8   :  { %v5228_v8 = vpop.eup %5227 }
0x27b9   :  { %3716 = vrot.lane.b32.xlu1 %v5228_v8, %s5465_s8 }
0x282b   :  { %v3717_v11 = vpop.permute.xlu1 %3716 }
0x282c   :  { %v3719_v13 = vmul.f32 %v3717_v11, %v3714_v7 }
0x282e   :  { %v3724_v14 = vadd.f32 %v3723_v12, %v3719_v13 }
0x2830   :  { %3726 = vrot.lane.b32.xlu1 %v3724_v14, %s5465_s8 }
0x28a2   :  { %v3727_v15 = vpop.permute.xlu1 %3726 }
0x28a3   :  { %3729 = vst.msk [vmem:[#allocation3] sm:$0x3] %vm167_vm0, %v3727_v15  ;;  %5069 = vmatmul.mubr.msk.f32.vlgmr.msra.gmra.mxu0 %vm282_vm4, %v3727_v15 }
0x28a4   :  { %5077 = vmatpush3.msra.mxu0 %v6007_v54  ;;  %5080 = vmatprep.mubr.msk.f32.mxu0 %vm5462_vm1, %v5461_v0  ;;  %v5075_v54 = vpop.f32.mrf.mxu1 }
0x28a5   :  { %5078 = vmatprep.subr.mxu0 %v5461_v0 }
0x28a6   :  { %5079 = vmatpush3.msra.mxu0 %v6016_v55 }
0x28a7   :  { %5081 = vmatmul.mubr.msk.f32.vlgmr.msra.gmra.mxu0 %vm282_vm4, %v3805_v43  ;;  %5090 = vmatprep.subr.mxu0 %v5461_v0 }
0x28a8   :  { %5091 = vmatpush3.msra.mxu0 %v6024_v57  ;;  %5098 = vmatprep.mubr.msk.f32.mxu0 %vm5462_vm1, %v5461_v0 }
0x28a9   :  { %5092 = vmatprep.subr.mxu0 %v5461_v0 }
0x28aa   :  { %5093 = vmatpush3.msra.mxu0 %v6033_v23  ;;  %v4058_v45 = vld [vmem:[#allocation3] sm:$0x3] }
0x28ab   :  { %5094 = vmatprep.subr.mxu0 %v5461_v0 }
0x28ac   :  { %5095 = vmatpush3.msra.mxu0 %v6040_v1  ;;  %v3876_v1 = vadd.f32 %v6057_v4, %v3875_v47 }
0x28ad   :  { %5096 = vmatprep.subr.mxu0 %v5461_v0 }
0x28ae   :  { %5097 = vmatpush3.msra.mxu0 %v6047_v3 }
0x28af   :  { %5115 = vmatprep.subr.mxu0 %v5461_v0 }
0x2963   :  { %v3798_v55 = vpop.f32.mrf.mxu0 }
0x2964   :  { %v3799_v57 = vadd.f32 %v6148_v10, %v3798_v55 }
0x2965   :  { %v5070_v16 = vpop.f32.mrf.mxu0 }
0x2966   :  { %3803 = vst.msk [vmem:[#allocation16 + $0x2] sm:$0x3] %vm742_vm6, %v3799_v57 }
0x2967   :  { %v3948_v18 = vpop.f32.mrf.mxu0 }
0x2968   :  { %v3949_v23 = vadd.f32 %v6053_v38, %v3948_v18 }
0x2969   :  { %v5082_v19 = vpop.f32.mrf.mxu0 }
0x296a   :  { %3960 = vrot.lane.b32.xlu0 %v3949_v23, %s5463_s17  ;;  %v3952_v20 = vadd.f32 %v3949_v23, %v3876_v1 }
0x296c   :  { %v4597_v3 = vmul.f32 -1.442695, %v3952_v20 }
0x296e   :  { %5229 = vpow2.f32 %v4597_v3 }
0x297b   :  { %v5230_v34 = vpop.eup %5229 }
0x297c   :  { %v3956_v21 = vadd.f32 1.0, %v5230_v34 }
0x297e   :  { %5231 = vrcp.f32 %v3956_v21 }
0x298b   :  { %v5232_v61 = vpop.eup %5231 }
0x298c   :  { %v3970_v35 = vsub.f32 1.0, %v5232_v61 }
0x29dc   :  { %v3961_v26 = vpop.permute.xlu0 %3960 }
0x29dd   :  { %v3963_v30 = vmul.f32 %v5232_v61, %v3961_v26 }
0x29df   :  { %3965 = vrot.lane.b32.xlu1 %v3963_v30, %s5464_s18 }
0x29e3   :  { %3976 = vrot.lane.b32.xlu1 %v3805_v43, %s5466_s30 }
0x2a51   :  { %v3966_v31 = vpop.permute.xlu1 %3965 }
0x2a52   :  { %v3968_v38 = vadd.f32 %v3966_v31, %v3876_v1 }
0x2a54   :  { %5233 = vtanh.f32 %v3968_v38 }
0x2a55   :  { %v3977_v4 = vpop.permute.xlu1 %3976 }
0x2a56   :  { %v3979_v41 = vmul.f32 %v5232_v61, %v3977_v4 }
0x2a61   :  { %v5234_v32 = vpop.eup %5233 }
0x2a62   :  { %3972 = vrot.lane.b32.xlu0 %v5234_v32, %s5465_s8 }
0x2ad4   :  { %v3973_v37 = vpop.permute.xlu0 %3972 }
0x2ad5   :  { %v3975_v42 = vmul.f32 %v3973_v37, %v3970_v35 }
0x2ad7   :  { %v3980_v2 = vadd.f32 %v3979_v41, %v3975_v42 }
0x2ad9   :  { %3982 = vrot.lane.b32.xlu0 %v3980_v2, %s5465_s8 }
0x2b4b   :  { %v3983_v48 = vpop.permute.xlu0 %3982 }
0x2b4c   :  { %3985 = vst.msk [vmem:[#allocation2] sm:$0x3] %vm167_vm0, %v3983_v48  ;;  %5088 = vmatmul.mubr.msk.f32.vlgmr.msra.gmra.mxu1 %vm282_vm4, %v3983_v48 }
0x2b4d   :  { %5102 = vmatpush3.msra.mxu1 %v6066_v36  ;;  %5105 = vmatprep.mubr.msk.f32.mxu1 %vm5462_vm1, %v5461_v0 }
0x2b4e   :  { %5103 = vmatprep.subr.mxu1 %v5461_v0 }
0x2b4f   :  { %5104 = vmatpush3.msra.mxu1 %v6072_v22 }
0x2b50   :  { %5106 = vmatmul.mubr.msk.f32.vlgmr.msra.gmra.mxu1 %vm282_vm4, %v4058_v45  ;;  %5108 = vmatprep.subr.mxu1 %v5461_v0 }
0x2b51   :  { %5109 = vmatpush3.msra.mxu1 %v6080_v62  ;;  %5112 = vmatprep.mubr.msk.f32.mxu1 %vm5462_vm1, %v5461_v0 }
0x2b52   :  { %5110 = vmatprep.subr.mxu1 %v5461_v0 }
0x2b53   :  { %5111 = vmatpush3.msra.mxu1 %v6089_v40 }
0x2b54   :  { %5122 = vmatprep.subr.mxu1 %v5461_v0 }
0x2c0c   :  { %v4054_v36 = vpop.f32.mrf.mxu1 }
0x2c0d   :  { %v4055_v46 = vadd.f32 %v6093_v29, %v4054_v36 }
0x2c0e   :  { %v5089_v22 = vpop.f32.mrf.mxu1 }
0x2c0f   :  { %5099 = vmatmul.mubr.msk.f32.vlgmr.msra.gmra.mxu0 %vm476_vm5, %v4055_v46 }
0x2c10   :  { %v4201_v49 = vpop.f32.mrf.mxu1  ;;  %5116 = vmatpush3.msra.mxu0 %v6080_v62  ;;  %5119 = vmatprep.mubr.msk.f32.mxu0 %vm5462_vm1, %v5461_v0 }
0x2c11   :  { %v4202_v50 = vadd.f32 %v6104_v33, %v4201_v49  ;;  %5117 = vmatprep.subr.mxu0 %v5461_v0 }
0x2c12   :  { %v5107_v51 = vpop.f32.mrf.mxu1  ;;  %5118 = vmatpush3.msra.mxu0 %v6089_v40 }
0x2c13   :  { %4213 = vrot.lane.b32.xlu1 %v4202_v50, %s5463_s17 }
0x2c85   :  { %v4214_v59 = vpop.permute.xlu1 %4213 }
0x2ccf   :  { %v4128_v52 = vpop.f32.mrf.mxu0 }
0x2cd0   :  { %v4129_v29 = vadd.f32 %v6109_v44, %v4128_v52 }
0x2cd1   :  { %v5100_v53 = vpop.f32.mrf.mxu0 }
0x2cd2   :  { %v4205_v56 = vadd.f32 %v4202_v50, %v4129_v29 }
0x2cd4   :  { %v4601_v24 = vmul.f32 -1.442695, %v4205_v56 }
0x2cd6   :  { %5235 = vpow2.f32 %v4601_v24 }
0x2ce3   :  { %v5236_v62 = vpop.eup %5235 }
0x2ce4   :  { %v4209_v27 = vadd.f32 1.0, %v5236_v62 }
0x2ce6   :  { %5237 = vrcp.f32 %v4209_v27 }
0x2cf3   :  { %v5238_v58 = vpop.eup %5237 }
0x2cf4   :  { %v4216_v33 = vmul.f32 %v5238_v58, %v4214_v59  ;;  %v4223_v25 = vsub.f32 1.0, %v5238_v58 }
0x2cf6   :  { %4218 = vrot.lane.b32.xlu0 %v4216_v33, %s5464_s18 }
0x2cfa   :  { %4229 = vrot.lane.b32.xlu0 %v4058_v45, %s5466_s30 }
0x2d68   :  { %v4219_v40 = vpop.permute.xlu0 %4218 }
0x2d69   :  { %v4221_v28 = vadd.f32 %v4219_v40, %v4129_v29 }
0x2d6b   :  { %5239 = vtanh.f32 %v4221_v28 }
0x2d6c   :  { %v4230_v44 = vpop.permute.xlu0 %4229 }
0x2d6d   :  { %v4232_v39 = vmul.f32 %v5238_v58, %v4230_v44 }
0x2d78   :  { %v5240_v60 = vpop.eup %5239 }
0x2d79   :  { %4225 = vrot.lane.b32.xlu1 %v5240_v60, %s5465_s8 }
0x2deb   :  { %v4226_v63 = vpop.permute.xlu1 %4225 }
0x2dec   :  { %v4228_v5 = vmul.f32 %v4226_v63, %v4223_v25 }
0x2dee   :  { %v4233_v6 = vadd.f32 %v4232_v39, %v4228_v5 }
0x2df0   :  { %4235 = vrot.lane.b32.xlu1 %v4233_v6, %s5465_s8  ;;  %s5467_s8 = smov [#allocation16]  }
0x2df1   :  { %s4481_s30 = sshll.u32 %s5467_s8, 4  ;;  %s4482_s30 = int_to_ptr.vmem [resolvable:$true] %s4481_s30 }
0x2df2   :  { %s5400_s6 = scalar_lea.vmem %s4482_s30, 256  ;;  %p5405_p8 = scmp.lt.s32.totalorder %s4482_s30, %s4482_s30 }
0x2df3   :  { %p5401_p7 = scmp.ne.s32.totalorder %s4482_s30, %s5400_s6  ;;  %p5406_p9 = scmp.lt.s32.totalorder %s5400_s6, %s5400_s6 }
0x2df5   :  { %p5407_p10 = por %p5406_p9, %p5405_p8 }
0x2df7   :  { %p5408_p11 = pnand %p5407_p10, %p5401_p7 }
0x2e62   :  { %v4236_v8 = vpop.permute.xlu1 %4235 }
0x2e63   :  { %4238 = vst.msk [vmem:[#allocation3] sm:$0x3] %vm167_vm0, %v4236_v8  ;;  %5113 = vmatmul.mubr.msk.f32.vlgmr.msra.gmra.mxu1 %vm282_vm4, %v4236_v8 }
0x2e64   :  { %5124 = vmatprep.mubr.msk.f32.mxu1 %vm5462_vm1, %v5461_v0  ;;  %5123 = vmatpush3.msra.mxu1 %v4389_v17 }
0x2e6a   :  { %v4315_v9 = vld [vmem:[#allocation3] sm:$0x3] }
0x2e6b   :  { %5120 = vmatmul.mubr.msk.f32.vlgmr.msra.gmra.mxu0 %vm282_vm4, %v4315_v9 }
0x2f23   :  { %v4307_v7 = vpop.f32.mrf.mxu1 }
0x2f24   :  { %v4308_v11 = vadd.f32 %v6148_v10, %v4307_v7 }
0x2f25   :  { %v5114_v12 = vpop.f32.mrf.mxu1 }
0x2f26   :  { %4311 = vst.msk [vmem:[#allocation16] sm:$0x3] %vm742_vm6, %v4308_v11 }
0x2f2b   :  { %v4385_v13 = vpop.f32.mrf.mxu0 }
0x2f2c   :  { %v4386_v14 = vadd.f32 %v6148_v10, %v4385_v13 }
0x2f2d   :  { %v5121_v15 = vpop.f32.mrf.mxu0 }
0x2f2e   :  { %5125 = vmatmul.mubr.msk.f32.vlgmr.msra.gmra.mxu1 %vm4397_vm7, %v4386_v14 }
0x2f2f   :  { %5411 = shalt.err (!%p5408_p11)
}
0x2f30   :  { %s5468_s13 = smov 2   ;;  %v4604_v0 = vld [vmem:[%s6292_s14] ss:$0 sm:$0xff]  ;;  %s5469_s27 = smov [#allocation17]  }
0x2f31   :  { %4487 = dma.vmem_to_hbm [thread:$0]  %s4482_s30, 256, %s6293_s15, [#allocation6], %s5464_s18, %s5464_s18, %s5468_s13  }
0x2f32   :  { %s4494_s28 = sshll.u32 %s5469_s27, 4  ;;  %s4495_s28 = int_to_ptr.vmem [resolvable:$true] %s4494_s28 }
0x2f33   :  { %s5420_s0 = scalar_lea.vmem %s4495_s28, 32  ;;  %p5425_p13 = scmp.lt.s32.totalorder %s4495_s28, %s4495_s28 }
0x2f34   :  { %p5421_p12 = scmp.ne.s32.totalorder %s4495_s28, %s5420_s0  ;;  %p5426_p0 = scmp.lt.s32.totalorder %s5420_s0, %s5420_s0 }
0x2f36   :  { %p5427_p1 = por %p5426_p0, %p5425_p13 }
0x2f38   :  { %p5428_p2 = pnand %p5427_p1, %p5421_p12 }
0x2fee   :  { %v4467_v10 = vpop.f32.mrf.mxu1 }
0x2fef   :  { %v4468_v43 = vadd.f32 %v4604_v0, %v4467_v10 }
0x2ff0   :  { %v5126_v47 = vpop.f32.mrf.mxu1 }
0x2ff1   :  { %4471 = vst.msk [vmem:[#allocation17] sm:$0x3] %vm742_vm6, %v4468_v43 }
0x2ff2   :  { %5431 = shalt.err (!%p5428_p2)
}
0x2ff3   :  { %4497 = dma.vmem_to_hbm [thread:$0]  %s4495_s28, 32, %s6294_s16, [#allocation18]  }
0x2ff4   :  { %5448 = dma.done.wait [#allocation6], 256  }
0x2ff5   :  { %5449 = vsyncadd [#allocation6], 4294967040 }
0x2ff6   :  { %5450 = dma.done.wait [#allocation18], 32  }
0x2ff7   :  { %5451 = vsyncadd [#allocation18], 4294967264 }
0x2ff8   :  { %4504 = vsyncpa [#allocation5], 1 }
0x2ff9   :  { %4505 = vsyncpa [#allocation8], 1 }
0x2ffa   :  { %4506 = vsyncpa [#allocation11], 1 }
0x2ffb   :  { %4507 = vsyncpa [#allocation14], 1 }
0x2ffc   :  { %4508 = vsyncpa [#allocation6], 1 }
0x2ffd   :  { %4509 = vsyncpa [#allocation18], 1 }

</bundles_post_ra>
